<compile_context>
chip_gen: v6e
topology: v6e:2x2x1
jax: 0.10.0
libtpu: 0.0.40
codegen_flags: <defaults>
</compile_context>

<pallas_src>
import functools

import jax
import jax.numpy as jnp
from jax.experimental import pallas as pl
from jax.experimental.pallas import tpu as pltpu


def _round_up(n, m):
    return ((n + m - 1) // m) * m


# ---------------------------------------------------------------------------
# Fused Pallas kernel
# ---------------------------------------------------------------------------

def _kcrnet_kernel(emit_intermediates,
                   x_ref, w1_ref, b1_ref, w2_ref, b2_ref, w3_ref, b3_ref,
                   wl1_ref, bl1_ref, wl2_ref, bl2_ref, *rest):
    """Fused KcrNet forward for one batch tile.

    x_ref:   (L1 + 4, TB, 32)  input, spatially (+2/+2) and channel (21->32)
                               zero padded, L-major channels-last.
    w*_ref:  conv weights as (K=5, Cin=32, Cout=32); wl*_ref dense (Din, Dout).
    b*_ref:  (1, Cout) f32 biases.
    rest:    [out1, out2, out3, lin1,] logits, h1p_scratch, h2p_scratch
             (out1..lin1 only when emit_intermediates).
    """
    h1p_ref, h2p_ref = rest[-2], rest[-1]
    if emit_intermediates:
        out1_ref, out2_ref, out3_ref, lin1_ref, logits_ref = rest[:-2]
    else:
        (logits_ref,) = rest[:-2]

    Lp, TB, C = x_ref.shape                  # (L1+4, TB, 32)
    L1 = Lp - 4                              # conv1: k=5, pad=2, stride=1
    L2 = (L1 - 1) // 2 + 1                   # conv2: k=5, pad=2, stride=2
    L3 = (L2 - 1) // 2 + 1                   # conv3: k=5, pad=2, stride=2

    def conv(taps, w_ref, b_ref):
        """relu(sum_k taps[k] @ W_k + b); taps: list of (rows, Cin) slices."""
        acc = jnp.dot(taps[0].astype(w_ref.dtype), w_ref[0],
                      preferred_element_type=jnp.float32)
        for k in range(1, len(taps)):
            acc = acc + jnp.dot(taps[k].astype(w_ref.dtype), w_ref[k],
                                preferred_element_type=jnp.float32)
        return jnp.maximum(acc + b_ref[...], 0.0)

    def dense(x2d, w_ref, b_ref, relu):
        y = jnp.dot(x2d.astype(w_ref.dtype), w_ref[...],
                    preferred_element_type=jnp.float32) + b_ref[...]
        return jnp.maximum(y, 0.0) if relu else y

    def stash_and_split(h3d, hp_ref, l_in):
        """Write h3d into hp_ref's interior, zero the halo rows (every step:
        safe under megacore grid splitting), return even/odd row streams of
        the zero-padded activation."""
        hp_len = hp_ref.shape[0]
        hp_ref[0:2] = jnp.zeros((2, TB, C), jnp.float32)
        hp_ref[2:2 + l_in] = h3d
        hp_ref[2 + l_in:hp_len] = jnp.zeros((hp_len - 2 - l_in, TB, C),
                                            jnp.float32)
        half = hp_ref[...].reshape(hp_len // 2, 2, TB, C)
        return half[:, 0], half[:, 1]        # rows 2i, rows 2i+1

    def lane_slab(h3d, l_out):
        """(L, TB, C) -> lane-dense (TB, L*C) slab, column = l*C + c."""
        return jnp.concatenate([h3d[l] for l in range(l_out)], axis=-1)

    # ---- conv1 (stride 1): 5 tap-accumulated matmuls, taps are contiguous
    #      leading-dim slices of the pre-padded input.
    taps1 = [x_ref[pl.ds(k, L1)].reshape(L1 * TB, C) for k in range(5)]
    h1 = conv(taps1, w1_ref, b1_ref).reshape(L1, TB, C)

    # ---- conv2 (stride 2): padded position 2l+k -> even/odd stream slices.
    e1, o1 = stash_and_split(h1, h1p_ref, L1)
    taps2 = [e1[0:L2], o1[0:L2], e1[1:1 + L2], o1[1:1 + L2], e1[2:2 + L2]]
    h2 = conv([t.reshape(L2 * TB, C) for t in taps2],
              w2_ref, b2_ref).reshape(L2, TB, C)

    # ---- conv3 (stride 2)
    e2, o2 = stash_and_split(h2, h2p_ref, L2)
    taps3 = [e2[0:L3], o2[0:L3], e2[1:1 + L3], o2[1:1 + L3], e2[2:2 + L3]]
    h3 = conv([t.reshape(L3 * TB, C) for t in taps3],
              w3_ref, b3_ref).reshape(L3, TB, C)

    # ---- flatten + linear1 + linear2.  The l-major L3 lane slab IS the
    #      flattened input: wl1's columns were permuted once in
    #      prepare_kcrnet_params from PyTorch order (c*L3+l) to (l*C+c).
    h3_slab = lane_slab(h3, L3)                             # (TB, 256)
    lin1 = dense(h3_slab, wl1_ref, bl1_ref, relu=True)      # (TB, 128)
    logits_ref[...] = dense(lin1, wl2_ref, bl2_ref, relu=False)

    if emit_intermediates:
        out1_ref[...] = lane_slab(h1, L1)                   # (TB, 928) lane-dense
        out2_ref[...] = lane_slab(h2, L2)                   # (TB, 480)
        out3_ref[...] = h3_slab                             # (TB, 256)
        lin1_ref[...] = lin1


# ---------------------------------------------------------------------------
# Parameters (PyTorch layout) + one-time kernel re-layout
# ---------------------------------------------------------------------------

def init_kcrnet_params(key, input_classes=21, nums_classes=2):
    ks = jax.random.split(key, 10)
    scale = 0.1

    def w(k, shape):
        return (scale * jax.random.normal(k, shape)).astype(jnp.float32)

    return {
        "conv1_w": w(ks[0], (32, input_classes, 5)),
        "conv1_b": w(ks[1], (32,)),
        "conv2_w": w(ks[2], (32, 32, 5)),
        "conv2_b": w(ks[3], (32,)),
        "conv3_w": w(ks[4], (32, 32, 5)),
        "conv3_b": w(ks[5], (32,)),
        "linear1_w": w(ks[6], (128, 32 * 8)),
        "linear1_b": w(ks[7], (128,)),
        "linear2_w": w(ks[8], (nums_classes, 128)),
        "linear2_b": w(ks[9], (nums_classes,)),
    }


def prepare_kcrnet_params(params, *, use_bf16=False):
    """One-time re-layout of PyTorch-style parameters into kernel layout."""
    mm_dtype = jnp.bfloat16 if use_bf16 else jnp.float32

    def conv_w(w, cin_pad):
        cout, cin, k = w.shape
        t = jnp.transpose(w, (2, 1, 0))                     # (K, Cin, Cout)
        t = jnp.pad(t, ((0, 0), (0, cin_pad - cin), (0, 0)))
        return t.astype(mm_dtype)                           # per-tap slices w[k]

    d1, f = params["linear1_w"].shape                       # (128, 32*L3)
    c3 = params["conv3_w"].shape[0]                         # 32
    l3 = f // c3
    # Re-order linear1 columns from PyTorch flatten order (c*L3 + l) to the
    # kernel slab order (l*C3 + c).
    wl1 = (params["linear1_w"].T.reshape(c3, l3, d1)
           .transpose(1, 0, 2).reshape(f, d1).astype(mm_dtype))

    nc = params["linear2_w"].shape[0]
    ncp = _round_up(max(nc, 128), 128)                      # lane-dense logits
    wl2 = jnp.pad(params["linear2_w"].T.astype(jnp.float32),
                  ((0, 0), (0, ncp - nc))).astype(mm_dtype)
    bl2 = jnp.pad(params["linear2_b"].astype(jnp.float32), (0, ncp - nc))

    return {
        "w1": conv_w(params["conv1_w"], 32),
        "b1": params["conv1_b"].reshape(1, -1).astype(jnp.float32),
        "w2": conv_w(params["conv2_w"], 32),
        "b2": params["conv2_b"].reshape(1, -1).astype(jnp.float32),
        "w3": conv_w(params["conv3_w"], 32),
        "b3": params["conv3_b"].reshape(1, -1).astype(jnp.float32),
        "wl1": wl1,
        "bl1": params["linear1_b"].reshape(1, -1).astype(jnp.float32),
        "wl2": wl2,
        "bl2": bl2.reshape(1, -1),
    }


# ---------------------------------------------------------------------------
# Forward pass
# ---------------------------------------------------------------------------

@functools.partial(jax.jit, static_argnames=("num_classes", "return_intermediates"))
def kcrnet_forward(prep, x, *, num_classes=2, return_intermediates=True):
    """x: (B, L, 21) float32 (L=29).

    return_intermediates=True  -> ((inputs, First, Second, Third, Linear_output),
                                   logits), matching the PyTorch module (First/
                                   Second/Third in NCL layout (B, 32, L_i)).
    return_intermediates=False -> logits only (conv/lin1 HBM stores skipped).
    """
    B, L, cin = x.shape
    C = prep["w1"].shape[1]                  # padded channel width (32)
    cout = prep["w1"].shape[2]               # 32
    L1 = L
    L2 = (L1 - 1) // 2 + 1
    L3 = (L2 - 1) // 2 + 1
    d1 = prep["wl1"].shape[1]                # 128
    ncp = prep["wl2"].shape[1]               # padded logits width (128)
    assert C == cout and cin <= C
    assert L3 * cout == prep["wl1"].shape[0], (
        f"sequence length {L} is incompatible with linear1 in_features")

    # Batch tile: rows land on the sublane dim -> multiple of 8.  Cap at 256
    # so the tiling also fits v7x's 64 MiB VMEM, and keep >=2 grid steps
    # whenever B > 8 so both v7x TensorCores get work.
    TB = max(8, min(256, _round_up(pl.cdiv(B, 2), 8)))
    B_pad = _round_up(B, TB)
    grid = (B_pad // TB,)

    # Host-side layout glue (tiny, fused by XLA): L-major channels-last,
    # spatial halo (+2/+2), channel pad cin->32, batch pad to the tile size.
    xt = jnp.transpose(x.astype(jnp.float32), (1, 0, 2))            # (L, B, cin)
    xt = jnp.pad(xt, ((2, 2), (0, B_pad - B), (0, C - cin)))        # (L+4, B_pad, 32)

    HP1 = _round_up(L1 + 4, 2)               # halo-padded h1 scratch length (34)
    HP2 = _round_up(L2 + 4, 2)               # halo-padded h2 scratch length (20)

    weight_args = (prep["w1"], prep["b1"], prep["w2"], prep["b2"],
                   prep["w3"], prep["b3"], prep["wl1"], prep["bl1"],
                   prep["wl2"], prep["bl2"])

    def const_spec(a):
        # Whole (small) array VMEM-resident with a constant block index, so it
        # is DMA'd once and never re-fetched across grid steps.
        if a.ndim == 2:
            return pl.BlockSpec(a.shape, lambda i: (0, 0))
        return pl.BlockSpec(a.shape, lambda i: (0, 0, 0))

    in_specs = ([pl.BlockSpec((L1 + 4, TB, C), lambda i: (0, i, 0))]
                + [const_spec(a) for a in weight_args])

    if return_intermediates:
        out_specs = (
            pl.BlockSpec((TB, L1 * cout), lambda i: (i, 0)),
            pl.BlockSpec((TB, L2 * cout), lambda i: (i, 0)),
            pl.BlockSpec((TB, L3 * cout), lambda i: (i, 0)),
            pl.BlockSpec((TB, d1), lambda i: (i, 0)),
            pl.BlockSpec((TB, ncp), lambda i: (i, 0)),
        )
        out_shape = (
            jax.ShapeDtypeStruct((B_pad, L1 * cout), jnp.float32),
            jax.ShapeDtypeStruct((B_pad, L2 * cout), jnp.float32),
            jax.ShapeDtypeStruct((B_pad, L3 * cout), jnp.float32),
            jax.ShapeDtypeStruct((B_pad, d1), jnp.float32),
            jax.ShapeDtypeStruct((B_pad, ncp), jnp.float32),
        )
    else:
        out_specs = (pl.BlockSpec((TB, ncp), lambda i: (i, 0)),)
        out_shape = (jax.ShapeDtypeStruct((B_pad, ncp), jnp.float32),)

    outs = pl.pallas_call(
        functools.partial(_kcrnet_kernel, return_intermediates),
        grid=grid,
        in_specs=in_specs,
        out_specs=out_specs,
        out_shape=out_shape,
        scratch_shapes=[pltpu.VMEM((HP1, TB, C), jnp.float32),
                        pltpu.VMEM((HP2, TB, C), jnp.float32)],
        compiler_params=pltpu.CompilerParams(
            dimension_semantics=("parallel",),
            vmem_limit_bytes=48 * 1024 * 1024,   # fits v7x's 64 MiB VMEM
        ),
    )(xt, *weight_args)

    if not return_intermediates:
        return outs[0][:B, :num_classes]

    out1, out2, out3, lin1, logits_pad = outs

    def to_ncl(slab, l_out):
        # (B, L*C) l-major slab -> PyTorch NCL (B, C, L); tiny unpadded tensor.
        return slab[:B].reshape(B, l_out, cout).transpose(0, 2, 1)

    first = to_ncl(out1, L1)
    second = to_ncl(out2, L2)
    third = to_ncl(out3, L3)
    return (x, first, second, third, lin1[:B]), logits_pad[:B, :num_classes]


# ---------------------------------------------------------------------------
# Pure-JAX reference (for numerical validation)
# ---------------------------------------------------------------------------

def kcrnet_reference(params, x):
    hi = jax.lax.Precision.HIGHEST
    xt = jnp.transpose(x, (0, 2, 1))                 # (B, C, L)

    def conv_relu(h, w, b, stride):
        y = jax.lax.conv_general_dilated(
            h, w, window_strides=(stride,), padding=[(2, 2)],
            dimension_numbers=("NCH", "OIH", "NCH"), precision=hi)
        return jnp.maximum(y + b[None, :, None], 0.0)

    h1 = conv_relu(xt, params["conv1_w"], params["conv1_b"], 1)
    h2 = conv_relu(h1, params["conv2_w"], params["conv2_b"], 2)
    h3 = conv_relu(h2, params["conv3_w"], params["conv3_b"], 2)
    flat = h3.reshape(h3.shape[0], -1)
    lin1 = jnp.maximum(
        jnp.dot(flat, params["linear1_w"].T, precision=hi) + params["linear1_b"], 0.0)
    logits = jnp.dot(lin1, params["linear2_w"].T, precision=hi) + params["linear2_b"]
    return (x, h1, h2, h3, lin1), logits


# ---------------------------------------------------------------------------
# Main
# ---------------------------------------------------------------------------

if __name__ == "__main__":
    key = jax.random.PRNGKey(0)
    pkey, xkey = jax.random.split(key)

    params = init_kcrnet_params(pkey, input_classes=21, nums_classes=2)
    # use_bf16=True is recommended on v6e/v7x (halves matmul-operand VMEM/DMA);
    # keep exact f32 here so the numerical check below stays tight.
    prep = prepare_kcrnet_params(params, use_bf16=False)

    # L=29 -> conv lengths 29 -> 15 -> 8, matching Linear(32*8, 128).
    # B=12 exercises a 2-step grid (megacore split) and padded batch rows.
    B, L, Cin = 12, 29, 21
    x = jax.random.normal(xkey, (B, L, Cin), dtype=jnp.float32)

    (ins, first, second, third, lin1), logits = kcrnet_forward(prep, x, num_classes=2)
    jax.block_until_ready(logits)

    assert ins.shape == (B, L, Cin)
    assert first.shape == (B, 32, 29)
    assert second.shape == (B, 32, 15)
    assert third.shape == (B, 32, 8)
    assert lin1.shape == (B, 128)
    assert logits.shape == (B, 2)

    # Logits-only fast path (skips the intermediate HBM stores entirely).
    logits_only = kcrnet_forward(prep, x, num_classes=2, return_intermediates=False)
    jax.block_until_ready(logits_only)
    assert logits_only.shape == (B, 2)

    # Numerical check against a pure-JAX (XLA) reference of the PyTorch module.
    (_, rf, rs, rt, rl), rlogits = kcrnet_reference(params, x)
    tol = 2e-3
    for name, got, ref in (("first", first, rf), ("second", second, rs),
                           ("third", third, rt), ("lin1", lin1, rl),
                           ("logits", logits, rlogits),
                           ("logits_only", logits_only, rlogits)):
        err = float(jnp.max(jnp.abs(got - ref)))
        assert err < tol, f"{name}: max abs err {err} vs reference"

    print("KERNEL_OK")
</pallas_src>

<mosaic_0001>
module attributes {stable_mosaic.version = 11 : i64} {
  func.func @_kcrnet_kernel(%arg0: i32, %arg1: memref<33x8x32xf32, #tpu.memory_space<vmem>>, %arg2: memref<5x32x32xf32, #tpu.memory_space<vmem>>, %arg3: memref<1x32xf32, #tpu.memory_space<vmem>>, %arg4: memref<5x32x32xf32, #tpu.memory_space<vmem>>, %arg5: memref<1x32xf32, #tpu.memory_space<vmem>>, %arg6: memref<5x32x32xf32, #tpu.memory_space<vmem>>, %arg7: memref<1x32xf32, #tpu.memory_space<vmem>>, %arg8: memref<256x128xf32, #tpu.memory_space<vmem>>, %arg9: memref<1x128xf32, #tpu.memory_space<vmem>>, %arg10: memref<128x128xf32, #tpu.memory_space<vmem>>, %arg11: memref<1x128xf32, #tpu.memory_space<vmem>>, %arg12: memref<8x928xf32, #tpu.memory_space<vmem>>, %arg13: memref<8x480xf32, #tpu.memory_space<vmem>>, %arg14: memref<8x256xf32, #tpu.memory_space<vmem>>, %arg15: memref<8x128xf32, #tpu.memory_space<vmem>>, %arg16: memref<8x128xf32, #tpu.memory_space<vmem>>, %arg17: memref<34x8x32xf32, #tpu.memory_space<vmem>>, %arg18: memref<20x8x32xf32, #tpu.memory_space<vmem>>) attributes {dimension_semantics = [#tpu.dimension_semantics<parallel>], iteration_bounds = array<i64: 2>, scalar_prefetch = 0 : i64, scratch_operands = 2 : i64, tpu.core_type = #tpu.core_type<tc>, window_params = [{transform_indices = @transform_0, window_bounds = array<i64: 33, 8, 32>}, {pipeline_mode = #tpu.pipeline_mode<synchronous>, transform_indices = @transform_1, window_bounds = array<i64: 5, 32, 32>}, {pipeline_mode = #tpu.pipeline_mode<synchronous>, transform_indices = @transform_2, window_bounds = array<i64: 1, 32>}, {pipeline_mode = #tpu.pipeline_mode<synchronous>, transform_indices = @transform_3, window_bounds = array<i64: 5, 32, 32>}, {pipeline_mode = #tpu.pipeline_mode<synchronous>, transform_indices = @transform_4, window_bounds = array<i64: 1, 32>}, {pipeline_mode = #tpu.pipeline_mode<synchronous>, transform_indices = @transform_5, window_bounds = array<i64: 5, 32, 32>}, {pipeline_mode = #tpu.pipeline_mode<synchronous>, transform_indices = @transform_6, window_bounds = array<i64: 1, 32>}, {pipeline_mode = #tpu.pipeline_mode<synchronous>, transform_indices = @transform_7, window_bounds = array<i64: 256, 128>}, {pipeline_mode = #tpu.pipeline_mode<synchronous>, transform_indices = @transform_8, window_bounds = array<i64: 1, 128>}, {pipeline_mode = #tpu.pipeline_mode<synchronous>, transform_indices = @transform_9, window_bounds = array<i64: 128, 128>}, {pipeline_mode = #tpu.pipeline_mode<synchronous>, transform_indices = @transform_10, window_bounds = array<i64: 1, 128>}, {transform_indices = @transform_11, window_bounds = array<i64: 8, 928>}, {transform_indices = @transform_12, window_bounds = array<i64: 8, 480>}, {transform_indices = @transform_13, window_bounds = array<i64: 8, 256>}, {transform_indices = @transform_14, window_bounds = array<i64: 8, 128>}, {transform_indices = @transform_15, window_bounds = array<i64: 8, 128>}]} {
    %c0 = arith.constant 0 : index
    %c0_0 = arith.constant 0 : index
    %c0_1 = arith.constant 0 : index
    %0 = vector.load %arg1[%c0, %c0_0, %c0_1] : memref<33x8x32xf32, #tpu.memory_space<vmem>>, vector<29x8x32xf32>
    %1 = vector.shape_cast %0 : vector<29x8x32xf32> to vector<232x32xf32>
    %c1 = arith.constant 1 : index
    %c0_2 = arith.constant 0 : index
    %c0_3 = arith.constant 0 : index
    %2 = vector.load %arg1[%c1, %c0_2, %c0_3] : memref<33x8x32xf32, #tpu.memory_space<vmem>>, vector<29x8x32xf32>
    %3 = vector.shape_cast %2 : vector<29x8x32xf32> to vector<232x32xf32>
    %c2 = arith.constant 2 : index
    %c0_4 = arith.constant 0 : index
    %c0_5 = arith.constant 0 : index
    %4 = vector.load %arg1[%c2, %c0_4, %c0_5] : memref<33x8x32xf32, #tpu.memory_space<vmem>>, vector<29x8x32xf32>
    %5 = vector.shape_cast %4 : vector<29x8x32xf32> to vector<232x32xf32>
    %c3 = arith.constant 3 : index
    %c0_6 = arith.constant 0 : index
    %c0_7 = arith.constant 0 : index
    %6 = vector.load %arg1[%c3, %c0_6, %c0_7] : memref<33x8x32xf32, #tpu.memory_space<vmem>>, vector<29x8x32xf32>
    %7 = vector.shape_cast %6 : vector<29x8x32xf32> to vector<232x32xf32>
    %c4 = arith.constant 4 : index
    %c0_8 = arith.constant 0 : index
    %c0_9 = arith.constant 0 : index
    %8 = vector.load %arg1[%c4, %c0_8, %c0_9] : memref<33x8x32xf32, #tpu.memory_space<vmem>>, vector<29x8x32xf32>
    %9 = vector.shape_cast %8 : vector<29x8x32xf32> to vector<232x32xf32>
    %c0_10 = arith.constant 0 : index
    %c0_11 = arith.constant 0 : index
    %c0_12 = arith.constant 0 : index
    %10 = vector.load %arg2[%c0_10, %c0_11, %c0_12] : memref<5x32x32xf32, #tpu.memory_space<vmem>>, vector<1x32x32xf32>
    %11 = vector.shape_cast %10 : vector<1x32x32xf32> to vector<32x32xf32>
    %cst = arith.constant dense<0.000000e+00> : vector<232x32xf32>
    %12 = tpu.matmul %1, %11, %cst {dimension_numbers = #tpu.dot_dimension_numbers<[1], [0], [0], [1], [0, 0, 1, 1], [], []>} : vector<232x32xf32>, vector<32x32xf32>, vector<232x32xf32> -> vector<232x32xf32>
    %c1_13 = arith.constant 1 : index
    %c0_14 = arith.constant 0 : index
    %c0_15 = arith.constant 0 : index
    %13 = vector.load %arg2[%c1_13, %c0_14, %c0_15] : memref<5x32x32xf32, #tpu.memory_space<vmem>>, vector<1x32x32xf32>
    %14 = vector.shape_cast %13 : vector<1x32x32xf32> to vector<32x32xf32>
    %cst_16 = arith.constant dense<0.000000e+00> : vector<232x32xf32>
    %15 = tpu.matmul %3, %14, %cst_16 {dimension_numbers = #tpu.dot_dimension_numbers<[1], [0], [0], [1], [0, 0, 1, 1], [], []>} : vector<232x32xf32>, vector<32x32xf32>, vector<232x32xf32> -> vector<232x32xf32>
    %16 = arith.addf %12, %15 : vector<232x32xf32>
    %c2_17 = arith.constant 2 : index
    %c0_18 = arith.constant 0 : index
    %c0_19 = arith.constant 0 : index
    %17 = vector.load %arg2[%c2_17, %c0_18, %c0_19] : memref<5x32x32xf32, #tpu.memory_space<vmem>>, vector<1x32x32xf32>
    %18 = vector.shape_cast %17 : vector<1x32x32xf32> to vector<32x32xf32>
    %cst_20 = arith.constant dense<0.000000e+00> : vector<232x32xf32>
    %19 = tpu.matmul %5, %18, %cst_20 {dimension_numbers = #tpu.dot_dimension_numbers<[1], [0], [0], [1], [0, 0, 1, 1], [], []>} : vector<232x32xf32>, vector<32x32xf32>, vector<232x32xf32> -> vector<232x32xf32>
    %20 = arith.addf %16, %19 : vector<232x32xf32>
    %c3_21 = arith.constant 3 : index
    %c0_22 = arith.constant 0 : index
    %c0_23 = arith.constant 0 : index
    %21 = vector.load %arg2[%c3_21, %c0_22, %c0_23] : memref<5x32x32xf32, #tpu.memory_space<vmem>>, vector<1x32x32xf32>
    %22 = vector.shape_cast %21 : vector<1x32x32xf32> to vector<32x32xf32>
    %cst_24 = arith.constant dense<0.000000e+00> : vector<232x32xf32>
    %23 = tpu.matmul %7, %22, %cst_24 {dimension_numbers = #tpu.dot_dimension_numbers<[1], [0], [0], [1], [0, 0, 1, 1], [], []>} : vector<232x32xf32>, vector<32x32xf32>, vector<232x32xf32> -> vector<232x32xf32>
    %24 = arith.addf %20, %23 : vector<232x32xf32>
    %c4_25 = arith.constant 4 : index
    %c0_26 = arith.constant 0 : index
    %c0_27 = arith.constant 0 : index
    %25 = vector.load %arg2[%c4_25, %c0_26, %c0_27] : memref<5x32x32xf32, #tpu.memory_space<vmem>>, vector<1x32x32xf32>
    %26 = vector.shape_cast %25 : vector<1x32x32xf32> to vector<32x32xf32>
    %cst_28 = arith.constant dense<0.000000e+00> : vector<232x32xf32>
    %27 = tpu.matmul %9, %26, %cst_28 {dimension_numbers = #tpu.dot_dimension_numbers<[1], [0], [0], [1], [0, 0, 1, 1], [], []>} : vector<232x32xf32>, vector<32x32xf32>, vector<232x32xf32> -> vector<232x32xf32>
    %28 = arith.addf %24, %27 : vector<232x32xf32>
    %c0_29 = arith.constant 0 : index
    %c0_30 = arith.constant 0 : index
    %29 = vector.load %arg3[%c0_29, %c0_30] : memref<1x32xf32, #tpu.memory_space<vmem>>, vector<1x32xf32>
    %30 = vector.broadcast %29 : vector<1x32xf32> to vector<232x32xf32>
    %31 = arith.addf %28, %30 : vector<232x32xf32>
    %cst_31 = arith.constant 0.000000e+00 : f32
    %32 = vector.broadcast %cst_31 : f32 to vector<232x32xf32>
    %33 = arith.maximumf %31, %32 : vector<232x32xf32>
    %34 = vector.shape_cast %33 : vector<232x32xf32> to vector<29x8x32xf32>
    %cst_32 = arith.constant 0.000000e+00 : f32
    %35 = vector.broadcast %cst_32 : f32 to vector<2x8x32xf32>
    %c0_33 = arith.constant 0 : index
    %c0_34 = arith.constant 0 : index
    %c0_35 = arith.constant 0 : index
    %36 = vector.load %arg17[%c0_33, %c0_34, %c0_35] : memref<34x8x32xf32, #tpu.memory_space<vmem>>, vector<2x8x32xf32>
    tpu.vector_store %arg17[%c0_33, %c0_34, %c0_35], %35 {strides = array<i32>} : memref<34x8x32xf32, #tpu.memory_space<vmem>>, vector<2x8x32xf32>,
    %c2_36 = arith.constant 2 : index
    %c0_37 = arith.constant 0 : index
    %c0_38 = arith.constant 0 : index
    %37 = vector.load %arg17[%c2_36, %c0_37, %c0_38] : memref<34x8x32xf32, #tpu.memory_space<vmem>>, vector<29x8x32xf32>
    tpu.vector_store %arg17[%c2_36, %c0_37, %c0_38], %34 {strides = array<i32>} : memref<34x8x32xf32, #tpu.memory_space<vmem>>, vector<29x8x32xf32>,
    %cst_39 = arith.constant 0.000000e+00 : f32
    %38 = vector.broadcast %cst_39 : f32 to vector<3x8x32xf32>
    %c31 = arith.constant 31 : index
    %c0_40 = arith.constant 0 : index
    %c0_41 = arith.constant 0 : index
    %39 = vector.load %arg17[%c31, %c0_40, %c0_41] : memref<34x8x32xf32, #tpu.memory_space<vmem>>, vector<3x8x32xf32>
    tpu.vector_store %arg17[%c31, %c0_40, %c0_41], %38 {strides = array<i32>} : memref<34x8x32xf32, #tpu.memory_space<vmem>>, vector<3x8x32xf32>,
    %c0_42 = arith.constant 0 : index
    %c0_43 = arith.constant 0 : index
    %c0_44 = arith.constant 0 : index
    %40 = vector.load %arg17[%c0_42, %c0_43, %c0_44] : memref<34x8x32xf32, #tpu.memory_space<vmem>>, vector<34x8x32xf32>
    %41 = vector.shape_cast %40 : vector<34x8x32xf32> to vector<17x2x8x32xf32>
    %42 = vector.extract_strided_slice %41 {offsets = [0, 0, 0, 0], sizes = [17, 1, 8, 32], strides = [1, 1, 1, 1]} : vector<17x2x8x32xf32> to vector<17x1x8x32xf32>
    %43 = vector.shape_cast %42 : vector<17x1x8x32xf32> to vector<17x8x32xf32>
    %44 = vector.extract_strided_slice %41 {offsets = [0, 1, 0, 0], sizes = [17, 1, 8, 32], strides = [1, 1, 1, 1]} : vector<17x2x8x32xf32> to vector<17x1x8x32xf32>
    %45 = vector.shape_cast %44 : vector<17x1x8x32xf32> to vector<17x8x32xf32>
    %46 = vector.extract_strided_slice %43 {offsets = [0, 0, 0], sizes = [15, 8, 32], strides = [1, 1, 1]} : vector<17x8x32xf32> to vector<15x8x32xf32>
    %47 = vector.extract_strided_slice %45 {offsets = [0, 0, 0], sizes = [15, 8, 32], strides = [1, 1, 1]} : vector<17x8x32xf32> to vector<15x8x32xf32>
    %48 = vector.extract_strided_slice %43 {offsets = [1, 0, 0], sizes = [15, 8, 32], strides = [1, 1, 1]} : vector<17x8x32xf32> to vector<15x8x32xf32>
    %49 = vector.extract_strided_slice %45 {offsets = [1, 0, 0], sizes = [15, 8, 32], strides = [1, 1, 1]} : vector<17x8x32xf32> to vector<15x8x32xf32>
    %50 = vector.extract_strided_slice %43 {offsets = [2, 0, 0], sizes = [15, 8, 32], strides = [1, 1, 1]} : vector<17x8x32xf32> to vector<15x8x32xf32>
    %51 = vector.shape_cast %46 : vector<15x8x32xf32> to vector<120x32xf32>
    %52 = vector.shape_cast %47 : vector<15x8x32xf32> to vector<120x32xf32>
    %53 = vector.shape_cast %48 : vector<15x8x32xf32> to vector<120x32xf32>
    %54 = vector.shape_cast %49 : vector<15x8x32xf32> to vector<120x32xf32>
    %55 = vector.shape_cast %50 : vector<15x8x32xf32> to vector<120x32xf32>
    %c0_45 = arith.constant 0 : index
    %c0_46 = arith.constant 0 : index
    %c0_47 = arith.constant 0 : index
    %56 = vector.load %arg4[%c0_45, %c0_46, %c0_47] : memref<5x32x32xf32, #tpu.memory_space<vmem>>, vector<1x32x32xf32>
    %57 = vector.shape_cast %56 : vector<1x32x32xf32> to vector<32x32xf32>
    %cst_48 = arith.constant dense<0.000000e+00> : vector<120x32xf32>
    %58 = tpu.matmul %51, %57, %cst_48 {dimension_numbers = #tpu.dot_dimension_numbers<[1], [0], [0], [1], [0, 0, 1, 1], [], []>} : vector<120x32xf32>, vector<32x32xf32>, vector<120x32xf32> -> vector<120x32xf32>
    %c1_49 = arith.constant 1 : index
    %c0_50 = arith.constant 0 : index
    %c0_51 = arith.constant 0 : index
    %59 = vector.load %arg4[%c1_49, %c0_50, %c0_51] : memref<5x32x32xf32, #tpu.memory_space<vmem>>, vector<1x32x32xf32>
    %60 = vector.shape_cast %59 : vector<1x32x32xf32> to vector<32x32xf32>
    %cst_52 = arith.constant dense<0.000000e+00> : vector<120x32xf32>
    %61 = tpu.matmul %52, %60, %cst_52 {dimension_numbers = #tpu.dot_dimension_numbers<[1], [0], [0], [1], [0, 0, 1, 1], [], []>} : vector<120x32xf32>, vector<32x32xf32>, vector<120x32xf32> -> vector<120x32xf32>
    %62 = arith.addf %58, %61 : vector<120x32xf32>
    %c2_53 = arith.constant 2 : index
    %c0_54 = arith.constant 0 : index
    %c0_55 = arith.constant 0 : index
    %63 = vector.load %arg4[%c2_53, %c0_54, %c0_55] : memref<5x32x32xf32, #tpu.memory_space<vmem>>, vector<1x32x32xf32>
    %64 = vector.shape_cast %63 : vector<1x32x32xf32> to vector<32x32xf32>
    %cst_56 = arith.constant dense<0.000000e+00> : vector<120x32xf32>
    %65 = tpu.matmul %53, %64, %cst_56 {dimension_numbers = #tpu.dot_dimension_numbers<[1], [0], [0], [1], [0, 0, 1, 1], [], []>} : vector<120x32xf32>, vector<32x32xf32>, vector<120x32xf32> -> vector<120x32xf32>
    %66 = arith.addf %62, %65 : vector<120x32xf32>
    %c3_57 = arith.constant 3 : index
    %c0_58 = arith.constant 0 : index
    %c0_59 = arith.constant 0 : index
    %67 = vector.load %arg4[%c3_57, %c0_58, %c0_59] : memref<5x32x32xf32, #tpu.memory_space<vmem>>, vector<1x32x32xf32>
    %68 = vector.shape_cast %67 : vector<1x32x32xf32> to vector<32x32xf32>
    %cst_60 = arith.constant dense<0.000000e+00> : vector<120x32xf32>
    %69 = tpu.matmul %54, %68, %cst_60 {dimension_numbers = #tpu.dot_dimension_numbers<[1], [0], [0], [1], [0, 0, 1, 1], [], []>} : vector<120x32xf32>, vector<32x32xf32>, vector<120x32xf32> -> vector<120x32xf32>
    %70 = arith.addf %66, %69 : vector<120x32xf32>
    %c4_61 = arith.constant 4 : index
    %c0_62 = arith.constant 0 : index
    %c0_63 = arith.constant 0 : index
    %71 = vector.load %arg4[%c4_61, %c0_62, %c0_63] : memref<5x32x32xf32, #tpu.memory_space<vmem>>, vector<1x32x32xf32>
    %72 = vector.shape_cast %71 : vector<1x32x32xf32> to vector<32x32xf32>
    %cst_64 = arith.constant dense<0.000000e+00> : vector<120x32xf32>
    %73 = tpu.matmul %55, %72, %cst_64 {dimension_numbers = #tpu.dot_dimension_numbers<[1], [0], [0], [1], [0, 0, 1, 1], [], []>} : vector<120x32xf32>, vector<32x32xf32>, vector<120x32xf32> -> vector<120x32xf32>
    %74 = arith.addf %70, %73 : vector<120x32xf32>
    %c0_65 = arith.constant 0 : index
    %c0_66 = arith.constant 0 : index
    %75 = vector.load %arg5[%c0_65, %c0_66] : memref<1x32xf32, #tpu.memory_space<vmem>>, vector<1x32xf32>
    %76 = vector.broadcast %75 : vector<1x32xf32> to vector<120x32xf32>
    %77 = arith.addf %74, %76 : vector<120x32xf32>
    %cst_67 = arith.constant 0.000000e+00 : f32
    %78 = vector.broadcast %cst_67 : f32 to vector<120x32xf32>
    %79 = arith.maximumf %77, %78 : vector<120x32xf32>
    %80 = vector.shape_cast %79 : vector<120x32xf32> to vector<15x8x32xf32>
    %cst_68 = arith.constant 0.000000e+00 : f32
    %81 = vector.broadcast %cst_68 : f32 to vector<2x8x32xf32>
    %c0_69 = arith.constant 0 : index
    %c0_70 = arith.constant 0 : index
    %c0_71 = arith.constant 0 : index
    %82 = vector.load %arg18[%c0_69, %c0_70, %c0_71] : memref<20x8x32xf32, #tpu.memory_space<vmem>>, vector<2x8x32xf32>
    tpu.vector_store %arg18[%c0_69, %c0_70, %c0_71], %81 {strides = array<i32>} : memref<20x8x32xf32, #tpu.memory_space<vmem>>, vector<2x8x32xf32>,
    %c2_72 = arith.constant 2 : index
    %c0_73 = arith.constant 0 : index
    %c0_74 = arith.constant 0 : index
    %83 = vector.load %arg18[%c2_72, %c0_73, %c0_74] : memref<20x8x32xf32, #tpu.memory_space<vmem>>, vector<15x8x32xf32>
    tpu.vector_store %arg18[%c2_72, %c0_73, %c0_74], %80 {strides = array<i32>} : memref<20x8x32xf32, #tpu.memory_space<vmem>>, vector<15x8x32xf32>,
    %cst_75 = arith.constant 0.000000e+00 : f32
    %84 = vector.broadcast %cst_75 : f32 to vector<3x8x32xf32>
    %c17 = arith.constant 17 : index
    %c0_76 = arith.constant 0 : index
    %c0_77 = arith.constant 0 : index
    %85 = vector.load %arg18[%c17, %c0_76, %c0_77] : memref<20x8x32xf32, #tpu.memory_space<vmem>>, vector<3x8x32xf32>
    tpu.vector_store %arg18[%c17, %c0_76, %c0_77], %84 {strides = array<i32>} : memref<20x8x32xf32, #tpu.memory_space<vmem>>, vector<3x8x32xf32>,
    %c0_78 = arith.constant 0 : index
    %c0_79 = arith.constant 0 : index
    %c0_80 = arith.constant 0 : index
    %86 = vector.load %arg18[%c0_78, %c0_79, %c0_80] : memref<20x8x32xf32, #tpu.memory_space<vmem>>, vector<20x8x32xf32>
    %87 = vector.shape_cast %86 : vector<20x8x32xf32> to vector<10x2x8x32xf32>
    %88 = vector.extract_strided_slice %87 {offsets = [0, 0, 0, 0], sizes = [10, 1, 8, 32], strides = [1, 1, 1, 1]} : vector<10x2x8x32xf32> to vector<10x1x8x32xf32>
    %89 = vector.shape_cast %88 : vector<10x1x8x32xf32> to vector<10x8x32xf32>
    %90 = vector.extract_strided_slice %87 {offsets = [0, 1, 0, 0], sizes = [10, 1, 8, 32], strides = [1, 1, 1, 1]} : vector<10x2x8x32xf32> to vector<10x1x8x32xf32>
    %91 = vector.shape_cast %90 : vector<10x1x8x32xf32> to vector<10x8x32xf32>
    %92 = vector.extract_strided_slice %89 {offsets = [0, 0, 0], sizes = [8, 8, 32], strides = [1, 1, 1]} : vector<10x8x32xf32> to vector<8x8x32xf32>
    %93 = vector.extract_strided_slice %91 {offsets = [0, 0, 0], sizes = [8, 8, 32], strides = [1, 1, 1]} : vector<10x8x32xf32> to vector<8x8x32xf32>
    %94 = vector.extract_strided_slice %89 {offsets = [1, 0, 0], sizes = [8, 8, 32], strides = [1, 1, 1]} : vector<10x8x32xf32> to vector<8x8x32xf32>
    %95 = vector.extract_strided_slice %91 {offsets = [1, 0, 0], sizes = [8, 8, 32], strides = [1, 1, 1]} : vector<10x8x32xf32> to vector<8x8x32xf32>
    %96 = vector.extract_strided_slice %89 {offsets = [2, 0, 0], sizes = [8, 8, 32], strides = [1, 1, 1]} : vector<10x8x32xf32> to vector<8x8x32xf32>
    %97 = vector.shape_cast %92 : vector<8x8x32xf32> to vector<64x32xf32>
    %98 = vector.shape_cast %93 : vector<8x8x32xf32> to vector<64x32xf32>
    %99 = vector.shape_cast %94 : vector<8x8x32xf32> to vector<64x32xf32>
    %100 = vector.shape_cast %95 : vector<8x8x32xf32> to vector<64x32xf32>
    %101 = vector.shape_cast %96 : vector<8x8x32xf32> to vector<64x32xf32>
    %c0_81 = arith.constant 0 : index
    %c0_82 = arith.constant 0 : index
    %c0_83 = arith.constant 0 : index
    %102 = vector.load %arg6[%c0_81, %c0_82, %c0_83] : memref<5x32x32xf32, #tpu.memory_space<vmem>>, vector<1x32x32xf32>
    %103 = vector.shape_cast %102 : vector<1x32x32xf32> to vector<32x32xf32>
    %cst_84 = arith.constant dense<0.000000e+00> : vector<64x32xf32>
    %104 = tpu.matmul %97, %103, %cst_84 {dimension_numbers = #tpu.dot_dimension_numbers<[1], [0], [0], [1], [0, 0, 1, 1], [], []>} : vector<64x32xf32>, vector<32x32xf32>, vector<64x32xf32> -> vector<64x32xf32>
    %c1_85 = arith.constant 1 : index
    %c0_86 = arith.constant 0 : index
    %c0_87 = arith.constant 0 : index
    %105 = vector.load %arg6[%c1_85, %c0_86, %c0_87] : memref<5x32x32xf32, #tpu.memory_space<vmem>>, vector<1x32x32xf32>
    %106 = vector.shape_cast %105 : vector<1x32x32xf32> to vector<32x32xf32>
    %cst_88 = arith.constant dense<0.000000e+00> : vector<64x32xf32>
    %107 = tpu.matmul %98, %106, %cst_88 {dimension_numbers = #tpu.dot_dimension_numbers<[1], [0], [0], [1], [0, 0, 1, 1], [], []>} : vector<64x32xf32>, vector<32x32xf32>, vector<64x32xf32> -> vector<64x32xf32>
    %108 = arith.addf %104, %107 : vector<64x32xf32>
    %c2_89 = arith.constant 2 : index
    %c0_90 = arith.constant 0 : index
    %c0_91 = arith.constant 0 : index
    %109 = vector.load %arg6[%c2_89, %c0_90, %c0_91] : memref<5x32x32xf32, #tpu.memory_space<vmem>>, vector<1x32x32xf32>
    %110 = vector.shape_cast %109 : vector<1x32x32xf32> to vector<32x32xf32>
    %cst_92 = arith.constant dense<0.000000e+00> : vector<64x32xf32>
    %111 = tpu.matmul %99, %110, %cst_92 {dimension_numbers = #tpu.dot_dimension_numbers<[1], [0], [0], [1], [0, 0, 1, 1], [], []>} : vector<64x32xf32>, vector<32x32xf32>, vector<64x32xf32> -> vector<64x32xf32>
    %112 = arith.addf %108, %111 : vector<64x32xf32>
    %c3_93 = arith.constant 3 : index
    %c0_94 = arith.constant 0 : index
    %c0_95 = arith.constant 0 : index
    %113 = vector.load %arg6[%c3_93, %c0_94, %c0_95] : memref<5x32x32xf32, #tpu.memory_space<vmem>>, vector<1x32x32xf32>
    %114 = vector.shape_cast %113 : vector<1x32x32xf32> to vector<32x32xf32>
    %cst_96 = arith.constant dense<0.000000e+00> : vector<64x32xf32>
    %115 = tpu.matmul %100, %114, %cst_96 {dimension_numbers = #tpu.dot_dimension_numbers<[1], [0], [0], [1], [0, 0, 1, 1], [], []>} : vector<64x32xf32>, vector<32x32xf32>, vector<64x32xf32> -> vector<64x32xf32>
    %116 = arith.addf %112, %115 : vector<64x32xf32>
    %c4_97 = arith.constant 4 : index
    %c0_98 = arith.constant 0 : index
    %c0_99 = arith.constant 0 : index
    %117 = vector.load %arg6[%c4_97, %c0_98, %c0_99] : memref<5x32x32xf32, #tpu.memory_space<vmem>>, vector<1x32x32xf32>
    %118 = vector.shape_cast %117 : vector<1x32x32xf32> to vector<32x32xf32>
    %cst_100 = arith.constant dense<0.000000e+00> : vector<64x32xf32>
    %119 = tpu.matmul %101, %118, %cst_100 {dimension_numbers = #tpu.dot_dimension_numbers<[1], [0], [0], [1], [0, 0, 1, 1], [], []>} : vector<64x32xf32>, vector<32x32xf32>, vector<64x32xf32> -> vector<64x32xf32>
    %120 = arith.addf %116, %119 : vector<64x32xf32>
    %c0_101 = arith.constant 0 : index
    %c0_102 = arith.constant 0 : index
    %121 = vector.load %arg7[%c0_101, %c0_102] : memref<1x32xf32, #tpu.memory_space<vmem>>, vector<1x32xf32>
    %122 = vector.broadcast %121 : vector<1x32xf32> to vector<64x32xf32>
    %123 = arith.addf %120, %122 : vector<64x32xf32>
    %cst_103 = arith.constant 0.000000e+00 : f32
    %124 = vector.broadcast %cst_103 : f32 to vector<64x32xf32>
    %125 = arith.maximumf %123, %124 : vector<64x32xf32>
    %126 = vector.shape_cast %125 : vector<64x32xf32> to vector<8x8x32xf32>
    %127 = vector.extract_strided_slice %126 {offsets = [0, 0, 0], sizes = [1, 8, 32], strides = [1, 1, 1]} : vector<8x8x32xf32> to vector<1x8x32xf32>
    %128 = vector.shape_cast %127 : vector<1x8x32xf32> to vector<8x32xf32>
    %129 = vector.extract_strided_slice %126 {offsets = [1, 0, 0], sizes = [1, 8, 32], strides = [1, 1, 1]} : vector<8x8x32xf32> to vector<1x8x32xf32>
    %130 = vector.shape_cast %129 : vector<1x8x32xf32> to vector<8x32xf32>
    %131 = vector.extract_strided_slice %126 {offsets = [2, 0, 0], sizes = [1, 8, 32], strides = [1, 1, 1]} : vector<8x8x32xf32> to vector<1x8x32xf32>
    %132 = vector.shape_cast %131 : vector<1x8x32xf32> to vector<8x32xf32>
    %133 = vector.extract_strided_slice %126 {offsets = [3, 0, 0], sizes = [1, 8, 32], strides = [1, 1, 1]} : vector<8x8x32xf32> to vector<1x8x32xf32>
    %134 = vector.shape_cast %133 : vector<1x8x32xf32> to vector<8x32xf32>
    %135 = vector.extract_strided_slice %126 {offsets = [4, 0, 0], sizes = [1, 8, 32], strides = [1, 1, 1]} : vector<8x8x32xf32> to vector<1x8x32xf32>
    %136 = vector.shape_cast %135 : vector<1x8x32xf32> to vector<8x32xf32>
    %137 = vector.extract_strided_slice %126 {offsets = [5, 0, 0], sizes = [1, 8, 32], strides = [1, 1, 1]} : vector<8x8x32xf32> to vector<1x8x32xf32>
    %138 = vector.shape_cast %137 : vector<1x8x32xf32> to vector<8x32xf32>
    %139 = vector.extract_strided_slice %126 {offsets = [6, 0, 0], sizes = [1, 8, 32], strides = [1, 1, 1]} : vector<8x8x32xf32> to vector<1x8x32xf32>
    %140 = vector.shape_cast %139 : vector<1x8x32xf32> to vector<8x32xf32>
    %141 = vector.extract_strided_slice %126 {offsets = [7, 0, 0], sizes = [1, 8, 32], strides = [1, 1, 1]} : vector<8x8x32xf32> to vector<1x8x32xf32>
    %142 = vector.shape_cast %141 : vector<1x8x32xf32> to vector<8x32xf32>
    %143 = tpu.concatenate %128, %130, %132, %134, %136, %138, %140, %142 in 1 : vector<8x32xf32>, vector<8x32xf32>, vector<8x32xf32>, vector<8x32xf32>, vector<8x32xf32>, vector<8x32xf32>, vector<8x32xf32>, vector<8x32xf32> -> vector<8x256xf32>
    %c0_104 = arith.constant 0 : index
    %c0_105 = arith.constant 0 : index
    %144 = vector.load %arg8[%c0_104, %c0_105] : memref<256x128xf32, #tpu.memory_space<vmem>>, vector<256x128xf32>
    %cst_106 = arith.constant dense<0.000000e+00> : vector<8x128xf32>
    %145 = tpu.matmul %143, %144, %cst_106 {dimension_numbers = #tpu.dot_dimension_numbers<[1], [0], [0], [1], [0, 0, 1, 1], [], []>} : vector<8x256xf32>, vector<256x128xf32>, vector<8x128xf32> -> vector<8x128xf32>
    %c0_107 = arith.constant 0 : index
    %c0_108 = arith.constant 0 : index
    %146 = vector.load %arg9[%c0_107, %c0_108] : memref<1x128xf32, #tpu.memory_space<vmem>>, vector<1x128xf32>
    %147 = vector.broadcast %146 : vector<1x128xf32> to vector<8x128xf32>
    %148 = arith.addf %145, %147 : vector<8x128xf32>
    %cst_109 = arith.constant 0.000000e+00 : f32
    %149 = vector.broadcast %cst_109 : f32 to vector<8x128xf32>
    %150 = arith.maximumf %148, %149 : vector<8x128xf32>
    %c0_110 = arith.constant 0 : index
    %c0_111 = arith.constant 0 : index
    %151 = vector.load %arg10[%c0_110, %c0_111] : memref<128x128xf32, #tpu.memory_space<vmem>>, vector<128x128xf32>
    %cst_112 = arith.constant dense<0.000000e+00> : vector<8x128xf32>
    %152 = tpu.matmul %150, %151, %cst_112 {dimension_numbers = #tpu.dot_dimension_numbers<[1], [0], [0], [1], [0, 0, 1, 1], [], []>} : vector<8x128xf32>, vector<128x128xf32>, vector<8x128xf32> -> vector<8x128xf32>
    %c0_113 = arith.constant 0 : index
    %c0_114 = arith.constant 0 : index
    %153 = vector.load %arg11[%c0_113, %c0_114] : memref<1x128xf32, #tpu.memory_space<vmem>>, vector<1x128xf32>
    %154 = vector.broadcast %153 : vector<1x128xf32> to vector<8x128xf32>
    %155 = arith.addf %152, %154 : vector<8x128xf32>
    %c0_115 = arith.constant 0 : index
    %c0_116 = arith.constant 0 : index
    %156 = vector.load %arg16[%c0_115, %c0_116] : memref<8x128xf32, #tpu.memory_space<vmem>>, vector<8x128xf32>
    tpu.vector_store %arg16[%c0_115, %c0_116], %155 {strides = array<i32>} : memref<8x128xf32, #tpu.memory_space<vmem>>, vector<8x128xf32>,
    %157 = vector.extract_strided_slice %34 {offsets = [0, 0, 0], sizes = [1, 8, 32], strides = [1, 1, 1]} : vector<29x8x32xf32> to vector<1x8x32xf32>
    %158 = vector.shape_cast %157 : vector<1x8x32xf32> to vector<8x32xf32>
    %159 = vector.extract_strided_slice %34 {offsets = [1, 0, 0], sizes = [1, 8, 32], strides = [1, 1, 1]} : vector<29x8x32xf32> to vector<1x8x32xf32>
    %160 = vector.shape_cast %159 : vector<1x8x32xf32> to vector<8x32xf32>
    %161 = vector.extract_strided_slice %34 {offsets = [2, 0, 0], sizes = [1, 8, 32], strides = [1, 1, 1]} : vector<29x8x32xf32> to vector<1x8x32xf32>
    %162 = vector.shape_cast %161 : vector<1x8x32xf32> to vector<8x32xf32>
    %163 = vector.extract_strided_slice %34 {offsets = [3, 0, 0], sizes = [1, 8, 32], strides = [1, 1, 1]} : vector<29x8x32xf32> to vector<1x8x32xf32>
    %164 = vector.shape_cast %163 : vector<1x8x32xf32> to vector<8x32xf32>
    %165 = vector.extract_strided_slice %34 {offsets = [4, 0, 0], sizes = [1, 8, 32], strides = [1, 1, 1]} : vector<29x8x32xf32> to vector<1x8x32xf32>
    %166 = vector.shape_cast %165 : vector<1x8x32xf32> to vector<8x32xf32>
    %167 = vector.extract_strided_slice %34 {offsets = [5, 0, 0], sizes = [1, 8, 32], strides = [1, 1, 1]} : vector<29x8x32xf32> to vector<1x8x32xf32>
    %168 = vector.shape_cast %167 : vector<1x8x32xf32> to vector<8x32xf32>
    %169 = vector.extract_strided_slice %34 {offsets = [6, 0, 0], sizes = [1, 8, 32], strides = [1, 1, 1]} : vector<29x8x32xf32> to vector<1x8x32xf32>
    %170 = vector.shape_cast %169 : vector<1x8x32xf32> to vector<8x32xf32>
    %171 = vector.extract_strided_slice %34 {offsets = [7, 0, 0], sizes = [1, 8, 32], strides = [1, 1, 1]} : vector<29x8x32xf32> to vector<1x8x32xf32>
    %172 = vector.shape_cast %171 : vector<1x8x32xf32> to vector<8x32xf32>
    %173 = vector.extract_strided_slice %34 {offsets = [8, 0, 0], sizes = [1, 8, 32], strides = [1, 1, 1]} : vector<29x8x32xf32> to vector<1x8x32xf32>
    %174 = vector.shape_cast %173 : vector<1x8x32xf32> to vector<8x32xf32>
    %175 = vector.extract_strided_slice %34 {offsets = [9, 0, 0], sizes = [1, 8, 32], strides = [1, 1, 1]} : vector<29x8x32xf32> to vector<1x8x32xf32>
    %176 = vector.shape_cast %175 : vector<1x8x32xf32> to vector<8x32xf32>
    %177 = vector.extract_strided_slice %34 {offsets = [10, 0, 0], sizes = [1, 8, 32], strides = [1, 1, 1]} : vector<29x8x32xf32> to vector<1x8x32xf32>
    %178 = vector.shape_cast %177 : vector<1x8x32xf32> to vector<8x32xf32>
    %179 = vector.extract_strided_slice %34 {offsets = [11, 0, 0], sizes = [1, 8, 32], strides = [1, 1, 1]} : vector<29x8x32xf32> to vector<1x8x32xf32>
    %180 = vector.shape_cast %179 : vector<1x8x32xf32> to vector<8x32xf32>
    %181 = vector.extract_strided_slice %34 {offsets = [12, 0, 0], sizes = [1, 8, 32], strides = [1, 1, 1]} : vector<29x8x32xf32> to vector<1x8x32xf32>
    %182 = vector.shape_cast %181 : vector<1x8x32xf32> to vector<8x32xf32>
    %183 = vector.extract_strided_slice %34 {offsets = [13, 0, 0], sizes = [1, 8, 32], strides = [1, 1, 1]} : vector<29x8x32xf32> to vector<1x8x32xf32>
    %184 = vector.shape_cast %183 : vector<1x8x32xf32> to vector<8x32xf32>
    %185 = vector.extract_strided_slice %34 {offsets = [14, 0, 0], sizes = [1, 8, 32], strides = [1, 1, 1]} : vector<29x8x32xf32> to vector<1x8x32xf32>
    %186 = vector.shape_cast %185 : vector<1x8x32xf32> to vector<8x32xf32>
    %187 = vector.extract_strided_slice %34 {offsets = [15, 0, 0], sizes = [1, 8, 32], strides = [1, 1, 1]} : vector<29x8x32xf32> to vector<1x8x32xf32>
    %188 = vector.shape_cast %187 : vector<1x8x32xf32> to vector<8x32xf32>
    %189 = vector.extract_strided_slice %34 {offsets = [16, 0, 0], sizes = [1, 8, 32], strides = [1, 1, 1]} : vector<29x8x32xf32> to vector<1x8x32xf32>
    %190 = vector.shape_cast %189 : vector<1x8x32xf32> to vector<8x32xf32>
    %191 = vector.extract_strided_slice %34 {offsets = [17, 0, 0], sizes = [1, 8, 32], strides = [1, 1, 1]} : vector<29x8x32xf32> to vector<1x8x32xf32>
    %192 = vector.shape_cast %191 : vector<1x8x32xf32> to vector<8x32xf32>
    %193 = vector.extract_strided_slice %34 {offsets = [18, 0, 0], sizes = [1, 8, 32], strides = [1, 1, 1]} : vector<29x8x32xf32> to vector<1x8x32xf32>
    %194 = vector.shape_cast %193 : vector<1x8x32xf32> to vector<8x32xf32>
    %195 = vector.extract_strided_slice %34 {offsets = [19, 0, 0], sizes = [1, 8, 32], strides = [1, 1, 1]} : vector<29x8x32xf32> to vector<1x8x32xf32>
    %196 = vector.shape_cast %195 : vector<1x8x32xf32> to vector<8x32xf32>
    %197 = vector.extract_strided_slice %34 {offsets = [20, 0, 0], sizes = [1, 8, 32], strides = [1, 1, 1]} : vector<29x8x32xf32> to vector<1x8x32xf32>
    %198 = vector.shape_cast %197 : vector<1x8x32xf32> to vector<8x32xf32>
    %199 = vector.extract_strided_slice %34 {offsets = [21, 0, 0], sizes = [1, 8, 32], strides = [1, 1, 1]} : vector<29x8x32xf32> to vector<1x8x32xf32>
    %200 = vector.shape_cast %199 : vector<1x8x32xf32> to vector<8x32xf32>
    %201 = vector.extract_strided_slice %34 {offsets = [22, 0, 0], sizes = [1, 8, 32], strides = [1, 1, 1]} : vector<29x8x32xf32> to vector<1x8x32xf32>
    %202 = vector.shape_cast %201 : vector<1x8x32xf32> to vector<8x32xf32>
    %203 = vector.extract_strided_slice %34 {offsets = [23, 0, 0], sizes = [1, 8, 32], strides = [1, 1, 1]} : vector<29x8x32xf32> to vector<1x8x32xf32>
    %204 = vector.shape_cast %203 : vector<1x8x32xf32> to vector<8x32xf32>
    %205 = vector.extract_strided_slice %34 {offsets = [24, 0, 0], sizes = [1, 8, 32], strides = [1, 1, 1]} : vector<29x8x32xf32> to vector<1x8x32xf32>
    %206 = vector.shape_cast %205 : vector<1x8x32xf32> to vector<8x32xf32>
    %207 = vector.extract_strided_slice %34 {offsets = [25, 0, 0], sizes = [1, 8, 32], strides = [1, 1, 1]} : vector<29x8x32xf32> to vector<1x8x32xf32>
    %208 = vector.shape_cast %207 : vector<1x8x32xf32> to vector<8x32xf32>
    %209 = vector.extract_strided_slice %34 {offsets = [26, 0, 0], sizes = [1, 8, 32], strides = [1, 1, 1]} : vector<29x8x32xf32> to vector<1x8x32xf32>
    %210 = vector.shape_cast %209 : vector<1x8x32xf32> to vector<8x32xf32>
    %211 = vector.extract_strided_slice %34 {offsets = [27, 0, 0], sizes = [1, 8, 32], strides = [1, 1, 1]} : vector<29x8x32xf32> to vector<1x8x32xf32>
    %212 = vector.shape_cast %211 : vector<1x8x32xf32> to vector<8x32xf32>
    %213 = vector.extract_strided_slice %34 {offsets = [28, 0, 0], sizes = [1, 8, 32], strides = [1, 1, 1]} : vector<29x8x32xf32> to vector<1x8x32xf32>
    %214 = vector.shape_cast %213 : vector<1x8x32xf32> to vector<8x32xf32>
    %215 = tpu.concatenate %158, %160, %162, %164, %166, %168, %170, %172, %174, %176, %178, %180, %182, %184, %186, %188 in 1 : vector<8x32xf32>, vector<8x32xf32>, vector<8x32xf32>, vector<8x32xf32>, vector<8x32xf32>, vector<8x32xf32>, vector<8x32xf32>, vector<8x32xf32>, vector<8x32xf32>, vector<8x32xf32>, vector<8x32xf32>, vector<8x32xf32>, vector<8x32xf32>, vector<8x32xf32>, vector<8x32xf32>, vector<8x32xf32> -> vector<8x512xf32>
    %216 = tpu.concatenate %190, %192, %194, %196, %198, %200, %202, %204, %206, %208, %210, %212, %214 in 1 : vector<8x32xf32>, vector<8x32xf32>, vector<8x32xf32>, vector<8x32xf32>, vector<8x32xf32>, vector<8x32xf32>, vector<8x32xf32>, vector<8x32xf32>, vector<8x32xf32>, vector<8x32xf32>, vector<8x32xf32>, vector<8x32xf32>, vector<8x32xf32> -> vector<8x416xf32>
    %217 = tpu.concatenate %215, %216 in 1 : vector<8x512xf32>, vector<8x416xf32> -> vector<8x928xf32>
    %c0_117 = arith.constant 0 : index
    %c0_118 = arith.constant 0 : index
    %218 = vector.load %arg12[%c0_117, %c0_118] : memref<8x928xf32, #tpu.memory_space<vmem>>, vector<8x928xf32>
    tpu.vector_store %arg12[%c0_117, %c0_118], %217 {strides = array<i32>} : memref<8x928xf32, #tpu.memory_space<vmem>>, vector<8x928xf32>,
    %219 = vector.extract_strided_slice %80 {offsets = [0, 0, 0], sizes = [1, 8, 32], strides = [1, 1, 1]} : vector<15x8x32xf32> to vector<1x8x32xf32>
    %220 = vector.shape_cast %219 : vector<1x8x32xf32> to vector<8x32xf32>
    %221 = vector.extract_strided_slice %80 {offsets = [1, 0, 0], sizes = [1, 8, 32], strides = [1, 1, 1]} : vector<15x8x32xf32> to vector<1x8x32xf32>
    %222 = vector.shape_cast %221 : vector<1x8x32xf32> to vector<8x32xf32>
    %223 = vector.extract_strided_slice %80 {offsets = [2, 0, 0], sizes = [1, 8, 32], strides = [1, 1, 1]} : vector<15x8x32xf32> to vector<1x8x32xf32>
    %224 = vector.shape_cast %223 : vector<1x8x32xf32> to vector<8x32xf32>
    %225 = vector.extract_strided_slice %80 {offsets = [3, 0, 0], sizes = [1, 8, 32], strides = [1, 1, 1]} : vector<15x8x32xf32> to vector<1x8x32xf32>
    %226 = vector.shape_cast %225 : vector<1x8x32xf32> to vector<8x32xf32>
    %227 = vector.extract_strided_slice %80 {offsets = [4, 0, 0], sizes = [1, 8, 32], strides = [1, 1, 1]} : vector<15x8x32xf32> to vector<1x8x32xf32>
    %228 = vector.shape_cast %227 : vector<1x8x32xf32> to vector<8x32xf32>
    %229 = vector.extract_strided_slice %80 {offsets = [5, 0, 0], sizes = [1, 8, 32], strides = [1, 1, 1]} : vector<15x8x32xf32> to vector<1x8x32xf32>
    %230 = vector.shape_cast %229 : vector<1x8x32xf32> to vector<8x32xf32>
    %231 = vector.extract_strided_slice %80 {offsets = [6, 0, 0], sizes = [1, 8, 32], strides = [1, 1, 1]} : vector<15x8x32xf32> to vector<1x8x32xf32>
    %232 = vector.shape_cast %231 : vector<1x8x32xf32> to vector<8x32xf32>
    %233 = vector.extract_strided_slice %80 {offsets = [7, 0, 0], sizes = [1, 8, 32], strides = [1, 1, 1]} : vector<15x8x32xf32> to vector<1x8x32xf32>
    %234 = vector.shape_cast %233 : vector<1x8x32xf32> to vector<8x32xf32>
    %235 = vector.extract_strided_slice %80 {offsets = [8, 0, 0], sizes = [1, 8, 32], strides = [1, 1, 1]} : vector<15x8x32xf32> to vector<1x8x32xf32>
    %236 = vector.shape_cast %235 : vector<1x8x32xf32> to vector<8x32xf32>
    %237 = vector.extract_strided_slice %80 {offsets = [9, 0, 0], sizes = [1, 8, 32], strides = [1, 1, 1]} : vector<15x8x32xf32> to vector<1x8x32xf32>
    %238 = vector.shape_cast %237 : vector<1x8x32xf32> to vector<8x32xf32>
    %239 = vector.extract_strided_slice %80 {offsets = [10, 0, 0], sizes = [1, 8, 32], strides = [1, 1, 1]} : vector<15x8x32xf32> to vector<1x8x32xf32>
    %240 = vector.shape_cast %239 : vector<1x8x32xf32> to vector<8x32xf32>
    %241 = vector.extract_strided_slice %80 {offsets = [11, 0, 0], sizes = [1, 8, 32], strides = [1, 1, 1]} : vector<15x8x32xf32> to vector<1x8x32xf32>
    %242 = vector.shape_cast %241 : vector<1x8x32xf32> to vector<8x32xf32>
    %243 = vector.extract_strided_slice %80 {offsets = [12, 0, 0], sizes = [1, 8, 32], strides = [1, 1, 1]} : vector<15x8x32xf32> to vector<1x8x32xf32>
    %244 = vector.shape_cast %243 : vector<1x8x32xf32> to vector<8x32xf32>
    %245 = vector.extract_strided_slice %80 {offsets = [13, 0, 0], sizes = [1, 8, 32], strides = [1, 1, 1]} : vector<15x8x32xf32> to vector<1x8x32xf32>
    %246 = vector.shape_cast %245 : vector<1x8x32xf32> to vector<8x32xf32>
    %247 = vector.extract_strided_slice %80 {offsets = [14, 0, 0], sizes = [1, 8, 32], strides = [1, 1, 1]} : vector<15x8x32xf32> to vector<1x8x32xf32>
    %248 = vector.shape_cast %247 : vector<1x8x32xf32> to vector<8x32xf32>
    %249 = tpu.concatenate %220, %222, %224, %226, %228, %230, %232, %234, %236, %238, %240, %242, %244, %246, %248 in 1 : vector<8x32xf32>, vector<8x32xf32>, vector<8x32xf32>, vector<8x32xf32>, vector<8x32xf32>, vector<8x32xf32>, vector<8x32xf32>, vector<8x32xf32>, vector<8x32xf32>, vector<8x32xf32>, vector<8x32xf32>, vector<8x32xf32>, vector<8x32xf32>, vector<8x32xf32>, vector<8x32xf32> -> vector<8x480xf32>
    %c0_119 = arith.constant 0 : index
    %c0_120 = arith.constant 0 : index
    %250 = vector.load %arg13[%c0_119, %c0_120] : memref<8x480xf32, #tpu.memory_space<vmem>>, vector<8x480xf32>
    tpu.vector_store %arg13[%c0_119, %c0_120], %249 {strides = array<i32>} : memref<8x480xf32, #tpu.memory_space<vmem>>, vector<8x480xf32>,
    %c0_121 = arith.constant 0 : index
    %c0_122 = arith.constant 0 : index
    %251 = vector.load %arg14[%c0_121, %c0_122] : memref<8x256xf32, #tpu.memory_space<vmem>>, vector<8x256xf32>
    tpu.vector_store %arg14[%c0_121, %c0_122], %143 {strides = array<i32>} : memref<8x256xf32, #tpu.memory_space<vmem>>, vector<8x256xf32>,
    %c0_123 = arith.constant 0 : index
    %c0_124 = arith.constant 0 : index
    %252 = vector.load %arg15[%c0_123, %c0_124] : memref<8x128xf32, #tpu.memory_space<vmem>>, vector<8x128xf32>
    tpu.vector_store %arg15[%c0_123, %c0_124], %150 {strides = array<i32>} : memref<8x128xf32, #tpu.memory_space<vmem>>, vector<8x128xf32>,
    return
  }
  func.func @transform_0(%arg0: i32) -> (i32, i32, i32) {
    %c0_i32 = arith.constant 0 : i32
    %c0_i32_0 = arith.constant 0 : i32
    %c0_i32_1 = arith.constant 0 : i32
    return %c0_i32, %arg0, %c0_i32_0 : i32, i32, i32
  }
  func.func @transform_1(%arg0: i32) -> (i32, i32, i32) {
    %c0_i32 = arith.constant 0 : i32
    %c0_i32_0 = arith.constant 0 : i32
    %c0_i32_1 = arith.constant 0 : i32
    %c0_i32_2 = arith.constant 0 : i32
    return %c0_i32, %c0_i32_0, %c0_i32_1 : i32, i32, i32
  }
  func.func @transform_2(%arg0: i32) -> (i32, i32) {
    %c0_i32 = arith.constant 0 : i32
    %c0_i32_0 = arith.constant 0 : i32
    %c0_i32_1 = arith.constant 0 : i32
    return %c0_i32, %c0_i32_0 : i32, i32
  }
  func.func @transform_3(%arg0: i32) -> (i32, i32, i32) {
    %c0_i32 = arith.constant 0 : i32
    %c0_i32_0 = arith.constant 0 : i32
    %c0_i32_1 = arith.constant 0 : i32
    %c0_i32_2 = arith.constant 0 : i32
    return %c0_i32, %c0_i32_0, %c0_i32_1 : i32, i32, i32
  }
  func.func @transform_4(%arg0: i32) -> (i32, i32) {
    %c0_i32 = arith.constant 0 : i32
    %c0_i32_0 = arith.constant 0 : i32
    %c0_i32_1 = arith.constant 0 : i32
    return %c0_i32, %c0_i32_0 : i32, i32
  }
  func.func @transform_5(%arg0: i32) -> (i32, i32, i32) {
    %c0_i32 = arith.constant 0 : i32
    %c0_i32_0 = arith.constant 0 : i32
    %c0_i32_1 = arith.constant 0 : i32
    %c0_i32_2 = arith.constant 0 : i32
    return %c0_i32, %c0_i32_0, %c0_i32_1 : i32, i32, i32
  }
  func.func @transform_6(%arg0: i32) -> (i32, i32) {
    %c0_i32 = arith.constant 0 : i32
    %c0_i32_0 = arith.constant 0 : i32
    %c0_i32_1 = arith.constant 0 : i32
    return %c0_i32, %c0_i32_0 : i32, i32
  }
  func.func @transform_7(%arg0: i32) -> (i32, i32) {
    %c0_i32 = arith.constant 0 : i32
    %c0_i32_0 = arith.constant 0 : i32
    %c0_i32_1 = arith.constant 0 : i32
    return %c0_i32, %c0_i32_0 : i32, i32
  }
  func.func @transform_8(%arg0: i32) -> (i32, i32) {
    %c0_i32 = arith.constant 0 : i32
    %c0_i32_0 = arith.constant 0 : i32
    %c0_i32_1 = arith.constant 0 : i32
    return %c0_i32, %c0_i32_0 : i32, i32
  }
  func.func @transform_9(%arg0: i32) -> (i32, i32) {
    %c0_i32 = arith.constant 0 : i32
    %c0_i32_0 = arith.constant 0 : i32
    %c0_i32_1 = arith.constant 0 : i32
    return %c0_i32, %c0_i32_0 : i32, i32
  }
  func.func @transform_10(%arg0: i32) -> (i32, i32) {
    %c0_i32 = arith.constant 0 : i32
    %c0_i32_0 = arith.constant 0 : i32
    %c0_i32_1 = arith.constant 0 : i32
    return %c0_i32, %c0_i32_0 : i32, i32
  }
  func.func @transform_11(%arg0: i32) -> (i32, i32) {
    %c0_i32 = arith.constant 0 : i32
    %c0_i32_0 = arith.constant 0 : i32
    return %arg0, %c0_i32 : i32, i32
  }
  func.func @transform_12(%arg0: i32) -> (i32, i32) {
    %c0_i32 = arith.constant 0 : i32
    %c0_i32_0 = arith.constant 0 : i32
    return %arg0, %c0_i32 : i32, i32
  }
  func.func @transform_13(%arg0: i32) -> (i32, i32) {
    %c0_i32 = arith.constant 0 : i32
    %c0_i32_0 = arith.constant 0 : i32
    return %arg0, %c0_i32 : i32, i32
  }
  func.func @transform_14(%arg0: i32) -> (i32, i32) {
    %c0_i32 = arith.constant 0 : i32
    %c0_i32_0 = arith.constant 0 : i32
    return %arg0, %c0_i32 : i32, i32
  }
  func.func @transform_15(%arg0: i32) -> (i32, i32) {
    %c0_i32 = arith.constant 0 : i32
    %c0_i32_0 = arith.constant 0 : i32
    return %arg0, %c0_i32 : i32, i32
  }
}

</mosaic_0001>

<bundles_post_ra>
// kernel: kcrnet_forward.1
= control target key start
LH: loop header
LB: loop body
LE: loop exit
PB: predicated region body
PF: predicated region fallthrough
CT: control target
= control target key end

     0   :  { %s9286_s0 = inlined_call_operand.vmem [shape: f32[33,16,32], index: 0, kind: input, shape index: {}]   ;;  %s9287_s1 = inlined_call_operand.vmem [shape: f32[5,32,32], index: 1, kind: input, shape index: {}]   ;;  %s9288_s2 = inlined_call_operand.vmem [shape: f32[1,32], index: 2, kind: input, shape index: {}]   ;;  %s9289_s3 = inlined_call_operand.vmem [shape: f32[5,32,32], index: 3, kind: input, shape index: {}]   ;;  %s9290_s4 = inlined_call_operand.vmem [shape: f32[1,32], index: 4, kind: input, shape index: {}]   ;;  %s9291_s5 = inlined_call_operand.vmem [shape: f32[5,32,32], index: 5, kind: input, shape index: {}]   ;;  %s9292_s6 = inlined_call_operand.vmem [shape: f32[1,32], index: 6, kind: input, shape index: {}]   ;;  %s9293_s7 = inlined_call_operand.vmem [shape: f32[256,128], index: 7, kind: input, shape index: {}]   ;;  %s9294_s8 = inlined_call_operand.vmem [shape: f32[1,128], index: 8, kind: input, shape index: {}]   ;;  %s9295_s9 = inlined_call_operand.vmem [shape: f32[128,128], index: 9, kind: input, shape index: {}]   ;;  %s9296_s10 = inlined_call_operand.vmem [shape: f32[1,128], index: 10, kind: input, shape index: {}]   ;;  %s9297_s11 = inlined_call_operand.vmem [shape: f32[16,928], index: 11, kind: output, shape index: {0}]   ;;  %s9298_s12 = inlined_call_operand.vmem [shape: f32[16,480], index: 12, kind: output, shape index: {1}]   ;;  %s9299_s13 = inlined_call_operand.vmem [shape: f32[16,256], index: 13, kind: output, shape index: {2}]   ;;  %s9300_s14 = inlined_call_operand.hbm [shape: f32[16,128], index: 14, kind: output, shape index: {3}]   ;;  %s9301_s15 = inlined_call_operand.vmem [shape: f32[16,128], index: 15, kind: output, shape index: {4}]  }
   0x1   :  { %9365 = sst [smem:[#allocation44_spill]] %s9286_s0 }
   0x2   :  { %9366 = sst [smem:[#allocation45_spill]] %s9287_s1 }
   0x3   :  { %9367 = sst [smem:[#allocation46_spill]] %s9288_s2 }
   0x4   :  { %9368 = sst [smem:[#allocation47_spill]] %s9289_s3 }
   0x5   :  { %9369 = sst [smem:[#allocation48_spill]] %s9290_s4 }
   0x6   :  { %9370 = sst [smem:[#allocation49_spill]] %s9291_s5 }
   0x7   :  { %21 = vsyncpa [#allocation6], 0 }
   0x8   :  { %23 = vsyncpa [#allocation6 + $0x1], 0  ;;  %s6692_s18 = smov 0   ;;  %s6694_s19 = smov 0  }
   0x9   :  { %s6696_s20 = smov 0   ;;  %s6698_s21 = smov 0  }
   0xa LB: > { %9371 = sst [smem:[#allocation8_spill]] %s6600_s20  ;;  %s6713_s22 = sadd.s32 4294967295, %s6604_s21   ;;  %s6604_s21 = sphi %s6698_s21, %s9486_s21   ;;  %s6600_s20 = sphi %s6696_s20, %s9483_s20   ;;  %s6596_s19 = sphi %s6694_s19, %s9485_s19   ;;  %s6592_s18 = sphi %s6692_s18, %s9484_s18  }
   0xb   : > { %s4802_s23 = sadd.s32 4294967294, %s6604_s21   ;;  %s6717_s24 = sadd.s32 1, %s6604_s21  }
   0xc   : > { %s36_s25 = sadd.s32 1, %s6600_s20  ;;  %s33_s26 = ssub.s32 %s6604_s21, %s6717_s24 }
   0xd   : > { %p43_p0 = scmp.ne.s32.totalorder %s6600_s20, %s6596_s19  ;;  %p34_p1 = scmp.eq.s32.totalorder %s33_s26, 0 }
   0xe   : > { %p44_p2 = scmp.eq.s32.totalorder %s6604_s21, 0  ;;  %p361_p3 = scmp.eq.s32.totalorder %s6713_s22, 1 }
   0xf   : > { %p366_p4 = scmp.ne.s32.totalorder %s6596_s19, %s6592_s18  ;;  %p367_p7 = scmp.eq.s32.totalorder %s4802_s23, 1 }
  0x10   : > { %s6729_s27 = scalar_select %p34_p1, %s6600_s20, %s36_s25  }
  0x11   : > { %p45_p5 = por %p44_p2, %p43_p0  ;;  %p6731_p6 = por %p361_p3, %p43_p0 }
  0x12   : > { %9372 = sst [smem:[#allocation9_spill]] %s6729_s27  ;;  %p6735_p8 = por %p367_p7, %p366_p4 }
  0x13   : > { %p9364_p9 = scmp.ge.s32.totalorder %s6604_s21, 2 }
  0x15   : > { %439 = sbr.rel (%p9364_p9) target bundleno = 53 (0x35), region = 56 }
  0x1a   : > { %442 = sbr.rel (!%p45_p5) target bundleno = 53 (0x35), region = 60  ;;  %s444_s30 = sand.u32 (%p45_p5), 1, %s6600_s20  }
  0x1b   : > { %s4805_s16 = sshll.u32 (%p45_p5), %s6604_s21, 3  ;;  %s6498_s17 = smul.u32 (%p45_p5), 264, %s444_s30 }
  0x1c   : > { %s9375_s0 = sld [smem:[#allocation44_spill]] (%p45_p5) }
  0x1d   : > { %s6755_s23 = scalar_lea.vmem (%p45_p5), [#allocation4], %s6498_s17 }
  0x22   : > { %s6747_s27 = scalar_lea.vmem %s9375_s0, %s4805_s16 }
  0x23   : > { %v541_v0 = vld [vmem:[%s6747_s27] sm:$0xff]  ;;  %v543_v1 = vld [vmem:[%s6747_s27 + $0x10] sm:$0xff] }
  0x24   : > { %v545_v2 = vld [vmem:[%s6747_s27 + $0x20] sm:$0xff]  ;;  %v547_v3 = vld [vmem:[%s6747_s27 + $0x30] sm:$0xff]  ;;  %542 = vst [vmem:[%s6755_s23] sm:$0xff] %v541_v0  ;;  %544 = vst [vmem:[%s6755_s23 + $0x8] sm:$0xff] %v543_v1 }
  0x25   : > { %v549_v4 = vld [vmem:[%s6747_s27 + $0x40] sm:$0xff]  ;;  %v551_v5 = vld [vmem:[%s6747_s27 + $0x50] sm:$0xff]  ;;  %546 = vst [vmem:[%s6755_s23 + $0x10] sm:$0xff] %v545_v2  ;;  %548 = vst [vmem:[%s6755_s23 + $0x18] sm:$0xff] %v547_v3 }
  0x26   : > { %550 = vst [vmem:[%s6755_s23 + $0x20] sm:$0xff] %v549_v4  ;;  %552 = vst [vmem:[%s6755_s23 + $0x28] sm:$0xff] %v551_v5  ;;  %v553_v6 = vld [vmem:[%s6747_s27 + $0x60] sm:$0xff]  ;;  %v555_v7 = vld [vmem:[%s6747_s27 + $0x70] sm:$0xff] }
  0x27   : > { %v557_v8 = vld [vmem:[%s6747_s27 + $0x80] sm:$0xff]  ;;  %554 = vst [vmem:[%s6755_s23 + $0x30] sm:$0xff] %v553_v6  ;;  %556 = vst [vmem:[%s6755_s23 + $0x38] sm:$0xff] %v555_v7  ;;  %v559_v9 = vld [vmem:[%s6747_s27 + $0x90] sm:$0xff] }
  0x28   : > { %558 = vst [vmem:[%s6755_s23 + $0x40] sm:$0xff] %v557_v8  ;;  %v561_v10 = vld [vmem:[%s6747_s27 + $0xa0] sm:$0xff]  ;;  %v563_v11 = vld [vmem:[%s6747_s27 + $0xb0] sm:$0xff]  ;;  %560 = vst [vmem:[%s6755_s23 + $0x48] sm:$0xff] %v559_v9 }
  0x29   : > { %562 = vst [vmem:[%s6755_s23 + $0x50] sm:$0xff] %v561_v10  ;;  %564 = vst [vmem:[%s6755_s23 + $0x58] sm:$0xff] %v563_v11  ;;  %v565_v12 = vld [vmem:[%s6747_s27 + $0xc0] sm:$0xff]  ;;  %v567_v13 = vld [vmem:[%s6747_s27 + $0xd0] sm:$0xff] }
  0x2a   : > { %v569_v14 = vld [vmem:[%s6747_s27 + $0xe0] sm:$0xff]  ;;  %566 = vst [vmem:[%s6755_s23 + $0x60] sm:$0xff] %v565_v12  ;;  %568 = vst [vmem:[%s6755_s23 + $0x68] sm:$0xff] %v567_v13  ;;  %v571_v15 = vld [vmem:[%s6747_s27 + $0xf0] sm:$0xff] }
  0x2b   : > { %570 = vst [vmem:[%s6755_s23 + $0x70] sm:$0xff] %v569_v14  ;;  %v573_v16 = vld [vmem:[%s6747_s27 + $0x100] sm:$0xff]  ;;  %v575_v17 = vld [vmem:[%s6747_s27 + $0x110] sm:$0xff]  ;;  %572 = vst [vmem:[%s6755_s23 + $0x78] sm:$0xff] %v571_v15 }
  0x2c   : > { %574 = vst [vmem:[%s6755_s23 + $0x80] sm:$0xff] %v573_v16  ;;  %576 = vst [vmem:[%s6755_s23 + $0x88] sm:$0xff] %v575_v17  ;;  %v577_v18 = vld [vmem:[%s6747_s27 + $0x120] sm:$0xff]  ;;  %v579_v19 = vld [vmem:[%s6747_s27 + $0x130] sm:$0xff] }
  0x2d   : > { %v581_v20 = vld [vmem:[%s6747_s27 + $0x140] sm:$0xff]  ;;  %578 = vst [vmem:[%s6755_s23 + $0x90] sm:$0xff] %v577_v18  ;;  %580 = vst [vmem:[%s6755_s23 + $0x98] sm:$0xff] %v579_v19  ;;  %v583_v21 = vld [vmem:[%s6747_s27 + $0x150] sm:$0xff] }
  0x2e   : > { %582 = vst [vmem:[%s6755_s23 + $0xa0] sm:$0xff] %v581_v20  ;;  %v585_v22 = vld [vmem:[%s6747_s27 + $0x160] sm:$0xff]  ;;  %v587_v23 = vld [vmem:[%s6747_s27 + $0x170] sm:$0xff]  ;;  %584 = vst [vmem:[%s6755_s23 + $0xa8] sm:$0xff] %v583_v21 }
  0x2f   : > { %586 = vst [vmem:[%s6755_s23 + $0xb0] sm:$0xff] %v585_v22  ;;  %588 = vst [vmem:[%s6755_s23 + $0xb8] sm:$0xff] %v587_v23  ;;  %v589_v24 = vld [vmem:[%s6747_s27 + $0x180] sm:$0xff]  ;;  %v591_v25 = vld [vmem:[%s6747_s27 + $0x190] sm:$0xff] }
  0x30   : > { %v593_v26 = vld [vmem:[%s6747_s27 + $0x1a0] sm:$0xff]  ;;  %590 = vst [vmem:[%s6755_s23 + $0xc0] sm:$0xff] %v589_v24  ;;  %592 = vst [vmem:[%s6755_s23 + $0xc8] sm:$0xff] %v591_v25  ;;  %v595_v27 = vld [vmem:[%s6747_s27 + $0x1b0] sm:$0xff] }
  0x31   : > { %594 = vst [vmem:[%s6755_s23 + $0xd0] sm:$0xff] %v593_v26  ;;  %v597_v28 = vld [vmem:[%s6747_s27 + $0x1c0] sm:$0xff]  ;;  %v599_v29 = vld [vmem:[%s6747_s27 + $0x1d0] sm:$0xff]  ;;  %596 = vst [vmem:[%s6755_s23 + $0xd8] sm:$0xff] %v595_v27 }
  0x32   : > { %598 = vst [vmem:[%s6755_s23 + $0xe0] sm:$0xff] %v597_v28  ;;  %600 = vst [vmem:[%s6755_s23 + $0xe8] sm:$0xff] %v599_v29  ;;  %v601_v30 = vld [vmem:[%s6747_s27 + $0x1e0] sm:$0xff]  ;;  %v603_v31 = vld [vmem:[%s6747_s27 + $0x1f0] sm:$0xff] }
  0x33   : > { %v605_v32 = vld [vmem:[%s6747_s27 + $0x200] sm:$0xff]  ;;  %602 = vst [vmem:[%s6755_s23 + $0xf0] sm:$0xff] %v601_v30  ;;  %604 = vst [vmem:[%s6755_s23 + $0xf8] sm:$0xff] %v603_v31 }
  0x34   : > { %606 = vst [vmem:[%s6755_s23 + $0x100] sm:$0xff] %v605_v32 }
  0x35 PF: > { %p4806_p10 = scmp.ge.s32.totalorder %s6604_s21, 1  ;;  %p611_p11 = scmp.lt.s32.totalorder %s6604_s21, 3 }
  0x37   : > { %p612_p12 = pnand %p4806_p10, %p611_p11 }
  0x39   : > { %615 = sbr.rel (%p612_p12) target bundleno = 1716 (0x6b4), region = 98 }
  0x3e   : > { %s9376_s1 = sld [smem:[#allocation45_spill]]  ;;  %s6826_s27 = sand.u32 1, %s6596_s19   ;;  %v9331_v35 = vmov 0.0   ;;  %vm861_vm0 = vcmask 261120   ;;  %vm6607_vm1 = vmmov 0   ;;  %vm4209_vm2 = vcmask 785408  }
  0x3f   : > { %5623 = vmatprep.subr.mxu0 %v9331_v35  ;;  %5718 = vmatprep.subr.mxu1 %v9331_v35  ;;  %s6499_s16 = smul.u32 264, %s6826_s27  ;;  %2514 = vst.msk [vmem:[#allocation2] sm:$0xff] %vm861_vm0, %v9331_v35  ;;  %2515 = vst.msk [vmem:[#allocation2 + $0x8] sm:$0xff] %vm861_vm0, %v9331_v35  ;;  %s9377_s3 = sld [smem:[#allocation47_spill]]  ;;  %vm4207_vm3 = vcmask 523264  }
  0x40   : > { %2547 = vst.msk [vmem:[#allocation2 + $0xf8] sm:$0xff] %vm861_vm0, %v9331_v35  ;;  %2548 = vst.msk [vmem:[#allocation2 + $0x100] sm:$0xff] %vm861_vm0, %v9331_v35  ;;  %5631 = vmatprep.mubr.msk.f32.mxu0 %vm6607_vm1, %v9331_v35  ;;  %5726 = vmatprep.mubr.msk.f32.mxu1 %vm6607_vm1, %v9331_v35  ;;  %s9378_s2 = sld [smem:[#allocation46_spill]]  ;;  %p684_p13 = scmp.lt.s32.totalorder %s6713_s22, 1 }
  0x41   : > { %3488 = vst.msk [vmem:[#allocation3] sm:$0xff] %vm861_vm0, %v9331_v35  ;;  %3489 = vst.msk [vmem:[#allocation3 + $0x8] sm:$0xff] %vm861_vm0, %v9331_v35  ;;  %s6866_s20 = scalar_lea.vmem [#allocation4], %s6499_s16  ;;  %s9407_s5 = sld [smem:[#allocation49_spill]] }
  0x42   : > { %3507 = vst.msk [vmem:[#allocation3 + $0x88] sm:$0xff] %vm861_vm0, %v9331_v35  ;;  %3508 = vst.msk [vmem:[#allocation3 + $0x90] sm:$0xff] %vm861_vm0, %v9331_v35  ;;  %v4815_v41 = vld [vmem:[%s6866_s20 + $0x8] sm:$0xff]  ;;  %v703_v43 = vld [vmem:[%s6866_s20] sm:$0xff]  ;;  %s8174_s17 = scalar_select %p684_p13, %s6713_s22, 1 }
  0x43   : > { %v6885_v45 = vld [vmem:[%s6866_s20 + $0x10] sm:$0xff]  ;;  %v6904_v48 = vld [vmem:[%s6866_s20 + $0x18] sm:$0xff]  ;;  %v6922_v51 = vld [vmem:[%s6866_s20 + $0x20] sm:$0xff]  ;;  %s9414_s4 = sld [smem:[#allocation48_spill]] }
  0x44   : > { %v4934_v33 = vld [vmem:[%s9376_s1 + $0x38] sm:$0xff]  ;;  %v4933_v36 = vld [vmem:[%s9376_s1 + $0x30] sm:$0xff]  ;;  %v4932_v38 = vld [vmem:[%s9376_s1 + $0x28] sm:$0xff]  ;;  %s5248_s16 = sshll.u32 %s8174_s17, 6  ;;  %s5250_s26 = sshll.u32 %s8174_s17, 4 }
  0x45   : > { %v855_v34 = vld [vmem:[%s9376_s1 + $0x18] sm:$0xff]  ;;  %v854_v37 = vld [vmem:[%s9376_s1 + $0x10] sm:$0xff]  ;;  %5624 = vmatpush3.msra.mxu0 %v4934_v33  ;;  %v853_v39 = vld [vmem:[%s9376_s1 + $0x8] sm:$0xff]  ;;  %s8202_s23 = scalar_lea.vmem %s9297_s11, %s5248_s16  ;;  %s5249_s30 = sshll.u32 %s8174_s17, 5 }
  0x46   : > { %5719 = vmatpush3.msra.mxu1 %v855_v34  ;;  %5625 = vmatprep.subr.mxu0 %v9331_v35  ;;  %v4931_v40 = vld [vmem:[%s9376_s1 + $0x20] sm:$0xff]  ;;  %v4996_v44 = vld [vmem:[%s9376_s1 + $0x58] sm:$0xff]  ;;  %v4995_v46 = vld [vmem:[%s9376_s1 + $0x50] sm:$0xff]  ;;  %s693_s16 = scalar_lea.vmem %s9298_s12, %s5249_s30 }
  0x47   : > { %5720 = vmatprep.subr.mxu1 %v9331_v35  ;;  %5626 = vmatpush3.msra.mxu0 %v4933_v36  ;;  %v852_v42 = vld [vmem:[%s9376_s1] sm:$0xff]  ;;  %v4994_v47 = vld [vmem:[%s9376_s1 + $0x48] sm:$0xff]  ;;  %v5029_v50 = vld [vmem:[%s9376_s1 + $0x78] sm:$0xff] }
  0x48   : > { %5721 = vmatpush3.msra.mxu1 %v854_v37  ;;  %5627 = vmatprep.subr.mxu0 %v9331_v35  ;;  %v4993_v49 = vld [vmem:[%s9376_s1 + $0x40] sm:$0xff]  ;;  %v5028_v52 = vld [vmem:[%s9376_s1 + $0x70] sm:$0xff]  ;;  %v5027_v53 = vld [vmem:[%s9376_s1 + $0x68] sm:$0xff] }
  0x49   : > { %5722 = vmatprep.subr.mxu1 %v9331_v35  ;;  %5628 = vmatpush3.msra.mxu0 %v4932_v38  ;;  %v6941_v54 = vld [vmem:[%s6866_s20 + $0x28] sm:$0xff]  ;;  %v6957_v56 = vld [vmem:[%s6866_s20 + $0x30] sm:$0xff]  ;;  %v6970_v57 = vld [vmem:[%s6866_s20 + $0x38] sm:$0xff] }
  0x4a   : > { %5723 = vmatpush3.msra.mxu1 %v853_v39  ;;  %5629 = vmatprep.subr.mxu0 %v9331_v35  ;;  %v5026_v55 = vld [vmem:[%s9376_s1 + $0x60] sm:$0xff]  ;;  %v6981_v58 = vld [vmem:[%s6866_s20 + $0x40] sm:$0xff]  ;;  %v7014_v61 = vld [vmem:[%s6866_s20 + $0x58] sm:$0xff] }
  0x4b   : > { %5630 = vmatpush3.msra.mxu0 %v4931_v40  ;;  %5724 = vmatprep.subr.mxu1 %v9331_v35  ;;  %v6992_v59 = vld [vmem:[%s6866_s20 + $0x48] sm:$0xff]  ;;  %v7003_v60 = vld [vmem:[%s6866_s20 + $0x50] sm:$0xff]  ;;  %v7025_v62 = vld [vmem:[%s6866_s20 + $0x60] sm:$0xff] }
  0x4c   : > { %5632 = vmatmul.mubr.msk.f32.vlgmr.msra.gmra.mxu0 %vm861_vm0, %v4815_v41  ;;  %5725 = vmatpush3.msra.mxu1 %v852_v42  ;;  %v7036_v63 = vld [vmem:[%s6866_s20 + $0x68] sm:$0xff]  ;;  %v7047_v0 = vld [vmem:[%s6866_s20 + $0x70] sm:$0xff]  ;;  %v7058_v1 = vld [vmem:[%s6866_s20 + $0x78] sm:$0xff] }
  0x4d   : > { %5813 = vmatprep.subr.mxu0 %v9331_v35  ;;  %5727 = vmatmul.mubr.msk.f32.vlgmr.msra.gmra.mxu1 %vm861_vm0, %v703_v43  ;;  %v7069_v2 = vld [vmem:[%s6866_s20 + $0x80] sm:$0xff]  ;;  %v7080_v3 = vld [vmem:[%s6866_s20 + $0x88] sm:$0xff]  ;;  %v7091_v4 = vld [vmem:[%s6866_s20 + $0x90] sm:$0xff] }
  0x4e   : > { %5814 = vmatpush3.msra.mxu0 %v4996_v44  ;;  %5634 = vmatprep.mubr.msk.f32.mxu0 %vm6607_vm1, %v9331_v35  ;;  %v7102_v5 = vld [vmem:[%s6866_s20 + $0x98] sm:$0xff]  ;;  %v7113_v6 = vld [vmem:[%s6866_s20 + $0xa0] sm:$0xff]  ;;  %v7124_v7 = vld [vmem:[%s6866_s20 + $0xa8] sm:$0xff] }
  0x4f   : > { %5729 = vmatprep.mubr.msk.f32.mxu1 %vm6607_vm1, %v9331_v35  ;;  %5815 = vmatprep.subr.mxu0 %v9331_v35  ;;  %v7135_v8 = vld [vmem:[%s6866_s20 + $0xb0] sm:$0xff]  ;;  %v7146_v9 = vld [vmem:[%s6866_s20 + $0xb8] sm:$0xff]  ;;  %v7157_v10 = vld [vmem:[%s6866_s20 + $0xc0] sm:$0xff] }
  0x50   : > { %5635 = vmatmul.mubr.msk.f32.gmra.mxu0 %vm861_vm0, %v6885_v45  ;;  %5908 = vmatprep.subr.mxu1 %v9331_v35  ;;  %v7168_v11 = vld [vmem:[%s6866_s20 + $0xc8] sm:$0xff]  ;;  %v7179_v12 = vld [vmem:[%s6866_s20 + $0xd0] sm:$0xff]  ;;  %v7190_v13 = vld [vmem:[%s6866_s20 + $0xd8] sm:$0xff] }
  0x51   : > { %5637 = vmatprep.mubr.msk.f32.mxu0 %vm6607_vm1, %v9331_v35  ;;  %5816 = vmatpush3.msra.mxu0 %v4995_v46  ;;  %v7201_v14 = vld [vmem:[%s6866_s20 + $0xe0] sm:$0xff]  ;;  %v7212_v15 = vld [vmem:[%s6866_s20 + $0xe8] sm:$0xff]  ;;  %v5060_v18 = vld [vmem:[%s9376_s1 + $0x88] sm:$0xff] }
  0x52   : > { %5730 = vmatmul.mubr.msk.f32.gmra.mxu1 %vm861_vm0, %v4815_v41  ;;  %5817 = vmatprep.subr.mxu0 %v9331_v35  ;;  %v5062_v16 = vld [vmem:[%s9376_s1 + $0x98] sm:$0xff]  ;;  %v5061_v17 = vld [vmem:[%s9376_s1 + $0x90] sm:$0xff]  ;;  %v5059_v19 = vld [vmem:[%s9376_s1 + $0x80] sm:$0xff] }
  0x53   : > { %5732 = vmatprep.mubr.msk.f32.mxu1 %vm6607_vm1, %v9331_v35  ;;  %5818 = vmatpush3.msra.mxu0 %v4994_v47 }
  0x54   : > { %5638 = vmatmul.mubr.msk.f32.gmra.mxu0 %vm861_vm0, %v6904_v48  ;;  %5819 = vmatprep.subr.mxu0 %v9331_v35 }
  0x55   : > { %5640 = vmatprep.mubr.msk.f32.mxu0 %vm6607_vm1, %v9331_v35  ;;  %5820 = vmatpush3.msra.mxu0 %v4993_v49 }
  0x56   : > { %5733 = vmatmul.mubr.msk.f32.gmra.mxu1 %vm861_vm0, %v6885_v45  ;;  %6003 = vmatprep.subr.mxu0 %v9331_v35 }
  0x57   : > { %5735 = vmatprep.mubr.msk.f32.mxu1 %vm6607_vm1, %v9331_v35  ;;  %5909 = vmatpush3.msra.mxu1 %v5029_v50 }
  0x58   : > { %5641 = vmatmul.mubr.msk.f32.gmra.mxu0 %vm861_vm0, %v6922_v51  ;;  %5910 = vmatprep.subr.mxu1 %v9331_v35 }
  0x59   : > { %5643 = vmatprep.mubr.msk.f32.mxu0 %vm6607_vm1, %v9331_v35  ;;  %5911 = vmatpush3.msra.mxu1 %v5028_v52 }
  0x5a   : > { %5736 = vmatmul.mubr.msk.f32.gmra.mxu1 %vm861_vm0, %v6904_v48  ;;  %5912 = vmatprep.subr.mxu1 %v9331_v35 }
  0x5b   : > { %5738 = vmatprep.mubr.msk.f32.mxu1 %vm6607_vm1, %v9331_v35  ;;  %5913 = vmatpush3.msra.mxu1 %v5027_v53 }
  0x5c   : > { %5644 = vmatmul.mubr.msk.f32.gmra.mxu0 %vm861_vm0, %v6941_v54  ;;  %5914 = vmatprep.subr.mxu1 %v9331_v35 }
  0x5d   : > { %5646 = vmatprep.mubr.msk.f32.mxu0 %vm6607_vm1, %v9331_v35  ;;  %5915 = vmatpush3.msra.mxu1 %v5026_v55 }
  0x5e   : > { %5739 = vmatmul.mubr.msk.f32.gmra.mxu1 %vm861_vm0, %v6922_v51  ;;  %6098 = vmatprep.subr.mxu1 %v9331_v35 }
  0x5f   : > { %5741 = vmatprep.mubr.msk.f32.mxu1 %vm6607_vm1, %v9331_v35 }
  0x60   : > { %5647 = vmatmul.mubr.msk.f32.gmra.mxu0 %vm861_vm0, %v6957_v56 }
  0x61   : > { %5649 = vmatprep.mubr.msk.f32.mxu0 %vm6607_vm1, %v9331_v35 }
  0x62   : > { %5742 = vmatmul.mubr.msk.f32.gmra.mxu1 %vm861_vm0, %v6941_v54 }
  0x63   : > { %5744 = vmatprep.mubr.msk.f32.mxu1 %vm6607_vm1, %v9331_v35 }
  0x64   : > { %5650 = vmatmul.mubr.msk.f32.gmra.mxu0 %vm861_vm0, %v6970_v57 }
  0x65   : > { %5652 = vmatprep.mubr.msk.f32.mxu0 %vm6607_vm1, %v9331_v35 }
  0x66   : > { %5745 = vmatmul.mubr.msk.f32.gmra.mxu1 %vm861_vm0, %v6957_v56 }
  0x67   : > { %5747 = vmatprep.mubr.msk.f32.mxu1 %vm6607_vm1, %v9331_v35 }
  0x68   : > { %5653 = vmatmul.mubr.msk.f32.gmra.mxu0 %vm861_vm0, %v6981_v58 }
  0x69   : > { %5655 = vmatprep.mubr.msk.f32.mxu0 %vm6607_vm1, %v9331_v35 }
  0x6a   : > { %5748 = vmatmul.mubr.msk.f32.gmra.mxu1 %vm861_vm0, %v6970_v57 }
  0x6b   : > { %5750 = vmatprep.mubr.msk.f32.mxu1 %vm6607_vm1, %v9331_v35 }
  0x6c   : > { %5656 = vmatmul.mubr.msk.f32.gmra.mxu0 %vm861_vm0, %v6992_v59 }
  0x6d   : > { %5658 = vmatprep.mubr.msk.f32.mxu0 %vm6607_vm1, %v9331_v35 }
  0x6e   : > { %5751 = vmatmul.mubr.msk.f32.gmra.mxu1 %vm861_vm0, %v6981_v58 }
  0x6f   : > { %5753 = vmatprep.mubr.msk.f32.mxu1 %vm6607_vm1, %v9331_v35 }
  0x70   : > { %5659 = vmatmul.mubr.msk.f32.gmra.mxu0 %vm861_vm0, %v7003_v60 }
  0x71   : > { %5661 = vmatprep.mubr.msk.f32.mxu0 %vm6607_vm1, %v9331_v35 }
  0x72   : > { %5754 = vmatmul.mubr.msk.f32.gmra.mxu1 %vm861_vm0, %v6992_v59 }
  0x73   : > { %5756 = vmatprep.mubr.msk.f32.mxu1 %vm6607_vm1, %v9331_v35 }
  0x74   : > { %5662 = vmatmul.mubr.msk.f32.gmra.mxu0 %vm861_vm0, %v7014_v61 }
  0x75   : > { %5664 = vmatprep.mubr.msk.f32.mxu0 %vm6607_vm1, %v9331_v35 }
  0x76   : > { %5757 = vmatmul.mubr.msk.f32.gmra.mxu1 %vm861_vm0, %v7003_v60 }
  0x77   : > { %5759 = vmatprep.mubr.msk.f32.mxu1 %vm6607_vm1, %v9331_v35 }
  0x78   : > { %5665 = vmatmul.mubr.msk.f32.gmra.mxu0 %vm861_vm0, %v7025_v62 }
  0x79   : > { %5667 = vmatprep.mubr.msk.f32.mxu0 %vm6607_vm1, %v9331_v35 }
  0x7a   : > { %5760 = vmatmul.mubr.msk.f32.gmra.mxu1 %vm861_vm0, %v7014_v61 }
  0x7b   : > { %5762 = vmatprep.mubr.msk.f32.mxu1 %vm6607_vm1, %v9331_v35 }
  0x7c   : > { %5668 = vmatmul.mubr.msk.f32.gmra.mxu0 %vm861_vm0, %v7036_v63 }
  0x7d   : > { %5670 = vmatprep.mubr.msk.f32.mxu0 %vm6607_vm1, %v9331_v35 }
  0x7e   : > { %5763 = vmatmul.mubr.msk.f32.gmra.mxu1 %vm861_vm0, %v7025_v62 }
  0x7f   : > { %5765 = vmatprep.mubr.msk.f32.mxu1 %vm6607_vm1, %v9331_v35 }
  0x80   : > { %5671 = vmatmul.mubr.msk.f32.gmra.mxu0 %vm861_vm0, %v7047_v0 }
  0x81   : > { %5673 = vmatprep.mubr.msk.f32.mxu0 %vm6607_vm1, %v9331_v35 }
  0x82   : > { %5766 = vmatmul.mubr.msk.f32.gmra.mxu1 %vm861_vm0, %v7036_v63 }
  0x83   : > { %5768 = vmatprep.mubr.msk.f32.mxu1 %vm6607_vm1, %v9331_v35 }
  0x84   : > { %5674 = vmatmul.mubr.msk.f32.gmra.mxu0 %vm861_vm0, %v7058_v1 }
  0x85   : > { %5676 = vmatprep.mubr.msk.f32.mxu0 %vm6607_vm1, %v9331_v35 }
  0x86   : > { %5769 = vmatmul.mubr.msk.f32.gmra.mxu1 %vm861_vm0, %v7047_v0 }
  0x87   : > { %5771 = vmatprep.mubr.msk.f32.mxu1 %vm6607_vm1, %v9331_v35 }
  0x88   : > { %5677 = vmatmul.mubr.msk.f32.gmra.mxu0 %vm861_vm0, %v7069_v2 }
  0x89   : > { %5679 = vmatprep.mubr.msk.f32.mxu0 %vm6607_vm1, %v9331_v35 }
  0x8a   : > { %5772 = vmatmul.mubr.msk.f32.gmra.mxu1 %vm861_vm0, %v7058_v1 }
  0x8b   : > { %5774 = vmatprep.mubr.msk.f32.mxu1 %vm6607_vm1, %v9331_v35 }
  0x8c   : > { %5680 = vmatmul.mubr.msk.f32.gmra.mxu0 %vm861_vm0, %v7080_v3 }
  0x8d   : > { %5682 = vmatprep.mubr.msk.f32.mxu0 %vm6607_vm1, %v9331_v35 }
  0x8e   : > { %5775 = vmatmul.mubr.msk.f32.gmra.mxu1 %vm861_vm0, %v7069_v2 }
  0x8f   : > { %5777 = vmatprep.mubr.msk.f32.mxu1 %vm6607_vm1, %v9331_v35 }
  0x90   : > { %5683 = vmatmul.mubr.msk.f32.gmra.mxu0 %vm861_vm0, %v7091_v4 }
  0x91   : > { %5685 = vmatprep.mubr.msk.f32.mxu0 %vm6607_vm1, %v9331_v35 }
  0x92   : > { %5778 = vmatmul.mubr.msk.f32.gmra.mxu1 %vm861_vm0, %v7080_v3 }
  0x93   : > { %5780 = vmatprep.mubr.msk.f32.mxu1 %vm6607_vm1, %v9331_v35 }
  0x94   : > { %5686 = vmatmul.mubr.msk.f32.gmra.mxu0 %vm861_vm0, %v7102_v5 }
  0x95   : > { %5688 = vmatprep.mubr.msk.f32.mxu0 %vm6607_vm1, %v9331_v35 }
  0x96   : > { %5781 = vmatmul.mubr.msk.f32.gmra.mxu1 %vm861_vm0, %v7091_v4 }
  0x97   : > { %5783 = vmatprep.mubr.msk.f32.mxu1 %vm6607_vm1, %v9331_v35 }
  0x98   : > { %5689 = vmatmul.mubr.msk.f32.gmra.mxu0 %vm861_vm0, %v7113_v6 }
  0x99   : > { %5691 = vmatprep.mubr.msk.f32.mxu0 %vm6607_vm1, %v9331_v35 }
  0x9a   : > { %5784 = vmatmul.mubr.msk.f32.gmra.mxu1 %vm861_vm0, %v7102_v5 }
  0x9b   : > { %5786 = vmatprep.mubr.msk.f32.mxu1 %vm6607_vm1, %v9331_v35 }
  0x9c   : > { %5692 = vmatmul.mubr.msk.f32.gmra.mxu0 %vm861_vm0, %v7124_v7 }
  0x9d   : > { %5694 = vmatprep.mubr.msk.f32.mxu0 %vm6607_vm1, %v9331_v35 }
  0x9e   : > { %5787 = vmatmul.mubr.msk.f32.gmra.mxu1 %vm861_vm0, %v7113_v6 }
  0x9f   : > { %5789 = vmatprep.mubr.msk.f32.mxu1 %vm6607_vm1, %v9331_v35 }
  0xa0   : > { %5695 = vmatmul.mubr.msk.f32.gmra.mxu0 %vm861_vm0, %v7135_v8 }
  0xa1   : > { %5697 = vmatprep.mubr.msk.f32.mxu0 %vm6607_vm1, %v9331_v35 }
  0xa2   : > { %5790 = vmatmul.mubr.msk.f32.gmra.mxu1 %vm861_vm0, %v7124_v7 }
  0xa3   : > { %5792 = vmatprep.mubr.msk.f32.mxu1 %vm6607_vm1, %v9331_v35 }
  0xa4   : > { %5698 = vmatmul.mubr.msk.f32.gmra.mxu0 %vm861_vm0, %v7146_v9 }
  0xa5   : > { %5700 = vmatprep.mubr.msk.f32.mxu0 %vm6607_vm1, %v9331_v35 }
  0xa6   : > { %5793 = vmatmul.mubr.msk.f32.gmra.mxu1 %vm861_vm0, %v7135_v8 }
  0xa7   : > { %5795 = vmatprep.mubr.msk.f32.mxu1 %vm6607_vm1, %v9331_v35 }
  0xa8   : > { %5701 = vmatmul.mubr.msk.f32.gmra.mxu0 %vm861_vm0, %v7157_v10 }
  0xa9   : > { %5703 = vmatprep.mubr.msk.f32.mxu0 %vm6607_vm1, %v9331_v35 }
  0xaa   : > { %5796 = vmatmul.mubr.msk.f32.gmra.mxu1 %vm861_vm0, %v7146_v9 }
  0xab   : > { %5798 = vmatprep.mubr.msk.f32.mxu1 %vm6607_vm1, %v9331_v35 }
  0xac   : > { %5704 = vmatmul.mubr.msk.f32.gmra.mxu0 %vm861_vm0, %v7168_v11 }
  0xad   : > { %5706 = vmatprep.mubr.msk.f32.mxu0 %vm6607_vm1, %v9331_v35 }
  0xae   : > { %5799 = vmatmul.mubr.msk.f32.gmra.mxu1 %vm861_vm0, %v7157_v10 }
  0xaf   : > { %5801 = vmatprep.mubr.msk.f32.mxu1 %vm6607_vm1, %v9331_v35 }
  0xb0   : > { %5707 = vmatmul.mubr.msk.f32.gmra.mxu0 %vm861_vm0, %v7179_v12 }
  0xb1   : > { %5709 = vmatprep.mubr.msk.f32.mxu0 %vm6607_vm1, %v9331_v35 }
  0xb2   : > { %5802 = vmatmul.mubr.msk.f32.gmra.mxu1 %vm861_vm0, %v7168_v11 }
  0xb3   : > { %5804 = vmatprep.mubr.msk.f32.mxu1 %vm6607_vm1, %v9331_v35 }
  0xb4   : > { %5710 = vmatmul.mubr.msk.f32.gmra.mxu0 %vm861_vm0, %v7190_v13 }
  0xb5   : > { %5712 = vmatprep.mubr.msk.f32.mxu0 %vm6607_vm1, %v9331_v35 }
  0xb6   : > { %5805 = vmatmul.mubr.msk.f32.gmra.mxu1 %vm861_vm0, %v7179_v12 }
  0xb7   : > { %5807 = vmatprep.mubr.msk.f32.mxu1 %vm6607_vm1, %v9331_v35 }
  0xb8   : > { %5713 = vmatmul.mubr.msk.f32.gmra.mxu0 %vm861_vm0, %v7201_v14 }
  0xb9   : > { %5715 = vmatprep.mubr.msk.f32.mxu0 %vm6607_vm1, %v9331_v35 }
  0xba   : > { %5808 = vmatmul.mubr.msk.f32.gmra.mxu1 %vm861_vm0, %v7190_v13 }
  0xbb   : > { %5810 = vmatprep.mubr.msk.f32.mxu1 %vm6607_vm1, %v9331_v35 }
  0xbc   : > { %5716 = vmatmul.mubr.msk.f32.gmra.mxu0 %vm861_vm0, %v7212_v15 }
  0xbd   : > { %5821 = vmatprep.mubr.msk.f32.mxu0 %vm6607_vm1, %v9331_v35 }
  0xbe   : > { %5811 = vmatmul.mubr.msk.f32.gmra.mxu1 %vm861_vm0, %v7201_v14 }
  0xbf   : > { %5916 = vmatprep.mubr.msk.f32.mxu1 %vm6607_vm1, %v9331_v35 }
  0xc0   : > { %5822 = vmatmul.mubr.msk.f32.vlgmr.msra.gmra.mxu0 %vm861_vm0, %v6885_v45 }
  0xc1   : > { %6004 = vmatpush3.msra.mxu0 %v5062_v16  ;;  %5824 = vmatprep.mubr.msk.f32.mxu0 %vm6607_vm1, %v9331_v35 }
  0xc2   : > { %5917 = vmatmul.mubr.msk.f32.vlgmr.msra.gmra.mxu1 %vm861_vm0, %v6904_v48  ;;  %6005 = vmatprep.subr.mxu0 %v9331_v35 }
  0xc3   : > { %5919 = vmatprep.mubr.msk.f32.mxu1 %vm6607_vm1, %v9331_v35  ;;  %6006 = vmatpush3.msra.mxu0 %v5061_v17 }
  0xc4   : > { %5825 = vmatmul.mubr.msk.f32.gmra.mxu0 %vm861_vm0, %v6904_v48  ;;  %6007 = vmatprep.subr.mxu0 %v9331_v35 }
  0xc5   : > { %5827 = vmatprep.mubr.msk.f32.mxu0 %vm6607_vm1, %v9331_v35  ;;  %6008 = vmatpush3.msra.mxu0 %v5060_v18 }
  0xc6   : > { %5920 = vmatmul.mubr.msk.f32.gmra.mxu1 %vm861_vm0, %v6922_v51  ;;  %6009 = vmatprep.subr.mxu0 %v9331_v35 }
  0xc7   : > { %5922 = vmatprep.mubr.msk.f32.mxu1 %vm6607_vm1, %v9331_v35  ;;  %6010 = vmatpush3.msra.mxu0 %v5059_v19 }
  0xc8   : > { %5828 = vmatmul.mubr.msk.f32.gmra.mxu0 %vm861_vm0, %v6922_v51  ;;  %6204 = vmatprep.subr.mxu0 %v9331_v35 }
  0xc9   : > { %5830 = vmatprep.mubr.msk.f32.mxu0 %vm6607_vm1, %v9331_v35 }
  0xca   : > { %5923 = vmatmul.mubr.msk.f32.gmra.mxu1 %vm861_vm0, %v6941_v54 }
  0xcb   : > { %5925 = vmatprep.mubr.msk.f32.mxu1 %vm6607_vm1, %v9331_v35 }
  0xcc   : > { %5831 = vmatmul.mubr.msk.f32.gmra.mxu0 %vm861_vm0, %v6941_v54 }
  0xcd   : > { %5833 = vmatprep.mubr.msk.f32.mxu0 %vm6607_vm1, %v9331_v35 }
  0xce   : > { %5926 = vmatmul.mubr.msk.f32.gmra.mxu1 %vm861_vm0, %v6957_v56 }
  0xcf   : > { %5928 = vmatprep.mubr.msk.f32.mxu1 %vm6607_vm1, %v9331_v35 }
  0xd0   : > { %5834 = vmatmul.mubr.msk.f32.gmra.mxu0 %vm861_vm0, %v6957_v56 }
  0xd1   : > { %5836 = vmatprep.mubr.msk.f32.mxu0 %vm6607_vm1, %v9331_v35 }
  0xd2   : > { %5929 = vmatmul.mubr.msk.f32.gmra.mxu1 %vm861_vm0, %v6970_v57 }
  0xd3   : > { %5931 = vmatprep.mubr.msk.f32.mxu1 %vm6607_vm1, %v9331_v35 }
  0xd4   : > { %5837 = vmatmul.mubr.msk.f32.gmra.mxu0 %vm861_vm0, %v6970_v57 }
  0xd5   : > { %5839 = vmatprep.mubr.msk.f32.mxu0 %vm6607_vm1, %v9331_v35 }
  0xd6   : > { %5932 = vmatmul.mubr.msk.f32.gmra.mxu1 %vm861_vm0, %v6981_v58 }
  0xd7   : > { %5934 = vmatprep.mubr.msk.f32.mxu1 %vm6607_vm1, %v9331_v35 }
  0xd8   : > { %5840 = vmatmul.mubr.msk.f32.gmra.mxu0 %vm861_vm0, %v6981_v58 }
  0xd9   : > { %5842 = vmatprep.mubr.msk.f32.mxu0 %vm6607_vm1, %v9331_v35 }
  0xda   : > { %5935 = vmatmul.mubr.msk.f32.gmra.mxu1 %vm861_vm0, %v6992_v59 }
  0xdb   : > { %5937 = vmatprep.mubr.msk.f32.mxu1 %vm6607_vm1, %v9331_v35 }
  0xdc   : > { %5843 = vmatmul.mubr.msk.f32.gmra.mxu0 %vm861_vm0, %v6992_v59 }
  0xdd   : > { %5845 = vmatprep.mubr.msk.f32.mxu0 %vm6607_vm1, %v9331_v35 }
  0xde   : > { %5938 = vmatmul.mubr.msk.f32.gmra.mxu1 %vm861_vm0, %v7003_v60 }
  0xdf   : > { %5940 = vmatprep.mubr.msk.f32.mxu1 %vm6607_vm1, %v9331_v35 }
  0xe0   : > { %5846 = vmatmul.mubr.msk.f32.gmra.mxu0 %vm861_vm0, %v7003_v60 }
  0xe1   : > { %5848 = vmatprep.mubr.msk.f32.mxu0 %vm6607_vm1, %v9331_v35 }
  0xe2   : > { %5941 = vmatmul.mubr.msk.f32.gmra.mxu1 %vm861_vm0, %v7014_v61 }
  0xe3   : > { %5943 = vmatprep.mubr.msk.f32.mxu1 %vm6607_vm1, %v9331_v35 }
  0xe4   : > { %5849 = vmatmul.mubr.msk.f32.gmra.mxu0 %vm861_vm0, %v7014_v61 }
  0xe5   : > { %5851 = vmatprep.mubr.msk.f32.mxu0 %vm6607_vm1, %v9331_v35 }
  0xe6   : > { %5944 = vmatmul.mubr.msk.f32.gmra.mxu1 %vm861_vm0, %v7025_v62 }
  0xe7   : > { %5946 = vmatprep.mubr.msk.f32.mxu1 %vm6607_vm1, %v9331_v35 }
  0xe8   : > { %5852 = vmatmul.mubr.msk.f32.gmra.mxu0 %vm861_vm0, %v7025_v62 }
  0xe9   : > { %5854 = vmatprep.mubr.msk.f32.mxu0 %vm6607_vm1, %v9331_v35 }
  0xea   : > { %5947 = vmatmul.mubr.msk.f32.gmra.mxu1 %vm861_vm0, %v7036_v63 }
  0xeb   : > { %5949 = vmatprep.mubr.msk.f32.mxu1 %vm6607_vm1, %v9331_v35 }
  0xec   : > { %5855 = vmatmul.mubr.msk.f32.gmra.mxu0 %vm861_vm0, %v7036_v63 }
  0xed   : > { %5857 = vmatprep.mubr.msk.f32.mxu0 %vm6607_vm1, %v9331_v35 }
  0xee   : > { %5950 = vmatmul.mubr.msk.f32.gmra.mxu1 %vm861_vm0, %v7047_v0 }
  0xef   : > { %5952 = vmatprep.mubr.msk.f32.mxu1 %vm6607_vm1, %v9331_v35 }
  0xf0   : > { %5858 = vmatmul.mubr.msk.f32.gmra.mxu0 %vm861_vm0, %v7047_v0 }
  0xf1   : > { %5860 = vmatprep.mubr.msk.f32.mxu0 %vm6607_vm1, %v9331_v35 }
  0xf2   : > { %5953 = vmatmul.mubr.msk.f32.gmra.mxu1 %vm861_vm0, %v7058_v1 }
  0xf3   : > { %5955 = vmatprep.mubr.msk.f32.mxu1 %vm6607_vm1, %v9331_v35 }
  0xf4   : > { %5861 = vmatmul.mubr.msk.f32.gmra.mxu0 %vm861_vm0, %v7058_v1 }
  0xf5   : > { %5863 = vmatprep.mubr.msk.f32.mxu0 %vm6607_vm1, %v9331_v35 }
  0xf6   : > { %5956 = vmatmul.mubr.msk.f32.gmra.mxu1 %vm861_vm0, %v7069_v2 }
  0xf7   : > { %5958 = vmatprep.mubr.msk.f32.mxu1 %vm6607_vm1, %v9331_v35 }
  0xf8   : > { %5864 = vmatmul.mubr.msk.f32.gmra.mxu0 %vm861_vm0, %v7069_v2 }
  0xf9   : > { %5866 = vmatprep.mubr.msk.f32.mxu0 %vm6607_vm1, %v9331_v35 }
  0xfa   : > { %5959 = vmatmul.mubr.msk.f32.gmra.mxu1 %vm861_vm0, %v7080_v3 }
  0xfb   : > { %5961 = vmatprep.mubr.msk.f32.mxu1 %vm6607_vm1, %v9331_v35 }
  0xfc   : > { %5867 = vmatmul.mubr.msk.f32.gmra.mxu0 %vm861_vm0, %v7080_v3 }
  0xfd   : > { %5869 = vmatprep.mubr.msk.f32.mxu0 %vm6607_vm1, %v9331_v35 }
  0xfe   : > { %5962 = vmatmul.mubr.msk.f32.gmra.mxu1 %vm861_vm0, %v7091_v4 }
  0xff   : > { %5964 = vmatprep.mubr.msk.f32.mxu1 %vm6607_vm1, %v9331_v35 }
 0x100   : > { %5870 = vmatmul.mubr.msk.f32.gmra.mxu0 %vm861_vm0, %v7091_v4 }
 0x101   : > { %5872 = vmatprep.mubr.msk.f32.mxu0 %vm6607_vm1, %v9331_v35 }
 0x102   : > { %5965 = vmatmul.mubr.msk.f32.gmra.mxu1 %vm861_vm0, %v7102_v5 }
 0x103   : > { %5967 = vmatprep.mubr.msk.f32.mxu1 %vm6607_vm1, %v9331_v35 }
 0x104   : > { %5873 = vmatmul.mubr.msk.f32.gmra.mxu0 %vm861_vm0, %v7102_v5 }
 0x105   : > { %5875 = vmatprep.mubr.msk.f32.mxu0 %vm6607_vm1, %v9331_v35 }
 0x106   : > { %5968 = vmatmul.mubr.msk.f32.gmra.mxu1 %vm861_vm0, %v7113_v6 }
 0x107   : > { %5970 = vmatprep.mubr.msk.f32.mxu1 %vm6607_vm1, %v9331_v35 }
 0x108   : > { %5876 = vmatmul.mubr.msk.f32.gmra.mxu0 %vm861_vm0, %v7113_v6 }
 0x109   : > { %5878 = vmatprep.mubr.msk.f32.mxu0 %vm6607_vm1, %v9331_v35 }
 0x10a   : > { %5971 = vmatmul.mubr.msk.f32.gmra.mxu1 %vm861_vm0, %v7124_v7 }
 0x10b   : > { %5973 = vmatprep.mubr.msk.f32.mxu1 %vm6607_vm1, %v9331_v35 }
 0x10c   : > { %v1015_v20 = vpop.f32.mrf.mxu0  ;;  %5879 = vmatmul.mubr.msk.f32.gmra.mxu0 %vm861_vm0, %v7124_v7 }
 0x10d   : > { %5881 = vmatprep.mubr.msk.f32.mxu0 %vm6607_vm1, %v9331_v35  ;;  %v1312_v21 = vpop.f32.mrf.mxu1 }
 0x10e   : > { %v5633_v22 = vpop.f32.mrf.mxu0  ;;  %5974 = vmatmul.mubr.msk.f32.gmra.mxu1 %vm861_vm0, %v7135_v8  ;;  %v7400_v23 = vadd.f32 %v1312_v21, %v1015_v20 }
 0x10f   : > { %5976 = vmatprep.mubr.msk.f32.mxu1 %vm6607_vm1, %v9331_v35  ;;  %v5728_v24 = vpop.f32.mrf.mxu1  ;;  %v7475_v22 = vld [vmem:[%s6866_s20 + $0xf0] sm:$0xff] }
 0x110   : > { %v1020_v25 = vpop.f32.mrf.mxu0  ;;  %5882 = vmatmul.mubr.msk.f32.gmra.mxu0 %vm861_vm0, %v7135_v8 }
 0x111   : > { %5884 = vmatprep.mubr.msk.f32.mxu0 %vm6607_vm1, %v9331_v35 }
 0x112   : > { %v1317_v26 = vpop.f32.mrf.mxu1  ;;  %v5636_v27 = vpop.f32.mrf.mxu0  ;;  %5977 = vmatmul.mubr.msk.f32.gmra.mxu1 %vm861_vm0, %v7146_v9 }
 0x113   : > { %v7410_v28 = vadd.f32 %v1317_v26, %v1020_v25  ;;  %5979 = vmatprep.mubr.msk.f32.mxu1 %vm6607_vm1, %v9331_v35 }
 0x114   : > { %v5731_v29 = vpop.f32.mrf.mxu1  ;;  %v1025_v30 = vpop.f32.mrf.mxu0  ;;  %5885 = vmatmul.mubr.msk.f32.gmra.mxu0 %vm861_vm0, %v7146_v9 }
 0x115   : > { %5887 = vmatprep.mubr.msk.f32.mxu0 %vm6607_vm1, %v9331_v35 }
 0x116   : > { %v1322_v31 = vpop.f32.mrf.mxu1  ;;  %v5639_v32 = vpop.f32.mrf.mxu0  ;;  %5980 = vmatmul.mubr.msk.f32.gmra.mxu1 %vm861_vm0, %v7157_v10 }
 0x117   : > { %v7420_v33 = vadd.f32 %v1322_v31, %v1025_v30  ;;  %5982 = vmatprep.mubr.msk.f32.mxu1 %vm6607_vm1, %v9331_v35  ;;  %v7488_v30 = vld [vmem:[%s6866_s20 + $0xf8] sm:$0xff] }
 0x118   : > { %v5734_v34 = vpop.f32.mrf.mxu1  ;;  %v1030_v36 = vpop.f32.mrf.mxu0  ;;  %5888 = vmatmul.mubr.msk.f32.gmra.mxu0 %vm861_vm0, %v7157_v10 }
 0x119   : > { %5890 = vmatprep.mubr.msk.f32.mxu0 %vm6607_vm1, %v9331_v35 }
 0x11a   : > { %v1327_v37 = vpop.f32.mrf.mxu1  ;;  %v5642_v38 = vpop.f32.mrf.mxu0  ;;  %5983 = vmatmul.mubr.msk.f32.gmra.mxu1 %vm861_vm0, %v7168_v11 }
 0x11b   : > { %v7430_v39 = vadd.f32 %v1327_v37, %v1030_v36  ;;  %5985 = vmatprep.mubr.msk.f32.mxu1 %vm6607_vm1, %v9331_v35 }
 0x11c   : > { %v5737_v40 = vpop.f32.mrf.mxu1  ;;  %v1035_v41 = vpop.f32.mrf.mxu0  ;;  %5891 = vmatmul.mubr.msk.f32.gmra.mxu0 %vm861_vm0, %v7168_v11 }
 0x11d   : > { %5893 = vmatprep.mubr.msk.f32.mxu0 %vm6607_vm1, %v9331_v35 }
 0x11e   : > { %v1332_v42 = vpop.f32.mrf.mxu1  ;;  %v5645_v43 = vpop.f32.mrf.mxu0  ;;  %5986 = vmatmul.mubr.msk.f32.gmra.mxu1 %vm861_vm0, %v7179_v12 }
 0x11f   : > { %v7440_v44 = vadd.f32 %v1332_v42, %v1035_v41  ;;  %5988 = vmatprep.mubr.msk.f32.mxu1 %vm6607_vm1, %v9331_v35 }
 0x120   : > { %v5740_v45 = vpop.f32.mrf.mxu1  ;;  %v1040_v46 = vpop.f32.mrf.mxu0  ;;  %5894 = vmatmul.mubr.msk.f32.gmra.mxu0 %vm861_vm0, %v7179_v12 }
 0x121   : > { %5896 = vmatprep.mubr.msk.f32.mxu0 %vm6607_vm1, %v9331_v35 }
 0x122   : > { %v1337_v47 = vpop.f32.mrf.mxu1  ;;  %v5648_v48 = vpop.f32.mrf.mxu0  ;;  %5989 = vmatmul.mubr.msk.f32.gmra.mxu1 %vm861_vm0, %v7190_v13 }
 0x123   : > { %v7450_v49 = vadd.f32 %v1337_v47, %v1040_v46  ;;  %5991 = vmatprep.mubr.msk.f32.mxu1 %vm6607_vm1, %v9331_v35 }
 0x124   : > { %v5743_v50 = vpop.f32.mrf.mxu1  ;;  %v1045_v52 = vpop.f32.mrf.mxu0  ;;  %5897 = vmatmul.mubr.msk.f32.gmra.mxu0 %vm861_vm0, %v7190_v13 }
 0x125   : > { %5899 = vmatprep.mubr.msk.f32.mxu0 %vm6607_vm1, %v9331_v35 }
 0x126   : > { %v1342_v53 = vpop.f32.mrf.mxu1  ;;  %v5651_v55 = vpop.f32.mrf.mxu0  ;;  %5992 = vmatmul.mubr.msk.f32.gmra.mxu1 %vm861_vm0, %v7201_v14 }
 0x127   : > { %v7460_v16 = vadd.f32 %v1342_v53, %v1045_v52  ;;  %5994 = vmatprep.mubr.msk.f32.mxu1 %vm6607_vm1, %v9331_v35 }
 0x128   : > { %v5746_v17 = vpop.f32.mrf.mxu1  ;;  %v1050_v18 = vpop.f32.mrf.mxu0  ;;  %5900 = vmatmul.mubr.msk.f32.gmra.mxu0 %vm861_vm0, %v7201_v14 }
 0x129   : > { %5902 = vmatprep.mubr.msk.f32.mxu0 %vm6607_vm1, %v9331_v35 }
 0x12a   : > { %v1347_v19 = vpop.f32.mrf.mxu1  ;;  %v5654_v20 = vpop.f32.mrf.mxu0  ;;  %5995 = vmatmul.mubr.msk.f32.gmra.mxu1 %vm861_vm0, %v7212_v15 }
 0x12b   : > { %v7470_v21 = vadd.f32 %v1347_v19, %v1050_v18  ;;  %5997 = vmatprep.mubr.msk.f32.mxu1 %vm6607_vm1, %v9331_v35 }
 0x12c   : > { %v5749_v24 = vpop.f32.mrf.mxu1  ;;  %v1055_v25 = vpop.f32.mrf.mxu0  ;;  %5903 = vmatmul.mubr.msk.f32.gmra.mxu0 %vm861_vm0, %v7212_v15 }
 0x12d   : > { %5905 = vmatprep.mubr.msk.f32.mxu0 %vm6607_vm1, %v9331_v35 }
 0x12e   : > { %v1352_v26 = vpop.f32.mrf.mxu1  ;;  %v5657_v27 = vpop.f32.mrf.mxu0  ;;  %5998 = vmatmul.mubr.msk.f32.gmra.mxu1 %vm861_vm0, %v7475_v22 }
 0x12f   : > { %v7483_v29 = vadd.f32 %v1352_v26, %v1055_v25  ;;  %6000 = vmatprep.mubr.msk.f32.mxu1 %vm6607_vm1, %v9331_v35  ;;  %v5096_v26 = vld [vmem:[%s9377_s3 + $0x38] sm:$0xff] }
 0x130   : > { %v5752_v31 = vpop.f32.mrf.mxu1  ;;  %v1060_v32 = vpop.f32.mrf.mxu0  ;;  %5906 = vmatmul.mubr.msk.f32.gmra.mxu0 %vm861_vm0, %v7475_v22  ;;  %6099 = vmatpush3.msra.mxu1 %v5096_v26 }
 0x131   : > { %6011 = vmatprep.mubr.msk.f32.mxu0 %vm6607_vm1, %v9331_v35  ;;  %6100 = vmatprep.subr.mxu1 %v9331_v35 }
 0x132   : > { %v1357_v34 = vpop.f32.mrf.mxu1  ;;  %v5660_v36 = vpop.f32.mrf.mxu0  ;;  %6001 = vmatmul.mubr.msk.f32.gmra.mxu1 %vm861_vm0, %v7488_v30 }
 0x133   : > { %v7496_v37 = vadd.f32 %v1357_v34, %v1060_v32  ;;  %6106 = vmatprep.mubr.msk.f32.mxu1 %vm6607_vm1, %v9331_v35 }
 0x134   : > { %v5755_v38 = vpop.f32.mrf.mxu1  ;;  %v1065_v40 = vpop.f32.mrf.mxu0  ;;  %6012 = vmatmul.mubr.msk.f32.vlgmr.msra.gmra.mxu0 %vm861_vm0, %v6922_v51 }
 0x135   : > { %6014 = vmatprep.mubr.msk.f32.mxu0 %vm6607_vm1, %v9331_v35 }
 0x136   : > { %v1362_v41 = vpop.f32.mrf.mxu1  ;;  %v5663_v42 = vpop.f32.mrf.mxu0 }
 0x137   : > { %v7504_v43 = vadd.f32 %v1362_v41, %v1065_v40 }
 0x138   : > { %v5758_v45 = vpop.f32.mrf.mxu1  ;;  %v1070_v46 = vpop.f32.mrf.mxu0  ;;  %6015 = vmatmul.mubr.msk.f32.gmra.mxu0 %vm861_vm0, %v6941_v54 }
 0x139   : > { %6017 = vmatprep.mubr.msk.f32.mxu0 %vm6607_vm1, %v9331_v35 }
 0x13a   : > { %v1367_v47 = vpop.f32.mrf.mxu1  ;;  %v5666_v48 = vpop.f32.mrf.mxu0 }
 0x13b   : > { %v7510_v50 = vadd.f32 %v1367_v47, %v1070_v46 }
 0x13c   : > { %v5761_v51 = vpop.f32.mrf.mxu1  ;;  %v1075_v52 = vpop.f32.mrf.mxu0  ;;  %6018 = vmatmul.mubr.msk.f32.gmra.mxu0 %vm861_vm0, %v6957_v56 }
 0x13d   : > { %6020 = vmatprep.mubr.msk.f32.mxu0 %vm6607_vm1, %v9331_v35 }
 0x13e   : > { %v1372_v53 = vpop.f32.mrf.mxu1  ;;  %v5669_v55 = vpop.f32.mrf.mxu0 }
 0x13f   : > { %v7516_v17 = vadd.f32 %v1372_v53, %v1075_v52 }
 0x140   : > { %v5764_v54 = vpop.f32.mrf.mxu1  ;;  %v1080_v18 = vpop.f32.mrf.mxu0  ;;  %6021 = vmatmul.mubr.msk.f32.gmra.mxu0 %vm861_vm0, %v6970_v57 }
 0x141   : > { %6023 = vmatprep.mubr.msk.f32.mxu0 %vm6607_vm1, %v9331_v35 }
 0x142   : > { %v1377_v19 = vpop.f32.mrf.mxu1  ;;  %v5672_v20 = vpop.f32.mrf.mxu0 }
 0x143   : > { %v7522_v24 = vadd.f32 %v1377_v19, %v1080_v18 }
 0x144   : > { %v5767_v56 = vpop.f32.mrf.mxu1  ;;  %v1085_v25 = vpop.f32.mrf.mxu0  ;;  %6024 = vmatmul.mubr.msk.f32.gmra.mxu0 %vm861_vm0, %v6981_v58 }
 0x145   : > { %6026 = vmatprep.mubr.msk.f32.mxu0 %vm6607_vm1, %v9331_v35 }
 0x146   : > { %v1382_v57 = vpop.f32.mrf.mxu1  ;;  %v5675_v27 = vpop.f32.mrf.mxu0 }
 0x147   : > { %v7531_v31 = vadd.f32 %v1382_v57, %v1085_v25 }
 0x148   : > { %v5770_v32 = vpop.f32.mrf.mxu1  ;;  %v1090_v34 = vpop.f32.mrf.mxu0  ;;  %6027 = vmatmul.mubr.msk.f32.gmra.mxu0 %vm861_vm0, %v6992_v59 }
 0x149   : > { %6029 = vmatprep.mubr.msk.f32.mxu0 %vm6607_vm1, %v9331_v35 }
 0x14a   : > { %v1387_v58 = vpop.f32.mrf.mxu1  ;;  %v5678_v36 = vpop.f32.mrf.mxu0 }
 0x14b   : > { %v7538_v38 = vadd.f32 %v1387_v58, %v1090_v34  ;;  %v5095_v58 = vld [vmem:[%s9377_s3 + $0x30] sm:$0xff] }
 0x14c   : > { %v5773_v40 = vpop.f32.mrf.mxu1  ;;  %v1095_v41 = vpop.f32.mrf.mxu0  ;;  %6030 = vmatmul.mubr.msk.f32.gmra.mxu0 %vm861_vm0, %v7003_v60  ;;  %6101 = vmatpush3.msra.mxu1 %v5095_v58 }
 0x14d   : > { %6032 = vmatprep.mubr.msk.f32.mxu0 %vm6607_vm1, %v9331_v35  ;;  %6102 = vmatprep.subr.mxu1 %v9331_v35 }
 0x14e   : > { %v1392_v42 = vpop.f32.mrf.mxu1  ;;  %v5681_v45 = vpop.f32.mrf.mxu0 }
 0x14f   : > { %v7544_v46 = vadd.f32 %v1392_v42, %v1095_v41 }
 0x150   : > { %v5776_v59 = vpop.f32.mrf.mxu1  ;;  %v1100_v47 = vpop.f32.mrf.mxu0  ;;  %6033 = vmatmul.mubr.msk.f32.gmra.mxu0 %vm861_vm0, %v7014_v61 }
 0x151   : > { %6035 = vmatprep.mubr.msk.f32.mxu0 %vm6607_vm1, %v9331_v35 }
 0x152   : > { %v1397_v48 = vpop.f32.mrf.mxu1  ;;  %v5684_v51 = vpop.f32.mrf.mxu0 }
 0x153   : > { %v7550_v52 = vadd.f32 %v1397_v48, %v1100_v47 }
 0x154   : > { %v5779_v60 = vpop.f32.mrf.mxu1  ;;  %v1105_v53 = vpop.f32.mrf.mxu0  ;;  %6036 = vmatmul.mubr.msk.f32.gmra.mxu0 %vm861_vm0, %v7025_v62 }
 0x155   : > { %6038 = vmatprep.mubr.msk.f32.mxu0 %vm6607_vm1, %v9331_v35 }
 0x156   : > { %v1402_v55 = vpop.f32.mrf.mxu1  ;;  %v5687_v54 = vpop.f32.mrf.mxu0 }
 0x157   : > { %v7556_v18 = vadd.f32 %v1402_v55, %v1105_v53 }
 0x158   : > { %v5782_v61 = vpop.f32.mrf.mxu1  ;;  %v1110_v19 = vpop.f32.mrf.mxu0  ;;  %6039 = vmatmul.mubr.msk.f32.gmra.mxu0 %vm861_vm0, %v7036_v63 }
 0x159   : > { %6041 = vmatprep.mubr.msk.f32.mxu0 %vm6607_vm1, %v9331_v35 }
 0x15a   : > { %v1407_v20 = vpop.f32.mrf.mxu1  ;;  %v5690_v56 = vpop.f32.mrf.mxu0 }
 0x15b   : > { %v7562_v25 = vadd.f32 %v1407_v20, %v1110_v19 }
 0x15c   : > { %v5785_v62 = vpop.f32.mrf.mxu1  ;;  %v1115_v26 = vpop.f32.mrf.mxu0  ;;  %6042 = vmatmul.mubr.msk.f32.gmra.mxu0 %vm861_vm0, %v7047_v0 }
 0x15d   : > { %6044 = vmatprep.mubr.msk.f32.mxu0 %vm6607_vm1, %v9331_v35 }
 0x15e   : > { %v1412_v57 = vpop.f32.mrf.mxu1  ;;  %v5693_v27 = vpop.f32.mrf.mxu0 }
 0x15f   : > { %v7568_v32 = vadd.f32 %v1412_v57, %v1115_v26 }
 0x160   : > { %v5788_v63 = vpop.f32.mrf.mxu1  ;;  %v1120_v34 = vpop.f32.mrf.mxu0  ;;  %6045 = vmatmul.mubr.msk.f32.gmra.mxu0 %vm861_vm0, %v7058_v1 }
 0x161   : > { %6047 = vmatprep.mubr.msk.f32.mxu0 %vm6607_vm1, %v9331_v35 }
 0x162   : > { %v1417_v0 = vpop.f32.mrf.mxu1  ;;  %v5696_v36 = vpop.f32.mrf.mxu0 }
 0x163   : > { %v7577_v40 = vadd.f32 %v1417_v0, %v1120_v34 }
 0x164   : > { %v5791_v41 = vpop.f32.mrf.mxu1  ;;  %v1125_v42 = vpop.f32.mrf.mxu0  ;;  %6048 = vmatmul.mubr.msk.f32.gmra.mxu0 %vm861_vm0, %v7069_v2 }
 0x165   : > { %6050 = vmatprep.mubr.msk.f32.mxu0 %vm6607_vm1, %v9331_v35 }
 0x166   : > { %v1422_v1 = vpop.f32.mrf.mxu1  ;;  %v5699_v45 = vpop.f32.mrf.mxu0 }
 0x167   : > { %v7584_v59 = vadd.f32 %v1422_v1, %v1125_v42  ;;  %v5130_v1 = vld [vmem:[%s9377_s3 + $0x58] sm:$0xff] }
 0x168   : > { %v5794_v47 = vpop.f32.mrf.mxu1  ;;  %v1130_v48 = vpop.f32.mrf.mxu0  ;;  %6051 = vmatmul.mubr.msk.f32.gmra.mxu0 %vm861_vm0, %v7080_v3 }
 0x169   : > { %6053 = vmatprep.mubr.msk.f32.mxu0 %vm6607_vm1, %v9331_v35  ;;  %6205 = vmatpush3.msra.mxu0 %v5130_v1 }
 0x16a   : > { %v1427_v51 = vpop.f32.mrf.mxu1  ;;  %v5702_v60 = vpop.f32.mrf.mxu0  ;;  %6206 = vmatprep.subr.mxu0 %v9331_v35 }
 0x16b   : > { %v7590_v53 = vadd.f32 %v1427_v51, %v1130_v48  ;;  %v5129_v48 = vld [vmem:[%s9377_s3 + $0x50] sm:$0xff] }
 0x16c   : > { %v5797_v2 = vpop.f32.mrf.mxu1  ;;  %v1135_v55 = vpop.f32.mrf.mxu0  ;;  %6054 = vmatmul.mubr.msk.f32.gmra.mxu0 %vm861_vm0, %v7091_v4 }
 0x16d   : > { %6056 = vmatprep.mubr.msk.f32.mxu0 %vm6607_vm1, %v9331_v35  ;;  %v5094_v2 = vld [vmem:[%s9377_s3 + $0x28] sm:$0xff]  ;;  %6207 = vmatpush3.msra.mxu0 %v5129_v48 }
 0x16e   : > { %v1432_v54 = vpop.f32.mrf.mxu1  ;;  %v5705_v61 = vpop.f32.mrf.mxu0  ;;  %6103 = vmatpush3.msra.mxu1 %v5094_v2  ;;  %6208 = vmatprep.subr.mxu0 %v9331_v35 }
 0x16f   : > { %v7596_v19 = vadd.f32 %v1432_v54, %v1135_v55  ;;  %v5128_v55 = vld [vmem:[%s9377_s3 + $0x48] sm:$0xff]  ;;  %6104 = vmatprep.subr.mxu1 %v9331_v35 }
 0x170   : > { %v5800_v3 = vpop.f32.mrf.mxu1  ;;  %v1140_v20 = vpop.f32.mrf.mxu0  ;;  %6057 = vmatmul.mubr.msk.f32.gmra.mxu0 %vm861_vm0, %v7102_v5 }
 0x171   : > { %6059 = vmatprep.mubr.msk.f32.mxu0 %vm6607_vm1, %v9331_v35  ;;  %6209 = vmatpush3.msra.mxu0 %v5128_v55  ;;  %v5127_v3 = vld [vmem:[%s9377_s3 + $0x40] sm:$0xff] }
 0x172   : > { %v1437_v56 = vpop.f32.mrf.mxu1  ;;  %v5708_v62 = vpop.f32.mrf.mxu0  ;;  %6210 = vmatprep.subr.mxu0 %v9331_v35 }
 0x173   : > { %v7602_v26 = vadd.f32 %v1437_v56, %v1140_v20  ;;  %v2551_v62 = vld [vmem:[#allocation2 + $0x8] sm:$0xff]  ;;  %6211 = vmatpush3.msra.mxu0 %v5127_v3 }
 0x174   : > { %v5803_v4 = vpop.f32.mrf.mxu1  ;;  %v1145_v57 = vpop.f32.mrf.mxu0  ;;  %6060 = vmatmul.mubr.msk.f32.gmra.mxu0 %vm861_vm0, %v7113_v6  ;;  %6310 = vmatprep.subr.mxu0 %v9331_v35 }
 0x175   : > { %6062 = vmatprep.mubr.msk.f32.mxu0 %vm6607_vm1, %v9331_v35 }
 0x176   : > { %v1442_v27 = vpop.f32.mrf.mxu1  ;;  %v5711_v63 = vpop.f32.mrf.mxu0 }
 0x177   : > { %v7608_v34 = vadd.f32 %v1442_v27, %v1145_v57 }
 0x178   : > { %v5806_v5 = vpop.f32.mrf.mxu1  ;;  %v1150_v58 = vpop.f32.mrf.mxu0  ;;  %6063 = vmatmul.mubr.msk.f32.gmra.mxu0 %vm861_vm0, %v7124_v7 }
 0x179   : > { %6065 = vmatprep.mubr.msk.f32.mxu0 %vm6607_vm1, %v9331_v35 }
 0x17a   : > { %v1447_v0 = vpop.f32.mrf.mxu1  ;;  %v5714_v36 = vpop.f32.mrf.mxu0 }
 0x17b   : > { %v7614_v41 = vadd.f32 %v1447_v0, %v1150_v58 }
 0x17c   : > { %v5809_v6 = vpop.f32.mrf.mxu1  ;;  %v1155_v42 = vpop.f32.mrf.mxu0  ;;  %6066 = vmatmul.mubr.msk.f32.gmra.mxu0 %vm861_vm0, %v7135_v8 }
 0x17d   : > { %6068 = vmatprep.mubr.msk.f32.mxu0 %vm6607_vm1, %v9331_v35 }
 0x17e   : > { %v1452_v7 = vpop.f32.mrf.mxu1  ;;  %v5717_v45 = vpop.f32.mrf.mxu0 }
 0x17f   : > { %v7623_v47 = vadd.f32 %v1452_v7, %v1155_v42 }
 0x180   : > { %v5812_v51 = vpop.f32.mrf.mxu1  ;;  %v1614_v8 = vpop.f32.mrf.mxu0  ;;  %6069 = vmatmul.mubr.msk.f32.gmra.mxu0 %vm861_vm0, %v7146_v9 }
 0x181   : > { %v1758_v60 = vadd.f32 %v1614_v8, %v7400_v23  ;;  %6071 = vmatprep.mubr.msk.f32.mxu0 %vm6607_vm1, %v9331_v35  ;;  %v5093_v23 = vld [vmem:[%s9377_s3 + $0x20] sm:$0xff] }
 0x182   : > { %v5823_v54 = vpop.f32.mrf.mxu0  ;;  %v1945_v61 = vpop.f32.mrf.mxu1  ;;  %6105 = vmatpush3.msra.mxu1 %v5093_v23 }
 0x183   : > { %v7641_v9 = vadd.f32 %v1945_v61, %v1758_v60  ;;  %6107 = vmatmul.mubr.msk.f32.vlgmr.msra.gmra.mxu1 %vm861_vm0, %v2551_v62  ;;  %6151 = vmatprep.subr.mxu1 %v9331_v35 }
 0x184   : > { %v1619_v20 = vpop.f32.mrf.mxu0  ;;  %v5918_v56 = vpop.f32.mrf.mxu1  ;;  %6072 = vmatmul.mubr.msk.f32.gmra.mxu0 %vm861_vm0, %v7157_v10  ;;  %6109 = vmatprep.mubr.msk.f32.mxu1 %vm6607_vm1, %v9331_v35 }
 0x185   : > { %v1759_v4 = vadd.f32 %v1619_v20, %v7410_v28  ;;  %6074 = vmatprep.mubr.msk.f32.mxu0 %vm6607_vm1, %v9331_v35 }
 0x186   : > { %v5826_v57 = vpop.f32.mrf.mxu0  ;;  %v1950_v27 = vpop.f32.mrf.mxu1 }
 0x187   : > { %v7657_v63 = vadd.f32 %v1950_v27, %v1759_v4 }
 0x188   : > { %v1624_v10 = vpop.f32.mrf.mxu0  ;;  %v5921_v5 = vpop.f32.mrf.mxu1  ;;  %6075 = vmatmul.mubr.msk.f32.gmra.mxu0 %vm861_vm0, %v7168_v11 }
 0x189   : > { %v1760_v28 = vadd.f32 %v1624_v10, %v7420_v33  ;;  %6077 = vmatprep.mubr.msk.f32.mxu0 %vm6607_vm1, %v9331_v35 }
 0x18a   : > { %v5829_v58 = vpop.f32.mrf.mxu0  ;;  %v1955_v0 = vpop.f32.mrf.mxu1 }
 0x18b   : > { %v7668_v36 = vadd.f32 %v1955_v0, %v1760_v28 }
 0x18c   : > { %v1629_v6 = vpop.f32.mrf.mxu0  ;;  %v5924_v42 = vpop.f32.mrf.mxu1  ;;  %6078 = vmatmul.mubr.msk.f32.gmra.mxu0 %vm861_vm0, %v7179_v12 }
 0x18d   : > { %v1761_v1 = vadd.f32 %v1629_v6, %v7430_v39  ;;  %6080 = vmatprep.mubr.msk.f32.mxu0 %vm6607_vm1, %v9331_v35 }
 0x18e   : > { %v5832_v11 = vpop.f32.mrf.mxu0  ;;  %v1960_v7 = vpop.f32.mrf.mxu1 }
 0x18f   : > { %v7675_v33 = vadd.f32 %v1960_v7, %v1761_v1 }
 0x190   : > { %v1634_v45 = vpop.f32.mrf.mxu0  ;;  %v5927_v48 = vpop.f32.mrf.mxu1  ;;  %6081 = vmatmul.mubr.msk.f32.gmra.mxu0 %vm861_vm0, %v7190_v13 }
 0x191   : > { %v1762_v51 = vadd.f32 %v1634_v45, %v7440_v44  ;;  %6083 = vmatprep.mubr.msk.f32.mxu0 %vm6607_vm1, %v9331_v35 }
 0x192   : > { %v5835_v12 = vpop.f32.mrf.mxu0  ;;  %v1965_v8 = vpop.f32.mrf.mxu1 }
 0x193   : > { %v7682_v39 = vadd.f32 %v1965_v8, %v1762_v51 }
 0x194   : > { %v1639_v60 = vpop.f32.mrf.mxu0  ;;  %v5930_v2 = vpop.f32.mrf.mxu1  ;;  %6084 = vmatmul.mubr.msk.f32.gmra.mxu0 %vm861_vm0, %v7201_v14 }
 0x195   : > { %v1763_v55 = vadd.f32 %v1639_v60, %v7450_v49  ;;  %6086 = vmatprep.mubr.msk.f32.mxu0 %vm6607_vm1, %v9331_v35 }
 0x196   : > { %v5838_v13 = vpop.f32.mrf.mxu0  ;;  %v1970_v54 = vpop.f32.mrf.mxu1 }
 0x197   : > { %v7689_v44 = vadd.f32 %v1970_v54, %v1763_v55 }
 0x198   : > { %v1644_v61 = vpop.f32.mrf.mxu0  ;;  %v5933_v23 = vpop.f32.mrf.mxu1  ;;  %6087 = vmatmul.mubr.msk.f32.gmra.mxu0 %vm861_vm0, %v7212_v15 }
 0x199   : > { %v1764_v3 = vadd.f32 %v1644_v61, %v7460_v16  ;;  %6089 = vmatprep.mubr.msk.f32.mxu0 %vm6607_vm1, %v9331_v35 }
 0x19a   : > { %v5841_v14 = vpop.f32.mrf.mxu0  ;;  %v1975_v49 = vpop.f32.mrf.mxu1 }
 0x19b   : > { %v7696_v20 = vadd.f32 %v1975_v49, %v1764_v3 }
 0x19c   : > { %v1649_v56 = vpop.f32.mrf.mxu0  ;;  %v5936_v62 = vpop.f32.mrf.mxu1  ;;  %6090 = vmatmul.mubr.msk.f32.gmra.mxu0 %vm861_vm0, %v7475_v22  ;;  %v4930_v22 = vld [vmem:[%s6866_s20 + $0x100] sm:$0xff]  ;;  %s6610_s20 = smov 96  }
 0x19d   : > { %v1765_v4 = vadd.f32 %v1649_v56, %v7470_v21  ;;  %6092 = vmatprep.mubr.msk.f32.mxu0 %vm6607_vm1, %v9331_v35 }
 0x19e   : > { %v5844_v15 = vpop.f32.mrf.mxu0  ;;  %v1980_v16 = vpop.f32.mrf.mxu1 }
 0x19f   : > { %v7703_v57 = vadd.f32 %v1980_v16, %v1765_v4 }
 0x1a0   : > { %v1654_v27 = vpop.f32.mrf.mxu0  ;;  %v5939_v10 = vpop.f32.mrf.mxu1  ;;  %6093 = vmatmul.mubr.msk.f32.gmra.mxu0 %vm861_vm0, %v7488_v30 }
 0x1a1   : > { %v1766_v5 = vadd.f32 %v1654_v27, %v7483_v29  ;;  %6095 = vmatprep.mubr.msk.f32.mxu0 %vm6607_vm1, %v9331_v35 }
 0x1a2   : > { %v5847_v28 = vpop.f32.mrf.mxu0  ;;  %v1985_v21 = vpop.f32.mrf.mxu1 }
 0x1a3   : > { %v7711_v58 = vadd.f32 %v1985_v21, %v1766_v5 }
 0x1a4   : > { %v1659_v0 = vpop.f32.mrf.mxu0  ;;  %v5942_v6 = vpop.f32.mrf.mxu1  ;;  %6096 = vmatmul.mubr.msk.f32.gmra.mxu0 %vm861_vm0, %v4930_v22 }
 0x1a5   : > { %v1767_v42 = vadd.f32 %v1659_v0, %v7496_v37  ;;  %6212 = vmatprep.mubr.msk.f32.mxu0 %vm6607_vm1, %v9331_v35 }
 0x1a6   : > { %v5850_v30 = vpop.f32.mrf.mxu0  ;;  %v1990_v1 = vpop.f32.mrf.mxu1 }
 0x1a7   : > { %v7717_v29 = vadd.f32 %v1990_v1, %v1767_v42 }
 0x1a8   : > { %v1664_v11 = vpop.f32.mrf.mxu0  ;;  %v5945_v7 = vpop.f32.mrf.mxu1 }
 0x1a9   : > { %v1768_v45 = vadd.f32 %v1664_v11, %v7504_v43 }
 0x1aa   : > { %v5853_v48 = vpop.f32.mrf.mxu0  ;;  %v1995_v51 = vpop.f32.mrf.mxu1 }
 0x1ab   : > { %v7720_v12 = vadd.f32 %v1995_v51, %v1768_v45 }
 0x1ac   : > { %v1669_v8 = vpop.f32.mrf.mxu0  ;;  %v5948_v60 = vpop.f32.mrf.mxu1 }
 0x1ad   : > { %v1769_v2 = vadd.f32 %v1669_v8, %v7510_v50 }
 0x1ae   : > { %v5856_v37 = vpop.f32.mrf.mxu0  ;;  %v2000_v55 = vpop.f32.mrf.mxu1 }
 0x1af   : > { %v7723_v13 = vadd.f32 %v2000_v55, %v1769_v2 }
 0x1b0   : > { %v1674_v54 = vpop.f32.mrf.mxu0  ;;  %v5951_v61 = vpop.f32.mrf.mxu1 }
 0x1b1   : > { %v1770_v23 = vadd.f32 %v1674_v54, %v7516_v17 }
 0x1b2   : > { %v5859_v3 = vpop.f32.mrf.mxu0  ;;  %v2005_v14 = vpop.f32.mrf.mxu1 }
 0x1b3   : > { %v7726_v49 = vadd.f32 %v2005_v14, %v1770_v23  ;;  %v2585_v14 = vld [vmem:[%s9377_s3 + $0x10] sm:$0xff] }
 0x1b4   : > { %v1679_v43 = vpop.f32.mrf.mxu0  ;;  %v5954_v56 = vpop.f32.mrf.mxu1 }
 0x1b5   : > { %v1771_v62 = vadd.f32 %v1679_v43, %v7522_v24  ;;  %v2586_v24 = vld [vmem:[%s9377_s3 + $0x18] sm:$0xff] }
 0x1b6   : > { %v5862_v4 = vpop.f32.mrf.mxu0  ;;  %v2010_v15 = vpop.f32.mrf.mxu1  ;;  %6152 = vmatpush3.msra.mxu1 %v2586_v24 }
 0x1b7   : > { %v7729_v16 = vadd.f32 %v2010_v15, %v1771_v62  ;;  %6153 = vmatprep.subr.mxu1 %v9331_v35 }
 0x1b8   : > { %v1684_v50 = vpop.f32.mrf.mxu0  ;;  %v5957_v27 = vpop.f32.mrf.mxu1  ;;  %6154 = vmatpush3.msra.mxu1 %v2585_v14 }
 0x1b9   : > { %v1772_v10 = vadd.f32 %v1684_v50, %v7531_v31  ;;  %6155 = vmatprep.subr.mxu1 %v9331_v35 }
 0x1ba   : > { %v5865_v5 = vpop.f32.mrf.mxu0  ;;  %v2015_v22 = vpop.f32.mrf.mxu1 }
 0x1bb   : > { %v7732_v28 = vadd.f32 %v2015_v22, %v1772_v10 }
 0x1bc   : > { %v1689_v17 = vpop.f32.mrf.mxu0  ;;  %v5960_v21 = vpop.f32.mrf.mxu1 }
 0x1bd   : > { %v1773_v0 = vadd.f32 %v1689_v17, %v7538_v38 }
 0x1be   : > { %v5868_v6 = vpop.f32.mrf.mxu0  ;;  %v2020_v42 = vpop.f32.mrf.mxu1 }
 0x1bf   : > { %v7735_v30 = vadd.f32 %v2020_v42, %v1773_v0 }
 0x1c0   : > { %v1694_v1 = vpop.f32.mrf.mxu0  ;;  %v5963_v11 = vpop.f32.mrf.mxu1 }
 0x1c1   : > { %v1774_v31 = vadd.f32 %v1694_v1, %v7544_v46 }
 0x1c2   : > { %v5871_v7 = vpop.f32.mrf.mxu0  ;;  %v2025_v45 = vpop.f32.mrf.mxu1 }
 0x1c3   : > { %v7742_v48 = vadd.f32 %v2025_v45, %v1774_v31 }
 0x1c4   : > { %v1699_v38 = vpop.f32.mrf.mxu0  ;;  %v5966_v51 = vpop.f32.mrf.mxu1 }
 0x1c5   : > { %v1775_v8 = vadd.f32 %v1699_v38, %v7550_v52 }
 0x1c6   : > { %v5874_v60 = vpop.f32.mrf.mxu0  ;;  %v2030_v2 = vpop.f32.mrf.mxu1 }
 0x1c7   : > { %v7745_v37 = vadd.f32 %v2030_v2, %v1775_v8 }
 0x1c8   : > { %v1704_v55 = vpop.f32.mrf.mxu0  ;;  %v5969_v54 = vpop.f32.mrf.mxu1 }
 0x1c9   : > { %v1776_v61 = vadd.f32 %v1704_v55, %v7556_v18 }
 0x1ca   : > { %v5877_v23 = vpop.f32.mrf.mxu0  ;;  %v2035_v46 = vpop.f32.mrf.mxu1 }
 0x1cb   : > { %v7748_v3 = vadd.f32 %v2035_v46, %v1776_v61 }
 0x1cc   : > { %v1709_v43 = vpop.f32.mrf.mxu0  ;;  %v5972_v56 = vpop.f32.mrf.mxu1 }
 0x1cd   : > { %v1777_v52 = vadd.f32 %v1709_v43, %v7562_v25 }
 0x1ce   : > { %v5880_v62 = vpop.f32.mrf.mxu0  ;;  %v2040_v4 = vpop.f32.mrf.mxu1 }
 0x1cf   : > { %v7755_v15 = vadd.f32 %v2040_v4, %v1777_v52 }
 0x1d0   : > { %v1714_v18 = vpop.f32.mrf.mxu0  ;;  %v5975_v50 = vpop.f32.mrf.mxu1 }
 0x1d1   : > { %v1778_v27 = vadd.f32 %v1714_v18, %v7568_v32  ;;  %v2584_v32 = vld [vmem:[%s9377_s3 + $0x8] sm:$0xff] }
 0x1d2   : > { %v5883_v10 = vpop.f32.mrf.mxu0  ;;  %v2045_v5 = vpop.f32.mrf.mxu1  ;;  %6156 = vmatpush3.msra.mxu1 %v2584_v32 }
 0x1d3   : > { %v7758_v22 = vadd.f32 %v2045_v5, %v1778_v27  ;;  %6157 = vmatprep.subr.mxu1 %v9331_v35 }
 0x1d4   : > { %v1719_v17 = vpop.f32.mrf.mxu0  ;;  %v5978_v21 = vpop.f32.mrf.mxu1 }
 0x1d5   : > { %v1779_v0 = vadd.f32 %v1719_v17, %v7577_v40 }
 0x1d6   : > { %v5886_v6 = vpop.f32.mrf.mxu0  ;;  %v2050_v25 = vpop.f32.mrf.mxu1 }
 0x1d7   : > { %v7761_v42 = vadd.f32 %v2050_v25, %v1779_v0 }
 0x1d8   : > { %v1724_v24 = vpop.f32.mrf.mxu0  ;;  %v5981_v1 = vpop.f32.mrf.mxu1 }
 0x1d9   : > { %v1780_v11 = vadd.f32 %v1724_v24, %v7584_v59 }
 0x1da   : > { %v5889_v31 = vpop.f32.mrf.mxu0  ;;  %v2055_v7 = vpop.f32.mrf.mxu1 }
 0x1db   : > { %v7764_v45 = vadd.f32 %v2055_v7, %v1780_v11 }
 0x1dc   : > { %v1729_v38 = vpop.f32.mrf.mxu0  ;;  %v5984_v51 = vpop.f32.mrf.mxu1 }
 0x1dd   : > { %v1781_v40 = vadd.f32 %v1729_v38, %v7590_v53  ;;  %v7795_v38 = vld [vmem:[%s9378_s2] ss:$0 sm:$0xff]  ;;  %s6609_s2 = smov 64  }
 0x1de   : > { %v5892_v8 = vpop.f32.mrf.mxu0  ;;  %v2060_v60 = vpop.f32.mrf.mxu1 }
 0x1df   : > { %v7771_v2 = vadd.f32 %v2060_v60, %v1781_v40 }
 0x1e0   : > { %v1734_v59 = vpop.f32.mrf.mxu0  ;;  %v5987_v55 = vpop.f32.mrf.mxu1 }
 0x1e1   : > { %v1782_v54 = vadd.f32 %v1734_v59, %v7596_v19  ;;  %v2583_v19 = vld [vmem:[%s9377_s3] sm:$0xff] }
 0x1e2   : > { %v5895_v61 = vpop.f32.mrf.mxu0  ;;  %v2065_v23 = vpop.f32.mrf.mxu1  ;;  %6158 = vmatpush3.msra.mxu1 %v2583_v19  ;;  %v5166_v19 = vld [vmem:[%s9377_s3 + $0x88] sm:$0xff] }
 0x1e3   : > { %v7774_v46 = vadd.f32 %v2065_v23, %v1782_v54  ;;  %6257 = vmatprep.subr.mxu1 %v9331_v35 }
 0x1e4   : > { %v1739_v14 = vpop.f32.mrf.mxu0  ;;  %v5990_v43 = vpop.f32.mrf.mxu1 }
 0x1e5   : > { %v1783_v56 = vadd.f32 %v1739_v14, %v7602_v26 }
 0x1e6   : > { %v5898_v52 = vpop.f32.mrf.mxu0  ;;  %v2070_v53 = vpop.f32.mrf.mxu1 }
 0x1e7   : > { %v7777_v62 = vadd.f32 %v2070_v53, %v1783_v56  ;;  %v5168_v53 = vld [vmem:[%s9377_s3 + $0x98] sm:$0xff] }
 0x1e8   : > { %v1744_v4 = vpop.f32.mrf.mxu0  ;;  %v5993_v18 = vpop.f32.mrf.mxu1 }
 0x1e9   : > { %v1784_v50 = vadd.f32 %v1744_v4, %v7608_v34 }
 0x1ea   : > { %v5901_v27 = vpop.f32.mrf.mxu0  ;;  %v2075_v10 = vpop.f32.mrf.mxu1 }
 0x1eb   : > { %v7780_v5 = vadd.f32 %v2075_v10, %v1784_v50 }
 0x1ec   : > { %v1749_v17 = vpop.f32.mrf.mxu0  ;;  %v5996_v21 = vpop.f32.mrf.mxu1 }
 0x1ed   : > { %v1785_v26 = vadd.f32 %v1749_v17, %v7614_v41 }
 0x1ee   : > { %v5904_v0 = vpop.f32.mrf.mxu0  ;;  %v2080_v6 = vpop.f32.mrf.mxu1 }
 0x1ef   : > { %v7787_v25 = vadd.f32 %v2080_v6, %v1785_v26 }
 0x1f0   : > { %v1754_v34 = vpop.f32.mrf.mxu0  ;;  %v5999_v24 = vpop.f32.mrf.mxu1 }
 0x1f1   : > { %v1786_v1 = vadd.f32 %v1754_v34, %v7623_v47 }
 0x1f2   : > { %v5907_v11 = vpop.f32.mrf.mxu0  ;;  %v2085_v31 = vpop.f32.mrf.mxu1 }
 0x1f3   : > { %v7790_v7 = vadd.f32 %v2085_v31, %v1786_v1 }
 0x1f4   : > { %v2276_v32 = vpop.f32.mrf.mxu0  ;;  %v6002_v41 = vpop.f32.mrf.mxu1 }
 0x1f5   : > { %v2420_v51 = vadd.f32 %v2276_v32, %v7641_v9 }
 0x1f6   : > { %v6013_v40 = vpop.f32.mrf.mxu0 }
 0x1f7   : > { %v7799_v8 = vadd.f32 %v7795_v38, %v2420_v51 }
 0x1f8   : > { %v2281_v60 = vpop.f32.mrf.mxu0 }
 0x1f9   : > { %9379 = vst [vmem:[#allocation10_spill] sm:$0xff] %v7799_v8  ;;  %v9305_v47 = vmax.f32 %v7799_v8, 0.0  ;;  %v2421_v59 = vadd.f32 %v2281_v60, %v7657_v63 }
 0x1fa   : > { %v6016_v55 = vpop.f32.mrf.mxu0 }
 0x1fb   : > { %2517 = vst.msk [vmem:[#allocation2 + $0x10] sm:$0xff] %vm861_vm0, %v9305_v47  ;;  %v7807_v54 = vadd.f32 %v7795_v38, %v2421_v59 }
 0x1fc   : > { %v2286_v61 = vpop.f32.mrf.mxu0 }
 0x1fd   : > { %9380 = vst [vmem:[#allocation11_spill] sm:$0xff] %v7807_v54  ;;  %v9328_v9 = vmax.f32 %v7807_v54, 0.0  ;;  %v2422_v23 = vadd.f32 %v2286_v61, %v7668_v36 }
 0x1fe   : > { %v6019_v14 = vpop.f32.mrf.mxu0 }
 0x1ff   : > { %2518 = vst.msk [vmem:[#allocation2 + $0x18] sm:$0xff] %vm861_vm0, %v9328_v9  ;;  %v7815_v63 = vadd.f32 %v7795_v38, %v2422_v23 }
 0x200   : > { %v2291_v43 = vpop.f32.mrf.mxu0 }
 0x201   : > { %9381 = vst [vmem:[#allocation12_spill] sm:$0xff] %v7815_v63  ;;  %v9324_v56 = vmax.f32 %v7815_v63, 0.0  ;;  %v2423_v52 = vadd.f32 %v2291_v43, %v7675_v33  ;;  %v5167_v33 = vld [vmem:[%s9377_s3 + $0x90] sm:$0xff] }
 0x202   : > { %v6022_v4 = vpop.f32.mrf.mxu0  ;;  %v7822_v18 = vld [vmem:[#allocation2 + $0x10] sm:$0xff] }
 0x203   : > { %2519 = vst.msk [vmem:[#allocation2 + $0x20] sm:$0xff] %vm861_vm0, %v9324_v56  ;;  %v7828_v36 = vadd.f32 %v7795_v38, %v2423_v52  ;;  %6213 = vmatmul.mubr.msk.f32.vlgmr.msra.gmra.mxu0 %vm861_vm0, %v7822_v18 }
 0x204   : > { %v2296_v50 = vpop.f32.mrf.mxu0  ;;  %6215 = vmatprep.mubr.msk.f32.mxu0 %vm6607_vm1, %v9331_v35  ;;  %6311 = vmatpush3.msra.mxu0 %v5168_v53 }
 0x205   : > { %9382 = vst [vmem:[#allocation13_spill] sm:$0xff] %v7828_v36  ;;  %v9310_v27 = vmax.f32 %v7828_v36, 0.0  ;;  %v2424_v10 = vadd.f32 %v2296_v50, %v7682_v39  ;;  %6312 = vmatprep.subr.mxu0 %v9331_v35  ;;  %v5165_v39 = vld [vmem:[%s9377_s3 + $0x80] sm:$0xff] }
 0x206   : > { %v6025_v17 = vpop.f32.mrf.mxu0  ;;  %v7843_v21 = vld [vmem:[#allocation2 + $0x18] sm:$0xff]  ;;  %6313 = vmatpush3.msra.mxu0 %v5167_v33 }
 0x207   : > { %2520 = vst.msk [vmem:[#allocation2 + $0x28] sm:$0xff] %vm861_vm0, %v9310_v27  ;;  %v7849_v26 = vadd.f32 %v7795_v38, %v2424_v10  ;;  %6110 = vmatmul.mubr.msk.f32.gmra.mxu1 %vm861_vm0, %v7843_v21  ;;  %6314 = vmatprep.subr.mxu0 %v9331_v35 }
 0x208   : > { %v2301_v0 = vpop.f32.mrf.mxu0  ;;  %6112 = vmatprep.mubr.msk.f32.mxu1 %vm6607_vm1, %v9331_v35  ;;  %6315 = vmatpush3.msra.mxu0 %v5166_v19 }
 0x209   : > { %9383 = vst [vmem:[#allocation14_spill] sm:$0xff] %v7849_v26  ;;  %v9306_v6 = vmax.f32 %v7849_v26, 0.0  ;;  %v2425_v34 = vadd.f32 %v2301_v0, %v7689_v44  ;;  %6316 = vmatprep.subr.mxu0 %v9331_v35 }
 0x20a   : > { %v6028_v24 = vpop.f32.mrf.mxu0  ;;  %v7862_v1 = vld [vmem:[#allocation2 + $0x20] sm:$0xff]  ;;  %6317 = vmatpush3.msra.mxu0 %v5165_v39 }
 0x20b   : > { %2521 = vst.msk [vmem:[#allocation2 + $0x30] sm:$0xff] %vm861_vm0, %v9306_v6  ;;  %v7868_v11 = vadd.f32 %v7795_v38, %v2425_v34  ;;  %6216 = vmatmul.mubr.msk.f32.gmra.mxu0 %vm861_vm0, %v7862_v1 }
 0x20c   : > { %v2306_v31 = vpop.f32.mrf.mxu0  ;;  %6218 = vmatprep.mubr.msk.f32.mxu0 %vm6607_vm1, %v9331_v35 }
 0x20d   : > { %9384 = vst [vmem:[#allocation15_spill] sm:$0xff] %v7868_v11  ;;  %v9326_v44 = vmax.f32 %v7868_v11, 0.0  ;;  %v2426_v32 = vadd.f32 %v2306_v31, %v7696_v20 }
 0x20e   : > { %v6031_v41 = vpop.f32.mrf.mxu0  ;;  %v7876_v51 = vld [vmem:[#allocation2 + $0x28] sm:$0xff] }
 0x20f   : > { %2522 = vst.msk [vmem:[#allocation2 + $0x38] sm:$0xff] %vm861_vm0, %v9326_v44  ;;  %v7882_v40 = vadd.f32 %v7795_v38, %v2426_v32  ;;  %6113 = vmatmul.mubr.msk.f32.gmra.mxu1 %vm861_vm0, %v7876_v51 }
 0x210   : > { %v2311_v60 = vpop.f32.mrf.mxu0  ;;  %6115 = vmatprep.mubr.msk.f32.mxu1 %vm6607_vm1, %v9331_v35 }
 0x211   : > { %9385 = vst [vmem:[#allocation16_spill] sm:$0xff] %v7882_v40  ;;  %v9314_v59 = vmax.f32 %v7882_v40, 0.0  ;;  %v2427_v20 = vadd.f32 %v2311_v60, %v7703_v57 }
 0x212   : > { %v6034_v55 = vpop.f32.mrf.mxu0  ;;  %v7890_v61 = vld [vmem:[#allocation2 + $0x30] sm:$0xff] }
 0x213   : > { %2523 = vst.msk [vmem:[#allocation2 + $0x40] sm:$0xff] %vm861_vm0, %v9314_v59  ;;  %v7896_v23 = vadd.f32 %v7795_v38, %v2427_v20  ;;  %6219 = vmatmul.mubr.msk.f32.gmra.mxu0 %vm861_vm0, %v7890_v61 }
 0x214   : > { %v2316_v14 = vpop.f32.mrf.mxu0  ;;  %6221 = vmatprep.mubr.msk.f32.mxu0 %vm6607_vm1, %v9331_v35 }
 0x215   : > { %9386 = vst [vmem:[#allocation17_spill] sm:$0xff] %v7896_v23  ;;  %v9311_v43 = vmax.f32 %v7896_v23, 0.0  ;;  %v2428_v57 = vadd.f32 %v2316_v14, %v7711_v58 }
 0x216   : > { %v6037_v52 = vpop.f32.mrf.mxu0  ;;  %v7904_v53 = vld [vmem:[#allocation2 + $0x38] sm:$0xff] }
 0x217   : > { %2524 = vst.msk [vmem:[#allocation2 + $0x48] sm:$0xff] %vm861_vm0, %v9311_v43  ;;  %v7910_v4 = vadd.f32 %v7795_v38, %v2428_v57  ;;  %6116 = vmatmul.mubr.msk.f32.gmra.mxu1 %vm861_vm0, %v7904_v53 }
 0x218   : > { %v2321_v33 = vpop.f32.mrf.mxu0  ;;  %6118 = vmatprep.mubr.msk.f32.mxu1 %vm6607_vm1, %v9331_v35 }
 0x219   : > { %9387 = vst [vmem:[#allocation18_spill] sm:$0xff] %v7910_v4  ;;  %v9303_v50 = vmax.f32 %v7910_v4, 0.0  ;;  %v2429_v58 = vadd.f32 %v2321_v33, %v7717_v29 }
 0x21a   : > { %v6040_v10 = vpop.f32.mrf.mxu0  ;;  %v7918_v19 = vld [vmem:[#allocation2 + $0x40] sm:$0xff] }
 0x21b   : > { %2525 = vst.msk [vmem:[#allocation2 + $0x50] sm:$0xff] %vm861_vm0, %v9303_v50  ;;  %v7924_v17 = vadd.f32 %v7795_v38, %v2429_v58  ;;  %6222 = vmatmul.mubr.msk.f32.gmra.mxu0 %vm861_vm0, %v7918_v19 }
 0x21c   : > { %v2326_v39 = vpop.f32.mrf.mxu0  ;;  %6224 = vmatprep.mubr.msk.f32.mxu0 %vm6607_vm1, %v9331_v35 }
 0x21d   : > { %9388 = vst [vmem:[#allocation19_spill] sm:$0xff] %v7924_v17  ;;  %v9320_v0 = vmax.f32 %v7924_v17, 0.0  ;;  %v2430_v29 = vadd.f32 %v2326_v39, %v7720_v12 }
 0x21e   : > { %v6043_v34 = vpop.f32.mrf.mxu0  ;;  %v7932_v24 = vld [vmem:[#allocation2 + $0x48] sm:$0xff] }
 0x21f   : > { %2526 = vst.msk [vmem:[#allocation2 + $0x58] sm:$0xff] %vm861_vm0, %v9320_v0  ;;  %v7938_v31 = vadd.f32 %v7795_v38, %v2430_v29  ;;  %6119 = vmatmul.mubr.msk.f32.gmra.mxu1 %vm861_vm0, %v7932_v24 }
 0x220   : > { %v2331_v32 = vpop.f32.mrf.mxu0  ;;  %6121 = vmatprep.mubr.msk.f32.mxu1 %vm6607_vm1, %v9331_v35 }
 0x221   : > { %9389 = vst [vmem:[#allocation20_spill] sm:$0xff] %v7938_v31  ;;  %v9315_v41 = vmax.f32 %v7938_v31, 0.0  ;;  %v2431_v12 = vadd.f32 %v2331_v32, %v7723_v13 }
 0x222   : > { %v6046_v60 = vpop.f32.mrf.mxu0  ;;  %v7946_v20 = vld [vmem:[#allocation2 + $0x50] sm:$0xff] }
 0x223   : > { %2527 = vst.msk [vmem:[#allocation2 + $0x60] sm:$0xff] %vm861_vm0, %v9315_v41  ;;  %v7952_v55 = vadd.f32 %v7795_v38, %v2431_v12  ;;  %6225 = vmatmul.mubr.msk.f32.gmra.mxu0 %vm861_vm0, %v7946_v20 }
 0x224   : > { %v2336_v14 = vpop.f32.mrf.mxu0  ;;  %6227 = vmatprep.mubr.msk.f32.mxu0 %vm6607_vm1, %v9331_v35 }
 0x225   : > { %9390 = vst [vmem:[#allocation21_spill] sm:$0xff] %v7952_v55  ;;  %v9307_v57 = vmax.f32 %v7952_v55, 0.0  ;;  %v2432_v13 = vadd.f32 %v2336_v14, %v7726_v49 }
 0x226   : > { %v6049_v52 = vpop.f32.mrf.mxu0  ;;  %v7960_v33 = vld [vmem:[#allocation2 + $0x58] sm:$0xff] }
 0x227   : > { %2528 = vst.msk [vmem:[#allocation2 + $0x68] sm:$0xff] %vm861_vm0, %v9307_v57  ;;  %v7966_v58 = vadd.f32 %v7795_v38, %v2432_v13  ;;  %6122 = vmatmul.mubr.msk.f32.gmra.mxu1 %vm861_vm0, %v7960_v33 }
 0x228   : > { %v2341_v10 = vpop.f32.mrf.mxu0  ;;  %6124 = vmatprep.mubr.msk.f32.mxu1 %vm6607_vm1, %v9331_v35 }
 0x229   : > { %9391 = vst [vmem:[#allocation22_spill] sm:$0xff] %v7966_v58  ;;  %v9304_v39 = vmax.f32 %v7966_v58, 0.0  ;;  %v2433_v49 = vadd.f32 %v2341_v10, %v7729_v16 }
 0x22a   : > { %v6052_v29 = vpop.f32.mrf.mxu0  ;;  %v7974_v34 = vld [vmem:[#allocation2 + $0x60] sm:$0xff] }
 0x22b   : > { %2529 = vst.msk [vmem:[#allocation2 + $0x70] sm:$0xff] %vm861_vm0, %v9304_v39  ;;  %v7980_v32 = vadd.f32 %v7795_v38, %v2433_v49  ;;  %6228 = vmatmul.mubr.msk.f32.gmra.mxu0 %vm861_vm0, %v7974_v34 }
 0x22c   : > { %v2346_v12 = vpop.f32.mrf.mxu0  ;;  %6230 = vmatprep.mubr.msk.f32.mxu0 %vm6607_vm1, %v9331_v35 }
 0x22d   : > { %9392 = vst [vmem:[#allocation23_spill] sm:$0xff] %v7980_v32  ;;  %v9322_v60 = vmax.f32 %v7980_v32, 0.0  ;;  %v2434_v16 = vadd.f32 %v2346_v12, %v7732_v28 }
 0x22e   : > { %v6055_v14 = vpop.f32.mrf.mxu0  ;;  %v7988_v13 = vld [vmem:[#allocation2 + $0x68] sm:$0xff] }
 0x22f   : > { %2530 = vst.msk [vmem:[#allocation2 + $0x78] sm:$0xff] %vm861_vm0, %v9322_v60  ;;  %v7994_v52 = vadd.f32 %v7795_v38, %v2434_v16  ;;  %6125 = vmatmul.mubr.msk.f32.gmra.mxu1 %vm861_vm0, %v7988_v13 }
 0x230   : > { %v2351_v10 = vpop.f32.mrf.mxu0  ;;  %6127 = vmatprep.mubr.msk.f32.mxu1 %vm6607_vm1, %v9331_v35 }
 0x231   : > { %9393 = vst [vmem:[#allocation24_spill] sm:$0xff] %v7994_v52  ;;  %v9312_v49 = vmax.f32 %v7994_v52, 0.0  ;;  %v2435_v28 = vadd.f32 %v2351_v10, %v7735_v30 }
 0x232   : > { %v6058_v29 = vpop.f32.mrf.mxu0  ;;  %v8002_v12 = vld [vmem:[#allocation2 + $0x70] sm:$0xff] }
 0x233   : > { %2531 = vst.msk [vmem:[#allocation2 + $0x80] sm:$0xff] %vm861_vm0, %v9312_v49  ;;  %v8008_v16 = vadd.f32 %v7795_v38, %v2435_v28  ;;  %6231 = vmatmul.mubr.msk.f32.gmra.mxu0 %vm861_vm0, %v8002_v12 }
 0x234   : > { %v2356_v14 = vpop.f32.mrf.mxu0  ;;  %6233 = vmatprep.mubr.msk.f32.mxu0 %vm6607_vm1, %v9331_v35 }
 0x235   : > { %9394 = vst [vmem:[#allocation25_spill] sm:$0xff] %v8008_v16  ;;  %v9309_v50 = vmax.f32 %v8008_v16, 0.0  ;;  %v2436_v30 = vadd.f32 %v2356_v14, %v7742_v48 }
 0x236   : > { %v6061_v10 = vpop.f32.mrf.mxu0  ;;  %v8016_v29 = vld [vmem:[#allocation2 + $0x78] sm:$0xff] }
 0x237   : > { %2532 = vst.msk [vmem:[#allocation2 + $0x88] sm:$0xff] %vm861_vm0, %v9309_v50  ;;  %v8022_v28 = vadd.f32 %v7795_v38, %v2436_v30  ;;  %6128 = vmatmul.mubr.msk.f32.gmra.mxu1 %vm861_vm0, %v8016_v29 }
 0x238   : > { %v2361_v39 = vpop.f32.mrf.mxu0  ;;  %6130 = vmatprep.mubr.msk.f32.mxu1 %vm6607_vm1, %v9331_v35 }
 0x239   : > { %9395 = vst [vmem:[#allocation26_spill] sm:$0xff] %v8022_v28  ;;  %v9308_v47 = vmax.f32 %v8022_v28, 0.0  ;;  %v2437_v48 = vadd.f32 %v2361_v39, %v7745_v37 }
 0x23a   : > { %v6064_v14 = vpop.f32.mrf.mxu0  ;;  %v8030_v10 = vld [vmem:[#allocation2 + $0x80] sm:$0xff] }
 0x23b   : > { %2533 = vst.msk [vmem:[#allocation2 + $0x90] sm:$0xff] %vm861_vm0, %v9308_v47  ;;  %v8036_v30 = vadd.f32 %v7795_v38, %v2437_v48  ;;  %6234 = vmatmul.mubr.msk.f32.gmra.mxu0 %vm861_vm0, %v8030_v10 }
 0x23c   : > { %v2366_v6 = vpop.f32.mrf.mxu0  ;;  %6236 = vmatprep.mubr.msk.f32.mxu0 %vm6607_vm1, %v9331_v35 }
 0x23d   : > { %9396 = vst [vmem:[#allocation27_spill] sm:$0xff] %v8036_v30  ;;  %v9318_v57 = vmax.f32 %v8036_v30, 0.0  ;;  %v2438_v37 = vadd.f32 %v2366_v6, %v7748_v3 }
 0x23e   : > { %v6067_v39 = vpop.f32.mrf.mxu0  ;;  %v8044_v14 = vld [vmem:[#allocation2 + $0x88] sm:$0xff] }
 0x23f   : > { %2534 = vst.msk [vmem:[#allocation2 + $0x98] sm:$0xff] %vm861_vm0, %v9318_v57  ;;  %v8050_v48 = vadd.f32 %v7795_v38, %v2438_v37  ;;  %6131 = vmatmul.mubr.msk.f32.gmra.mxu1 %vm861_vm0, %v8044_v14 }
 0x240   : > { %v2371_v47 = vpop.f32.mrf.mxu0  ;;  %6133 = vmatprep.mubr.msk.f32.mxu1 %vm6607_vm1, %v9331_v35 }
 0x241   : > { %9397 = vst [vmem:[#allocation28_spill] sm:$0xff] %v8050_v48  ;;  %v9313_v50 = vmax.f32 %v8050_v48, 0.0  ;;  %v2439_v3 = vadd.f32 %v2371_v47, %v7755_v15 }
 0x242   : > { %v6070_v6 = vpop.f32.mrf.mxu0  ;;  %v8058_v39 = vld [vmem:[#allocation2 + $0x90] sm:$0xff] }
 0x243   : > { %2535 = vst.msk [vmem:[#allocation2 + $0xa0] sm:$0xff] %vm861_vm0, %v9313_v50  ;;  %v8064_v37 = vadd.f32 %v7795_v38, %v2439_v3  ;;  %6237 = vmatmul.mubr.msk.f32.gmra.mxu0 %vm861_vm0, %v8058_v39  ;;  %v8074_v49 = vpop.f32.mrf.mxu1 }
 0x244   : > { %v2376_v27 = vpop.f32.mrf.mxu0  ;;  %6239 = vmatprep.mubr.msk.f32.mxu0 %vm6607_vm1, %v9331_v35 }
 0x245   : > { %9398 = vst [vmem:[#allocation29_spill] sm:$0xff] %v8064_v37  ;;  %v9316_v43 = vmax.f32 %v8064_v37, 0.0  ;;  %v2440_v15 = vadd.f32 %v2376_v27, %v7758_v22  ;;  %v6108_v22 = vpop.f32.mrf.mxu1 }
 0x246   : > { %v6073_v47 = vpop.f32.mrf.mxu0  ;;  %v8072_v6 = vld [vmem:[#allocation2 + $0x98] sm:$0xff] }
 0x247   : > { %2536 = vst.msk [vmem:[#allocation2 + $0xa8] sm:$0xff] %vm861_vm0, %v9316_v43  ;;  %v8080_v3 = vadd.f32 %v7795_v38, %v2440_v15  ;;  %6134 = vmatmul.mubr.msk.f32.gmra.mxu1 %vm861_vm0, %v8072_v6 }
 0x248   : > { %v2381_v50 = vpop.f32.mrf.mxu0  ;;  %6136 = vmatprep.mubr.msk.f32.mxu1 %vm6607_vm1, %v9331_v35 }
 0x249   : > { %9399 = vst [vmem:[#allocation30_spill] sm:$0xff] %v8080_v3  ;;  %v9317_v27 = vmax.f32 %v8080_v3, 0.0  ;;  %v2441_v47 = vadd.f32 %v2381_v50, %v7761_v42 }
 0x24a   : > { %v6076_v59 = vpop.f32.mrf.mxu0  ;;  %v8088_v41 = vld [vmem:[#allocation2 + $0xa0] sm:$0xff] }
 0x24b   : > { %2537 = vst.msk [vmem:[#allocation2 + $0xb0] sm:$0xff] %vm861_vm0, %v9317_v27  ;;  %v8094_v15 = vadd.f32 %v7795_v38, %v2441_v47  ;;  %6240 = vmatmul.mubr.msk.f32.gmra.mxu0 %vm861_vm0, %v8088_v41 }
 0x24c   : > { %v2386_v43 = vpop.f32.mrf.mxu0  ;;  %6242 = vmatprep.mubr.msk.f32.mxu0 %vm6607_vm1, %v9331_v35 }
 0x24d   : > { %9400 = vst [vmem:[#allocation31_spill] sm:$0xff] %v8094_v15  ;;  %v9319_v22 = vmax.f32 %v8094_v15, 0.0  ;;  %v2442_v42 = vadd.f32 %v2386_v43, %v7764_v45 }
 0x24e   : > { %v6079_v59 = vpop.f32.mrf.mxu0  ;;  %v8102_v50 = vld [vmem:[#allocation2 + $0xa8] sm:$0xff] }
 0x24f   : > { %2538 = vst.msk [vmem:[#allocation2 + $0xb8] sm:$0xff] %vm861_vm0, %v9319_v22  ;;  %v8108_v47 = vadd.f32 %v7795_v38, %v2442_v42  ;;  %6137 = vmatmul.mubr.msk.f32.gmra.mxu1 %vm861_vm0, %v8102_v50 }
 0x250   : > { %v2391_v27 = vpop.f32.mrf.mxu0  ;;  %6139 = vmatprep.mubr.msk.f32.mxu1 %vm6607_vm1, %v9331_v35 }
 0x251   : > { %9401 = vst [vmem:[#allocation32_spill] sm:$0xff] %v8108_v47  ;;  %v9321_v57 = vmax.f32 %v8108_v47, 0.0  ;;  %v2443_v45 = vadd.f32 %v2391_v27, %v7771_v2 }
 0x252   : > { %v6082_v43 = vpop.f32.mrf.mxu0  ;;  %v8116_v59 = vld [vmem:[#allocation2 + $0xb0] sm:$0xff] }
 0x253   : > { %2539 = vst.msk [vmem:[#allocation2 + $0xc0] sm:$0xff] %vm861_vm0, %v9321_v57  ;;  %v8122_v42 = vadd.f32 %v7795_v38, %v2443_v45  ;;  %6243 = vmatmul.mubr.msk.f32.gmra.mxu0 %vm861_vm0, %v8116_v59 }
 0x254   : > { %v2396_v22 = vpop.f32.mrf.mxu0  ;;  %6245 = vmatprep.mubr.msk.f32.mxu0 %vm6607_vm1, %v9331_v35 }
 0x255   : > { %9402 = vst [vmem:[#allocation33_spill] sm:$0xff] %v8122_v42  ;;  %v9323_v0 = vmax.f32 %v8122_v42, 0.0  ;;  %v2444_v2 = vadd.f32 %v2396_v22, %v7774_v46 }
 0x256   : > { %v6085_v27 = vpop.f32.mrf.mxu0  ;;  %v8130_v43 = vld [vmem:[#allocation2 + $0xb8] sm:$0xff] }
 0x257   : > { %2540 = vst.msk [vmem:[#allocation2 + $0xc8] sm:$0xff] %vm861_vm0, %v9323_v0  ;;  %v8136_v45 = vadd.f32 %v7795_v38, %v2444_v2  ;;  %6140 = vmatmul.mubr.msk.f32.gmra.mxu1 %vm861_vm0, %v8130_v43 }
 0x258   : > { %v2401_v57 = vpop.f32.mrf.mxu0  ;;  %6142 = vmatprep.mubr.msk.f32.mxu1 %vm6607_vm1, %v9331_v35 }
 0x259   : > { %9403 = vst [vmem:[#allocation34_spill] sm:$0xff] %v8136_v45  ;;  %v9325_v46 = vmax.f32 %v8136_v45, 0.0  ;;  %v2445_v22 = vadd.f32 %v2401_v57, %v7777_v62 }
 0x25a   : > { %v6088_v27 = vpop.f32.mrf.mxu0  ;;  %v8144_v60 = vld [vmem:[#allocation2 + $0xc0] sm:$0xff] }
 0x25b   : > { %2541 = vst.msk [vmem:[#allocation2 + $0xd0] sm:$0xff] %vm861_vm0, %v9325_v46  ;;  %v8150_v2 = vadd.f32 %v7795_v38, %v2445_v22  ;;  %6246 = vmatmul.mubr.msk.f32.gmra.mxu0 %vm861_vm0, %v8144_v60 }
 0x25c   : > { %v2406_v0 = vpop.f32.mrf.mxu0  ;;  %6248 = vmatprep.mubr.msk.f32.mxu0 %vm6607_vm1, %v9331_v35 }
 0x25d   : > { %9404 = vst [vmem:[#allocation35_spill] sm:$0xff] %v8150_v2  ;;  %v9327_v62 = vmax.f32 %v8150_v2, 0.0  ;;  %v2446_v57 = vadd.f32 %v2406_v0, %v7780_v5 }
 0x25e   : > { %v6091_v27 = vpop.f32.mrf.mxu0  ;;  %v8159_v56 = vld [vmem:[#allocation2 + $0xc8] sm:$0xff] }
 0x25f   : > { %2542 = vst.msk [vmem:[#allocation2 + $0xd8] sm:$0xff] %vm861_vm0, %v9327_v62  ;;  %v8165_v22 = vadd.f32 %v7795_v38, %v2446_v57  ;;  %6143 = vmatmul.mubr.msk.f32.gmra.mxu1 %vm861_vm0, %v8159_v56 }
 0x260   : > { %v2411_v46 = vpop.f32.mrf.mxu0  ;;  %6145 = vmatprep.mubr.msk.f32.mxu1 %vm6607_vm1, %v9331_v35 }
 0x261   : > { %9405 = vst [vmem:[#allocation36_spill] sm:$0xff] %v8165_v22  ;;  %v9330_v5 = vmax.f32 %v8165_v22, 0.0  ;;  %v2447_v0 = vadd.f32 %v2411_v46, %v7787_v25 }
 0x262   : > { %v6094_v27 = vpop.f32.mrf.mxu0  ;;  %v8176_v44 = vld [vmem:[#allocation2 + $0xd0] sm:$0xff] }
 0x263   : > { %2543 = vst.msk [vmem:[#allocation2 + $0xe0] sm:$0xff] %vm861_vm0, %v9330_v5  ;;  %v8182_v57 = vadd.f32 %v7795_v38, %v2447_v0  ;;  %6249 = vmatmul.mubr.msk.f32.gmra.mxu0 %vm861_vm0, %v8176_v44 }
 0x264   : > { %v2416_v62 = vpop.f32.mrf.mxu0  ;;  %6251 = vmatprep.mubr.msk.f32.mxu0 %vm6607_vm1, %v9331_v35 }
 0x265   : > { %9406 = vst [vmem:[#allocation37_spill] sm:$0xff] %v8182_v57  ;;  %v9329_v25 = vmax.f32 %v8182_v57, 0.0  ;;  %v2448_v46 = vadd.f32 %v2416_v62, %v7790_v7  ;;  %v2550_v62 = vld [vmem:[#allocation2] sm:$0xff] }
 0x266   : > { %v8191_v27 = vld [vmem:[#allocation2 + $0xd8] sm:$0xff]  ;;  %v6097_v9 = vpop.f32.mrf.mxu0 }
 0x267   : > { %2544 = vst.msk [vmem:[#allocation2 + $0xe8] sm:$0xff] %vm861_vm0, %v9329_v25  ;;  %v2484_v0 = vadd.f32 %v7795_v38, %v2448_v46  ;;  %6146 = vmatmul.mubr.msk.f32.gmra.mxu1 %vm861_vm0, %v8191_v27  ;;  %v5149_v46 = vld [vmem:[%s9377_s3 + $0x78] sm:$0xff] }
 0x268   : > { %6148 = vmatprep.mubr.msk.f32.mxu1 %vm6607_vm1, %v9331_v35 }
 0x269   : > { %v2513_v7 = vmax.f32 %v2484_v0, 0.0 }
 0x26a   : > { %v8206_v9 = vld [vmem:[#allocation2 + $0xe0] sm:$0xff] }
 0x26b   : > { %2545 = vst.msk [vmem:[#allocation2 + $0xf0] sm:$0xff] %vm861_vm0, %v2513_v7  ;;  %4530 = vst.msk [vmem:[%s8202_s23 + $0x38] sm:$0xff] %vm861_vm0, %v2513_v7  ;;  %6252 = vmatmul.mubr.msk.f32.gmra.mxu0 %vm861_vm0, %v8206_v9  ;;  %v5148_v7 = vld [vmem:[%s9377_s3 + $0x70] sm:$0xff] }
 0x26c   : > { %6254 = vmatprep.mubr.msk.f32.mxu0 %vm6607_vm1, %v9331_v35 }
 0x26e   : > { %v8215_v38 = vld [vmem:[#allocation2 + $0xe8] sm:$0xff] }
 0x26f   : > { %6149 = vmatmul.mubr.msk.f32.gmra.mxu1 %vm861_vm0, %v8215_v38 }
 0x270   : > { %6159 = vmatprep.mubr.msk.f32.mxu1 %vm6607_vm1, %v9331_v35 }
 0x272   : > { %v8224_v0 = vld [vmem:[#allocation2 + $0xf0] sm:$0xff] }
 0x273   : > { %6160 = vmatmul.mubr.msk.f32.vlgmr.msra.gmra.mxu1 %vm861_vm0, %v2550_v62  ;;  %6255 = vmatmul.mubr.msk.f32.gmra.mxu0 %vm861_vm0, %v8224_v0  ;;  %v5147_v62 = vld [vmem:[%s9377_s3 + $0x68] sm:$0xff] }
 0x274   : > { %6258 = vmatpush3.msra.mxu1 %v5149_v46  ;;  %6162 = vmatprep.mubr.msk.f32.mxu1 %vm6607_vm1, %v9331_v35 }
 0x275   : > { %6318 = vmatprep.mubr.msk.f32.mxu0 %vm6607_vm1, %v9331_v35  ;;  %6259 = vmatprep.subr.mxu1 %v9331_v35 }
 0x276   : > { %6260 = vmatpush3.msra.mxu1 %v5148_v7 }
 0x277   : > { %6163 = vmatmul.mubr.msk.f32.gmra.mxu1 %vm861_vm0, %v7822_v18  ;;  %6319 = vmatmul.mubr.msk.f32.vlgmr.msra.gmra.mxu0 %vm861_vm0, %v7862_v1  ;;  %v5146_v18 = vld [vmem:[%s9377_s3 + $0x60] sm:$0xff]  ;;  %s6608_s3 = smov 32  }
 0x278   : > { %6165 = vmatprep.mubr.msk.f32.mxu1 %vm6607_vm1, %v9331_v35  ;;  %6321 = vmatprep.mubr.msk.f32.mxu0 %vm6607_vm1, %v9331_v35 }
 0x279   : > { %6261 = vmatprep.subr.mxu1 %v9331_v35 }
 0x27a   : > { %6262 = vmatpush3.msra.mxu1 %v5147_v62 }
 0x27b   : > { %6166 = vmatmul.mubr.msk.f32.gmra.mxu1 %vm861_vm0, %v7862_v1  ;;  %6322 = vmatmul.mubr.msk.f32.gmra.mxu0 %vm861_vm0, %v7890_v61  ;;  %v2582_v1 = vld [vmem:[#allocation2 + $0x100] sm:$0xff] }
 0x27c   : > { %6168 = vmatprep.mubr.msk.f32.mxu1 %vm6607_vm1, %v9331_v35  ;;  %6324 = vmatprep.mubr.msk.f32.mxu0 %vm6607_vm1, %v9331_v35 }
 0x27d   : > { %6263 = vmatprep.subr.mxu1 %v9331_v35 }
 0x27e   : > { %6264 = vmatpush3.msra.mxu1 %v5146_v18 }
 0x27f   : > { %6169 = vmatmul.mubr.msk.f32.gmra.mxu1 %vm861_vm0, %v7890_v61  ;;  %6325 = vmatmul.mubr.msk.f32.gmra.mxu0 %vm861_vm0, %v7918_v19 }
 0x280   : > { %6171 = vmatprep.mubr.msk.f32.mxu1 %vm6607_vm1, %v9331_v35  ;;  %6327 = vmatprep.mubr.msk.f32.mxu0 %vm6607_vm1, %v9331_v35 }
 0x283   : > { %6172 = vmatmul.mubr.msk.f32.gmra.mxu1 %vm861_vm0, %v7918_v19  ;;  %6328 = vmatmul.mubr.msk.f32.gmra.mxu0 %vm861_vm0, %v7946_v20 }
 0x284   : > { %6174 = vmatprep.mubr.msk.f32.mxu1 %vm6607_vm1, %v9331_v35  ;;  %6330 = vmatprep.mubr.msk.f32.mxu0 %vm6607_vm1, %v9331_v35 }
 0x287   : > { %6175 = vmatmul.mubr.msk.f32.gmra.mxu1 %vm861_vm0, %v7946_v20  ;;  %6331 = vmatmul.mubr.msk.f32.gmra.mxu0 %vm861_vm0, %v7974_v34 }
 0x288   : > { %6177 = vmatprep.mubr.msk.f32.mxu1 %vm6607_vm1, %v9331_v35  ;;  %6333 = vmatprep.mubr.msk.f32.mxu0 %vm6607_vm1, %v9331_v35 }
 0x28b   : > { %6178 = vmatmul.mubr.msk.f32.gmra.mxu1 %vm861_vm0, %v7974_v34  ;;  %6334 = vmatmul.mubr.msk.f32.gmra.mxu0 %vm861_vm0, %v8002_v12 }
 0x28c   : > { %6180 = vmatprep.mubr.msk.f32.mxu1 %vm6607_vm1, %v9331_v35  ;;  %6336 = vmatprep.mubr.msk.f32.mxu0 %vm6607_vm1, %v9331_v35 }
 0x28f   : > { %6181 = vmatmul.mubr.msk.f32.gmra.mxu1 %vm861_vm0, %v8002_v12  ;;  %6337 = vmatmul.mubr.msk.f32.gmra.mxu0 %vm861_vm0, %v8030_v10 }
 0x290   : > { %6183 = vmatprep.mubr.msk.f32.mxu1 %vm6607_vm1, %v9331_v35  ;;  %6339 = vmatprep.mubr.msk.f32.mxu0 %vm6607_vm1, %v9331_v35 }
 0x293   : > { %6184 = vmatmul.mubr.msk.f32.gmra.mxu1 %vm861_vm0, %v8030_v10  ;;  %6340 = vmatmul.mubr.msk.f32.gmra.mxu0 %vm861_vm0, %v8058_v39 }
 0x294   : > { %6186 = vmatprep.mubr.msk.f32.mxu1 %vm6607_vm1, %v9331_v35  ;;  %6342 = vmatprep.mubr.msk.f32.mxu0 %vm6607_vm1, %v9331_v35 }
 0x297   : > { %6187 = vmatmul.mubr.msk.f32.gmra.mxu1 %vm861_vm0, %v8058_v39  ;;  %6343 = vmatmul.mubr.msk.f32.gmra.mxu0 %vm861_vm0, %v8088_v41 }
 0x298   : > { %6189 = vmatprep.mubr.msk.f32.mxu1 %vm6607_vm1, %v9331_v35  ;;  %6345 = vmatprep.mubr.msk.f32.mxu0 %vm6607_vm1, %v9331_v35 }
 0x29b   : > { %6190 = vmatmul.mubr.msk.f32.gmra.mxu1 %vm861_vm0, %v8088_v41  ;;  %6346 = vmatmul.mubr.msk.f32.gmra.mxu0 %vm861_vm0, %v8116_v59 }
 0x29c   : > { %6192 = vmatprep.mubr.msk.f32.mxu1 %vm6607_vm1, %v9331_v35  ;;  %6348 = vmatprep.mubr.msk.f32.mxu0 %vm6607_vm1, %v9331_v35 }
 0x29f   : > { %6193 = vmatmul.mubr.msk.f32.gmra.mxu1 %vm861_vm0, %v8116_v59  ;;  %6349 = vmatmul.mubr.msk.f32.gmra.mxu0 %vm861_vm0, %v8144_v60 }
 0x2a0   : > { %6195 = vmatprep.mubr.msk.f32.mxu1 %vm6607_vm1, %v9331_v35  ;;  %6351 = vmatprep.mubr.msk.f32.mxu0 %vm6607_vm1, %v9331_v35 }
 0x2a3   : > { %6196 = vmatmul.mubr.msk.f32.gmra.mxu1 %vm861_vm0, %v8144_v60  ;;  %6352 = vmatmul.mubr.msk.f32.gmra.mxu0 %vm861_vm0, %v8176_v44 }
 0x2a4   : > { %6198 = vmatprep.mubr.msk.f32.mxu1 %vm6607_vm1, %v9331_v35  ;;  %6354 = vmatprep.mubr.msk.f32.mxu0 %vm6607_vm1, %v9331_v35 }
 0x2a7   : > { %6199 = vmatmul.mubr.msk.f32.gmra.mxu1 %vm861_vm0, %v8176_v44  ;;  %6355 = vmatmul.mubr.msk.f32.gmra.mxu0 %vm861_vm0, %v8206_v9 }
 0x2a8   : > { %6201 = vmatprep.mubr.msk.f32.mxu1 %vm6607_vm1, %v9331_v35  ;;  %6357 = vmatprep.mubr.msk.f32.mxu0 %vm6607_vm1, %v9331_v35 }
 0x2ab   : > { %6202 = vmatmul.mubr.msk.f32.gmra.mxu1 %vm861_vm0, %v8206_v9  ;;  %6358 = vmatmul.mubr.msk.f32.gmra.mxu0 %vm861_vm0, %v8224_v0 }
 0x2ac   : > { %6265 = vmatprep.mubr.msk.f32.mxu1 %vm6607_vm1, %v9331_v35  ;;  %6360 = vmatprep.mubr.msk.f32.mxu0 %vm6607_vm1, %v9331_v35 }
 0x2af   : > { %6266 = vmatmul.mubr.msk.f32.vlgmr.msra.gmra.mxu1 %vm861_vm0, %v7843_v21  ;;  %6361 = vmatmul.mubr.msk.f32.gmra.mxu0 %vm861_vm0, %v2582_v1 }
 0x2b0   : > { %6268 = vmatprep.mubr.msk.f32.mxu1 %vm6607_vm1, %v9331_v35 }
 0x2b3   : > { %6269 = vmatmul.mubr.msk.f32.gmra.mxu1 %vm861_vm0, %v7876_v51 }
 0x2b4   : > { %6271 = vmatprep.mubr.msk.f32.mxu1 %vm6607_vm1, %v9331_v35 }
 0x2b7   : > { %6272 = vmatmul.mubr.msk.f32.gmra.mxu1 %vm861_vm0, %v7904_v53 }
 0x2b8   : > { %6274 = vmatprep.mubr.msk.f32.mxu1 %vm6607_vm1, %v9331_v35 }
 0x2bb   : > { %6275 = vmatmul.mubr.msk.f32.gmra.mxu1 %vm861_vm0, %v7932_v24 }
 0x2bc   : > { %6277 = vmatprep.mubr.msk.f32.mxu1 %vm6607_vm1, %v9331_v35 }
 0x2bf   : > { %6278 = vmatmul.mubr.msk.f32.gmra.mxu1 %vm861_vm0, %v7960_v33 }
 0x2c0   : > { %6280 = vmatprep.mubr.msk.f32.mxu1 %vm6607_vm1, %v9331_v35 }
 0x2c3   : > { %v8378_v21 = vpop.f32.mrf.mxu0  ;;  %6281 = vmatmul.mubr.msk.f32.gmra.mxu1 %vm861_vm0, %v7988_v13 }
 0x2c4   : > { %6283 = vmatprep.mubr.msk.f32.mxu1 %vm6607_vm1, %v9331_v35 }
 0x2c5   : > { %v6214_v44 = vpop.f32.mrf.mxu0 }
 0x2c7   : > { %v8384_v51 = vpop.f32.mrf.mxu1  ;;  %6284 = vmatmul.mubr.msk.f32.gmra.mxu1 %vm861_vm0, %v8016_v29 }
 0x2c8   : > { %6286 = vmatprep.mubr.msk.f32.mxu1 %vm6607_vm1, %v9331_v35 }
 0x2c9   : > { %v6111_v61 = vpop.f32.mrf.mxu1 }
 0x2ca   : > { %v5187_v61 = vld [vmem:[%s9407_s5 + $0x30] sm:$0xff] }
 0x2cb   : > { %v8390_v53 = vpop.f32.mrf.mxu0  ;;  %6287 = vmatmul.mubr.msk.f32.gmra.mxu1 %vm861_vm0, %v8044_v14 }
 0x2cc   : > { %6289 = vmatprep.mubr.msk.f32.mxu1 %vm6607_vm1, %v9331_v35 }
 0x2cd   : > { %v6217_v19 = vpop.f32.mrf.mxu0 }
 0x2cf   : > { %v8396_v24 = vpop.f32.mrf.mxu1  ;;  %6290 = vmatmul.mubr.msk.f32.gmra.mxu1 %vm861_vm0, %v8072_v6 }
 0x2d0   : > { %6292 = vmatprep.mubr.msk.f32.mxu1 %vm6607_vm1, %v9331_v35 }
 0x2d1   : > { %v6114_v41 = vpop.f32.mrf.mxu1 }
 0x2d2   : > { %v5186_v41 = vld [vmem:[%s9407_s5 + $0x28] sm:$0xff] }
 0x2d3   : > { %v8402_v20 = vpop.f32.mrf.mxu0  ;;  %6293 = vmatmul.mubr.msk.f32.gmra.mxu1 %vm861_vm0, %v8102_v50 }
 0x2d4   : > { %6295 = vmatprep.mubr.msk.f32.mxu1 %vm6607_vm1, %v9331_v35 }
 0x2d5   : > { %v6220_v33 = vpop.f32.mrf.mxu0 }
 0x2d7   : > { %v8408_v34 = vpop.f32.mrf.mxu1  ;;  %6296 = vmatmul.mubr.msk.f32.gmra.mxu1 %vm861_vm0, %v8130_v43  ;;  %v5188_v43 = vld [vmem:[%s9407_s5 + $0x38] sm:$0xff] }
 0x2d8   : > { %6298 = vmatprep.mubr.msk.f32.mxu1 %vm6607_vm1, %v9331_v35  ;;  %6363 = vmatprep.subr.mxu1 %v5188_v43 }
 0x2d9   : > { %v6117_v60 = vpop.f32.mrf.mxu1  ;;  %6364 = vmatpush3.msra.mxu1 %v5188_v43 }
 0x2da   : > { %6365 = vmatprep.subr.mxu1 %v5187_v61  ;;  %v5185_v60 = vld [vmem:[%s9407_s5 + $0x20] sm:$0xff] }
 0x2db   : > { %v8414_v13 = vpop.f32.mrf.mxu0  ;;  %6299 = vmatmul.mubr.msk.f32.gmra.mxu1 %vm861_vm0, %v8159_v56  ;;  %v2581_v56 = vld [vmem:[#allocation2 + $0xf8] sm:$0xff] }
 0x2dc   : > { %6301 = vmatprep.mubr.msk.f32.mxu1 %vm6607_vm1, %v9331_v35  ;;  %6366 = vmatpush3.msra.mxu1 %v5187_v61 }
 0x2dd   : > { %v6223_v12 = vpop.f32.mrf.mxu0  ;;  %6367 = vmatprep.subr.mxu1 %v5186_v41 }
 0x2de   : > { %6368 = vmatpush3.msra.mxu1 %v5186_v41  ;;  %v3511_v12 = vld [vmem:[#allocation3 + $0x8] sm:$0xff] }
 0x2df   : > { %v8420_v29 = vpop.f32.mrf.mxu1  ;;  %6302 = vmatmul.mubr.msk.f32.gmra.mxu1 %vm861_vm0, %v8191_v27  ;;  %6369 = vmatprep.subr.mxu1 %v5185_v60 }
 0x2e0   : > { %6304 = vmatprep.mubr.msk.f32.mxu1 %vm6607_vm1, %v9331_v35  ;;  %6370 = vmatpush3.msra.mxu1 %v5185_v60 }
 0x2e1   : > { %v6120_v10 = vpop.f32.mrf.mxu1 }
 0x2e3   : > { %v8426_v14 = vpop.f32.mrf.mxu0  ;;  %6305 = vmatmul.mubr.msk.f32.gmra.mxu1 %vm861_vm0, %v8215_v38 }
 0x2e4   : > { %6307 = vmatprep.mubr.msk.f32.mxu1 %vm6607_vm1, %v9331_v35 }
 0x2e5   : > { %v6226_v39 = vpop.f32.mrf.mxu0 }
 0x2e7   : > { %v8432_v6 = vpop.f32.mrf.mxu1  ;;  %6308 = vmatmul.mubr.msk.f32.gmra.mxu1 %vm861_vm0, %v2581_v56 }
 0x2e8   : > { %6371 = vmatprep.mubr.msk.f32.mxu1 %vm861_vm0, %v3511_v12 }
 0x2e9   : > { %v6123_v50 = vpop.f32.mrf.mxu1 }
 0x2ea   : > { %v5232_v50 = vld [vmem:[%s9407_s5 + $0x98] sm:$0xff] }
 0x2eb   : > { %v8435_v59 = vpop.f32.mrf.mxu0  ;;  %6443 = vmatprep.subr.mxu0 %v5232_v50 }
 0x2ec   : > { %6444 = vmatpush3.msra.mxu0 %v5232_v50 }
 0x2ed   : > { %v6229_v27 = vpop.f32.mrf.mxu0 }
 0x2ee   : > { %v5231_v27 = vld [vmem:[%s9407_s5 + $0x90] sm:$0xff] }
 0x2ef   : > { %v8440_v9 = vpop.f32.mrf.mxu1  ;;  %6445 = vmatprep.subr.mxu0 %v5231_v27 }
 0x2f0   : > { %6446 = vmatpush3.msra.mxu0 %v5231_v27 }
 0x2f1   : > { %v6126_v38 = vpop.f32.mrf.mxu1 }
 0x2f3   : > { %v8442_v46 = vpop.f32.mrf.mxu0 }
 0x2f5   : > { %v6232_v0 = vpop.f32.mrf.mxu0 }
 0x2f6   : > { %v5230_v0 = vld [vmem:[%s9407_s5 + $0x88] sm:$0xff] }
 0x2f7   : > { %v8444_v7 = vpop.f32.mrf.mxu1  ;;  %6447 = vmatprep.subr.mxu0 %v5230_v0 }
 0x2f8   : > { %6448 = vmatpush3.msra.mxu0 %v5230_v0 }
 0x2f9   : > { %v6129_v62 = vpop.f32.mrf.mxu1 }
 0x2fb   : > { %v8446_v18 = vpop.f32.mrf.mxu0 }
 0x2fd   : > { %v6235_v1 = vpop.f32.mrf.mxu0 }
 0x2fe   : > { %v5229_v1 = vld [vmem:[%s9407_s5 + $0x80] sm:$0xff] }
 0x2ff   : > { %v8448_v44 = vpop.f32.mrf.mxu1  ;;  %6449 = vmatprep.subr.mxu0 %v5229_v1 }
 0x300   : > { %6450 = vmatpush3.msra.mxu0 %v5229_v1 }
 0x301   : > { %v6132_v19 = vpop.f32.mrf.mxu1  ;;  %6463 = vmatprep.subr.mxu0 %v9331_v35 }
 0x303   : > { %v8456_v33 = vpop.f32.mrf.mxu0 }
 0x305   : > { %v6238_v10 = vpop.f32.mrf.mxu0 }
 0x307   : > { %v8462_v56 = vpop.f32.mrf.mxu1 }
 0x309   : > { %v6135_v39 = vpop.f32.mrf.mxu1 }
 0x30b   : > { %v8467_v43 = vpop.f32.mrf.mxu0 }
 0x30d   : > { %v6241_v38 = vpop.f32.mrf.mxu0 }
 0x30f   : > { %v8475_v62 = vpop.f32.mrf.mxu1 }
 0x311   : > { %v6138_v61 = vpop.f32.mrf.mxu1 }
 0x313   : > { %v8481_v19 = vpop.f32.mrf.mxu0 }
 0x315   : > { %v6244_v41 = vpop.f32.mrf.mxu0 }
 0x316   : > { %v8496_v41 = vld [vmem:[%s9407_s5 + $0x18] sm:$0xff] }
 0x317   : > { %v8483_v60 = vpop.f32.mrf.mxu1  ;;  %6383 = vmatprep.subr.mxu1 %v8496_v41 }
 0x319   : > { %v6141_v12 = vpop.f32.mrf.mxu1 }
 0x31b   : > { %v8485_v10 = vpop.f32.mrf.mxu0 }
 0x31c   : > { %9408 = vst [vmem:[#allocation38_spill] sm:$0xff] %v8485_v10 }
 0x31d   : > { %v6247_v39 = vpop.f32.mrf.mxu0 }
 0x31f   : > { %v8487_v50 = vpop.f32.mrf.mxu1 }
 0x320   : > { %9409 = vst [vmem:[#allocation39_spill] sm:$0xff] %v8487_v50 }
 0x321   : > { %v6144_v27 = vpop.f32.mrf.mxu1 }
 0x323   : > { %v8489_v38 = vpop.f32.mrf.mxu0 }
 0x324   : > { %9410 = vst [vmem:[#allocation40_spill] sm:$0xff] %v8489_v38 }
 0x325   : > { %v6250_v0 = vpop.f32.mrf.mxu0 }
 0x327   : > { %v2768_v25 = vpop.f32.mrf.mxu1 }
 0x329   : > { %v6147_v61 = vpop.f32.mrf.mxu1 }
 0x32b   : > { %v8491_v1 = vpop.f32.mrf.mxu0 }
 0x32d   : > { %v6253_v5 = vpop.f32.mrf.mxu0 }
 0x32f   : > { %v8499_v12 = vpop.f32.mrf.mxu1 }
 0x331   : > { %v6150_v39 = vpop.f32.mrf.mxu1 }
 0x333   : > { %v2888_v35 = vpop.f32.mrf.mxu1  ;;  %v8501_v27 = vpop.f32.mrf.mxu0 }
 0x335   : > { %v6161_v45 = vpop.f32.mrf.mxu1  ;;  %v6256_v0 = vpop.f32.mrf.mxu0 }
 0x337   : > { %v2893_v28 = vpop.f32.mrf.mxu1  ;;  %v8503_v61 = vpop.f32.mrf.mxu0 }
 0x339   : > { %v6164_v3 = vpop.f32.mrf.mxu1  ;;  %v6320_v4 = vpop.f32.mrf.mxu0 }
 0x33b   : > { %v8505_v58 = vpop.f32.mrf.mxu1  ;;  %v8507_v8 = vpop.f32.mrf.mxu0 }
 0x33d   : > { %v6167_v5 = vpop.f32.mrf.mxu1  ;;  %v6323_v26 = vpop.f32.mrf.mxu0 }
 0x33f   : > { %v8509_v57 = vpop.f32.mrf.mxu1  ;;  %v8511_v37 = vpop.f32.mrf.mxu0 }
 0x341   : > { %v6170_v39 = vpop.f32.mrf.mxu1  ;;  %v6326_v42 = vpop.f32.mrf.mxu0 }
 0x343   : > { %v8513_v55 = vpop.f32.mrf.mxu1  ;;  %v8515_v45 = vpop.f32.mrf.mxu0 }
 0x345   : > { %v6173_v0 = vpop.f32.mrf.mxu1  ;;  %v6329_v16 = vpop.f32.mrf.mxu0 }
 0x347   : > { %v8517_v3 = vpop.f32.mrf.mxu1  ;;  %v8519_v4 = vpop.f32.mrf.mxu0 }
 0x349   : > { %v6176_v36 = vpop.f32.mrf.mxu1  ;;  %v6332_v23 = vpop.f32.mrf.mxu0 }
 0x34b   : > { %v8521_v5 = vpop.f32.mrf.mxu1  ;;  %v8523_v26 = vpop.f32.mrf.mxu0 }
 0x34d   : > { %v6179_v47 = vpop.f32.mrf.mxu1  ;;  %v6335_v22 = vpop.f32.mrf.mxu0 }
 0x34f   : > { %v8525_v39 = vpop.f32.mrf.mxu1  ;;  %v8527_v42 = vpop.f32.mrf.mxu0 }
 0x351   : > { %v6182_v52 = vpop.f32.mrf.mxu1  ;;  %v6338_v48 = vpop.f32.mrf.mxu0 }
 0x353   : > { %v8529_v0 = vpop.f32.mrf.mxu1  ;;  %v8531_v16 = vpop.f32.mrf.mxu0 }
 0x355   : > { %v6185_v40 = vpop.f32.mrf.mxu1  ;;  %v6341_v31 = vpop.f32.mrf.mxu0 }
 0x357   : > { %v8533_v36 = vpop.f32.mrf.mxu1  ;;  %v8535_v23 = vpop.f32.mrf.mxu0 }
 0x359   : > { %v6188_v2 = vpop.f32.mrf.mxu1  ;;  %v6344_v30 = vpop.f32.mrf.mxu0 }
 0x35b   : > { %v8537_v47 = vpop.f32.mrf.mxu1  ;;  %v8539_v22 = vpop.f32.mrf.mxu0 }
 0x35d   : > { %v6191_v15 = vpop.f32.mrf.mxu1  ;;  %v6347_v17 = vpop.f32.mrf.mxu0 }
 0x35e   : > { %v2889_v17 = vadd.f32 %v2888_v35, %v8074_v49  ;;  %v8568_v49 = vld [vmem:[%s9414_s4] ss:$0 sm:$0xff]  ;;  %s698_s4 = scalar_lea.vmem %s9299_s13, %s5250_s26  ;;  %s5245_s26 = sshll.u32 %s6713_s22, 7 }
 0x35f   : > { %v8541_v52 = vpop.f32.mrf.mxu1  ;;  %v8543_v48 = vpop.f32.mrf.mxu0 }
 0x360   : > { %9411 = vst [vmem:[#allocation41_spill] sm:$0xff] %v8543_v48 }
 0x361   : > { %v6194_v32 = vpop.f32.mrf.mxu1  ;;  %v6350_v63 = vpop.f32.mrf.mxu0 }
 0x363   : > { %v8545_v40 = vpop.f32.mrf.mxu1  ;;  %v8547_v31 = vpop.f32.mrf.mxu0 }
 0x364   : > { %9412 = vst [vmem:[#allocation42_spill] sm:$0xff] %v8545_v40  ;;  %9413 = vst [vmem:[#allocation43_spill] sm:$0xff] %v8547_v31 }
 0x365   : > { %v6197_v11 = vpop.f32.mrf.mxu1  ;;  %v6353_v54 = vpop.f32.mrf.mxu0 }
 0x366   : > { %v2894_v54 = vadd.f32 %v2893_v28, %v8384_v51  ;;  %v3110_v11 = vadd.f32 %v8378_v21, %v2889_v17 }
 0x367   : > { %v2953_v2 = vpop.f32.mrf.mxu1  ;;  %v8549_v30 = vpop.f32.mrf.mxu0 }
 0x368   : > { %v2954_v38 = vadd.f32 %v2953_v2, %v2768_v25  ;;  %v3111_v21 = vadd.f32 %v8390_v53, %v2894_v54  ;;  %v2909_v54 = vadd.f32 %v8513_v55, %v8420_v29 }
 0x369   : > { %v6200_v10 = vpop.f32.mrf.mxu1  ;;  %v6356_v50 = vpop.f32.mrf.mxu0 }
 0x36a   : > { %v8553_v15 = vadd.f32 %v8491_v1, %v2954_v38 }
 0x36b   : > { %v2958_v48 = vpop.f32.mrf.mxu1  ;;  %v8555_v32 = vpop.f32.mrf.mxu0 }
 0x36c   : > { %v2959_v63 = vadd.f32 %v2958_v48, %v8499_v12  ;;  %v2899_v12 = vadd.f32 %v8505_v58, %v8396_v24 }
 0x36d   : > { %v6203_v40 = vpop.f32.mrf.mxu1  ;;  %v6359_v31 = vpop.f32.mrf.mxu0 }
 0x36e   : > { %v8561_v25 = vadd.f32 %v8501_v27, %v2959_v63  ;;  %v2904_v31 = vadd.f32 %v8509_v57, %v8408_v34  ;;  %v3112_v63 = vadd.f32 %v8402_v20, %v2899_v12 }
 0x36f   : > { %v3199_v10 = vpop.f32.mrf.mxu1  ;;  %v8563_v50 = vpop.f32.mrf.mxu0 }
 0x370   : > { %v3273_v35 = vadd.f32 %v3199_v10, %v3110_v11 }
 0x371   : > { %v6267_v38 = vpop.f32.mrf.mxu1  ;;  %v6362_v1 = vpop.f32.mrf.mxu0 }
 0x372   : > { %v3436_v28 = vadd.f32 %v8503_v61, %v3273_v35  ;;  %v2914_v38 = vadd.f32 %v8517_v3, %v8432_v6 }
 0x373   : > { %v3204_v51 = vpop.f32.mrf.mxu1 }
 0x374   : > { %v8575_v27 = vadd.f32 %v8568_v49, %v3436_v28  ;;  %v3274_v48 = vadd.f32 %v3204_v51, %v3111_v21  ;;  %v2919_v21 = vadd.f32 %v8521_v5, %v8440_v9  ;;  %v2924_v5 = vadd.f32 %v8525_v39, %v8444_v7 }
 0x375   : > { %v6270_v40 = vpop.f32.mrf.mxu1 }
 0x376   : > { %v3473_v2 = vmax.f32 %v8575_v27, 0.0  ;;  %v3437_v17 = vadd.f32 %v8507_v8, %v3274_v48  ;;  %v3113_v8 = vadd.f32 %v8414_v13, %v2904_v31  ;;  %v3531_v48 = vld [vmem:[%s9407_s5 + $0x10] sm:$0xff] }
 0x377   : > { %v3209_v58 = vpop.f32.mrf.mxu1 }
 0x378   : > { %3491 = vst.msk [vmem:[#allocation3 + $0x10] sm:$0xff] %vm861_vm0, %v3473_v2  ;;  %v8586_v53 = vadd.f32 %v8568_v49, %v3437_v17  ;;  %v3275_v24 = vadd.f32 %v3209_v58, %v3112_v63  ;;  %v3116_v63 = vadd.f32 %v8442_v46, %v2919_v21 }
 0x379   : > { %v6273_v61 = vpop.f32.mrf.mxu1 }
 0x37a   : > { %v3474_v57 = vmax.f32 %v8586_v53, 0.0  ;;  %v3438_v34 = vadd.f32 %v8511_v37, %v3275_v24  ;;  %v3114_v37 = vadd.f32 %v8426_v14, %v2909_v54  ;;  %v2929_v61 = vadd.f32 %v8529_v0, %v8448_v44 }
 0x37b   : > { %v3214_v20 = vpop.f32.mrf.mxu1 }
 0x37c   : > { %3492 = vst.msk [vmem:[#allocation3 + $0x18] sm:$0xff] %vm861_vm0, %v3474_v57  ;;  %v8597_v11 = vadd.f32 %v8568_v49, %v3438_v34  ;;  %v3276_v10 = vadd.f32 %v3214_v20, %v3113_v8  ;;  %v3117_v8 = vadd.f32 %v8446_v18, %v2924_v5  ;;  %v2934_v18 = vadd.f32 %v8533_v36, %v8462_v56 }
 0x37d   : > { %v6276_v35 = vpop.f32.mrf.mxu1 }
 0x37e   : > { %v3475_v55 = vmax.f32 %v8597_v11, 0.0  ;;  %v3439_v29 = vadd.f32 %v8515_v45, %v3276_v10  ;;  %v3115_v45 = vadd.f32 %v8435_v59, %v2914_v38  ;;  %v3530_v59 = vld [vmem:[%s9407_s5 + $0x8] sm:$0xff]  ;;  %v3119_v21 = vadd.f32 %v8467_v43, %v2934_v18  ;;  %v9419_v18 = vld [vmem:[#allocation43_spill] sm:$0xff] }
 0x37f   : > { %v3219_v13 = vpop.f32.mrf.mxu1 }
 0x380   : > { %3493 = vst.msk [vmem:[#allocation3 + $0x20] sm:$0xff] %vm861_vm0, %v3475_v55  ;;  %v8608_v1 = vadd.f32 %v8568_v49, %v3439_v29  ;;  %v3277_v12 = vadd.f32 %v3219_v13, %v3114_v37  ;;  %v3118_v29 = vadd.f32 %v8456_v33, %v2929_v61 }
 0x381   : > { %v6279_v28 = vpop.f32.mrf.mxu1 }
 0x382   : > { %v3476_v6 = vmax.f32 %v8608_v1, 0.0  ;;  %v3440_v3 = vadd.f32 %v8519_v4, %v3277_v12  ;;  %v4335_v1 = vld [vmem:[%s9295_s9 + $0x58] sm:$0xff] }
 0x383   : > { %v3224_v14 = vpop.f32.mrf.mxu1  ;;  %v8615_v51 = vld [vmem:[#allocation3 + $0x18] sm:$0xff] }
 0x384   : > { %3494 = vst.msk [vmem:[#allocation3 + $0x28] sm:$0xff] %vm861_vm0, %v3476_v6  ;;  %v8624_v40 = vadd.f32 %v8568_v49, %v3440_v3  ;;  %v3278_v9 = vadd.f32 %v3224_v14, %v3115_v45  ;;  %6372 = vmatmul.mubr.msk.f32.vlgmr.msra.gmra.mxu1 %vm861_vm0, %v8615_v51 }
 0x385   : > { %v6282_v4 = vpop.f32.mrf.mxu1  ;;  %6384 = vmatpush3.msra.mxu1 %v8496_v41  ;;  %v3529_v41 = vld [vmem:[%s9407_s5] sm:$0xff] }
 0x386   : > { %v9362_v31 = vmax.f32 %v8624_v40, 0.0  ;;  %v3441_v17 = vadd.f32 %v8523_v26, %v3278_v9  ;;  %6385 = vmatprep.subr.mxu1 %v3531_v48  ;;  %v8653_v26 = vld [vmem:[%s9407_s5 + $0x58] sm:$0xff] }
 0x387   : > { %v3229_v58 = vpop.f32.mrf.mxu1  ;;  %v8637_v24 = vld [vmem:[#allocation3 + $0x20] sm:$0xff]  ;;  %6386 = vmatpush3.msra.mxu1 %v3531_v48 }
 0x388   : > { %3495 = vst.msk [vmem:[#allocation3 + $0x30] sm:$0xff] %vm861_vm0, %v9362_v31  ;;  %v8646_v7 = vadd.f32 %v8568_v49, %v3441_v17  ;;  %v3279_v39 = vadd.f32 %v3229_v58, %v3116_v63  ;;  %6451 = vmatprep.mubr.msk.f32.mxu0 %vm861_vm0, %v8637_v24  ;;  %6387 = vmatprep.subr.mxu1 %v3530_v59  ;;  %v9416_v63 = vld [vmem:[#allocation42_spill] sm:$0xff]  ;;  %v9417_v58 = vld [vmem:[#allocation41_spill] sm:$0xff] }
 0x389   : > { %v6285_v46 = vpop.f32.mrf.mxu1  ;;  %6388 = vmatpush3.msra.mxu1 %v3530_v59 }
 0x38a   : > { %v3478_v54 = vmax.f32 %v8646_v7, 0.0  ;;  %v3442_v34 = vadd.f32 %v8527_v42, %v3279_v39  ;;  %6389 = vmatprep.subr.mxu1 %v3529_v41  ;;  %v9418_v39 = vld [vmem:[#allocation38_spill] sm:$0xff] }
 0x38b   : > { %v3234_v20 = vpop.f32.mrf.mxu1  ;;  %v8660_v10 = vld [vmem:[#allocation3 + $0x28] sm:$0xff]  ;;  %6390 = vmatpush3.msra.mxu1 %v3529_v41 }
 0x38c   : > { %3496 = vst.msk [vmem:[#allocation3 + $0x38] sm:$0xff] %vm861_vm0, %v3478_v54  ;;  %v8666_v35 = vadd.f32 %v8568_v49, %v3442_v34  ;;  %v3280_v38 = vadd.f32 %v3234_v20, %v3117_v8  ;;  %6374 = vmatprep.mubr.msk.f32.mxu1 %vm861_vm0, %v8660_v10  ;;  %6403 = vmatprep.subr.mxu1 %v8653_v26 }
 0x38d   : > { %v6288_v44 = vpop.f32.mrf.mxu1 }
 0x38e   : > { %v3479_v42 = vmax.f32 %v8666_v35, 0.0  ;;  %v3443_v0 = vadd.f32 %v8531_v16, %v3280_v38  ;;  %v2939_v16 = vadd.f32 %v8537_v47, %v8475_v62 }
 0x38f   : > { %v3239_v37 = vpop.f32.mrf.mxu1  ;;  %v8676_v13 = vld [vmem:[#allocation3 + $0x30] sm:$0xff] }
 0x390   : > { %3497 = vst.msk [vmem:[#allocation3 + $0x40] sm:$0xff] %vm861_vm0, %v3479_v42  ;;  %v8682_v12 = vadd.f32 %v8568_v49, %v3443_v0  ;;  %v3281_v28 = vadd.f32 %v3239_v37, %v3118_v29  ;;  %6452 = vmatmul.mubr.msk.f32.vlgmr.msra.gmra.mxu0 %vm861_vm0, %v8676_v13  ;;  %v3120_v9 = vadd.f32 %v8481_v19, %v2939_v16  ;;  %v9420_v29 = vld [vmem:[#allocation40_spill] sm:$0xff] }
 0x391   : > { %v6291_v56 = vpop.f32.mrf.mxu1 }
 0x392   : > { %v3480_v33 = vmax.f32 %v8682_v12, 0.0  ;;  %v3444_v36 = vadd.f32 %v8535_v23, %v3281_v28  ;;  %v2944_v23 = vadd.f32 %v8541_v52, %v8483_v60  ;;  %v9415_v52 = vld [vmem:[#allocation39_spill] sm:$0xff]  ;;  %v4332_v12 = vld [vmem:[%s9295_s9 + $0x40] sm:$0xff] }
 0x393   : > { %v3244_v3 = vpop.f32.mrf.mxu1  ;;  %v8691_v45 = vld [vmem:[#allocation3 + $0x38] sm:$0xff] }
 0x394   : > { %3498 = vst.msk [vmem:[#allocation3 + $0x48] sm:$0xff] %vm861_vm0, %v3480_v33  ;;  %v8697_v14 = vadd.f32 %v8568_v49, %v3444_v36  ;;  %v3282_v48 = vadd.f32 %v3244_v3, %v3119_v21  ;;  %6375 = vmatmul.mubr.msk.f32.gmra.mxu1 %vm861_vm0, %v8691_v45  ;;  %v3121_v46 = vadd.f32 %v9418_v39, %v2944_v23 }
 0x395   : > { %v6294_v62 = vpop.f32.mrf.mxu1 }
 0x396   : > { %v9363_v43 = vmax.f32 %v8697_v14, 0.0  ;;  %v3445_v47 = vadd.f32 %v8539_v22, %v3282_v48  ;;  %v2949_v22 = vadd.f32 %v9416_v63, %v9415_v52 }
 0x397   : > { %v3249_v4 = vpop.f32.mrf.mxu1  ;;  %v8706_v59 = vld [vmem:[#allocation3 + $0x40] sm:$0xff] }
 0x398   : > { %3499 = vst.msk [vmem:[#allocation3 + $0x50] sm:$0xff] %vm861_vm0, %v9363_v43  ;;  %v8712_v5 = vadd.f32 %v8568_v49, %v3445_v47  ;;  %v3283_v17 = vadd.f32 %v3249_v4, %v3120_v9  ;;  %6454 = vmatprep.mubr.msk.f32.mxu0 %vm861_vm0, %v8706_v59  ;;  %v3122_v37 = vadd.f32 %v9420_v29, %v2949_v22  ;;  %v5205_v29 = vld [vmem:[%s9407_s5 + $0x40] sm:$0xff] }
 0x399   : > { %v6297_v60 = vpop.f32.mrf.mxu1 }
 0x39a   : > { %v3482_v19 = vmax.f32 %v8712_v5, 0.0  ;;  %v3446_v41 = vadd.f32 %v9417_v58, %v3283_v17 }
 0x39b   : > { %v3254_v61 = vpop.f32.mrf.mxu1  ;;  %v8721_v34 = vld [vmem:[#allocation3 + $0x48] sm:$0xff] }
 0x39c   : > { %3500 = vst.msk [vmem:[#allocation3 + $0x58] sm:$0xff] %vm861_vm0, %v3482_v19  ;;  %v8727_v8 = vadd.f32 %v8568_v49, %v3446_v41  ;;  %v3284_v20 = vadd.f32 %v3254_v61, %v3121_v46  ;;  %6377 = vmatprep.mubr.msk.f32.mxu1 %vm861_vm0, %v8721_v34 }
 0x39d   : > { %v6300_v38 = vpop.f32.mrf.mxu1 }
 0x39e   : > { %v3483_v44 = vmax.f32 %v8727_v8, 0.0  ;;  %v3447_v0 = vadd.f32 %v9419_v18, %v3284_v20  ;;  %v3512_v20 = vld [vmem:[#allocation3 + $0x10] sm:$0xff] }
 0x39f   : > { %v3259_v28 = vpop.f32.mrf.mxu1  ;;  %v8734_v56 = vld [vmem:[#allocation3 + $0x50] sm:$0xff] }
 0x3a0   : > { %3501 = vst.msk [vmem:[#allocation3 + $0x60] sm:$0xff] %vm861_vm0, %v3483_v44  ;;  %v8740_v16 = vadd.f32 %v8568_v49, %v3447_v0  ;;  %v3285_v36 = vadd.f32 %v3259_v28, %v3122_v37  ;;  %6455 = vmatmul.mubr.msk.f32.gmra.mxu0 %vm861_vm0, %v8734_v56  ;;  %v3528_v18 = vld [vmem:[#allocation3 + $0x90] sm:$0xff]  ;;  %v5206_v0 = vld [vmem:[%s9407_s5 + $0x48] sm:$0xff]  ;;  %v9421_v37 = vmov 0.0   ;;  %v5219_v28 = vld [vmem:[%s9407_s5 + $0x70] sm:$0xff] }
 0x3a1   : > { %v6303_v21 = vpop.f32.mrf.mxu1 }
 0x3a2   : > { %v3484_v3 = vmax.f32 %v8740_v16, 0.0  ;;  %v3448_v48 = vadd.f32 %v8549_v30, %v3285_v36  ;;  %v5218_v36 = vld [vmem:[%s9407_s5 + $0x68] sm:$0xff]  ;;  %v5217_v21 = vld [vmem:[%s9407_s5 + $0x60] sm:$0xff] }
 0x3a3   : > { %v3264_v62 = vpop.f32.mrf.mxu1  ;;  %v8746_v23 = vld [vmem:[#allocation3 + $0x58] sm:$0xff] }
 0x3a4   : > { %3502 = vst.msk [vmem:[#allocation3 + $0x68] sm:$0xff] %vm861_vm0, %v3484_v3  ;;  %v8752_v47 = vadd.f32 %v8568_v49, %v3448_v48  ;;  %v3286_v9 = vadd.f32 %v3264_v62, %v8553_v15  ;;  %6378 = vmatmul.mubr.msk.f32.gmra.mxu1 %vm861_vm0, %v8746_v23  ;;  %v4229_v48 = vld [vmem:[%s9293_s7 + $0x78] sm:$0xff]  ;;  %v4244_v62 = vld [vmem:[%s9293_s7 + $0xf0] sm:$0xff]  ;;  %v4333_v16 = vld [vmem:[%s9295_s9 + $0x48] sm:$0xff] }
 0x3a5   : > { %v6306_v4 = vpop.f32.mrf.mxu1 }
 0x3a6   : > { %v9361_v17 = vmax.f32 %v8752_v47, 0.0  ;;  %v3449_v30 = vadd.f32 %v8555_v32, %v3286_v9  ;;  %v4228_v9 = vld [vmem:[%s9293_s7 + $0x70] sm:$0xff]  ;;  %v4243_v4 = vld [vmem:[%s9293_s7 + $0xe8] sm:$0xff] }
 0x3a7   : > { %v3269_v60 = vpop.f32.mrf.mxu1  ;;  %v3522_v52 = vld [vmem:[#allocation3 + $0x60] sm:$0xff] }
 0x3a8   : > { %3503 = vst.msk [vmem:[#allocation3 + $0x70] sm:$0xff] %vm861_vm0, %v9361_v17  ;;  %v8763_v63 = vadd.f32 %v8568_v49, %v3449_v30  ;;  %v3287_v22 = vadd.f32 %v3269_v60, %v8561_v25  ;;  %6457 = vmatprep.mubr.msk.f32.mxu0 %vm861_vm0, %v3522_v52  ;;  %v4227_v60 = vld [vmem:[%s9293_s7 + $0x68] sm:$0xff] }
 0x3a9   : > { %v6309_v15 = vpop.f32.mrf.mxu1 }
 0x3aa   : > { %v3486_v58 = vmax.f32 %v8763_v63, 0.0  ;;  %v3450_v41 = vadd.f32 %v8563_v50, %v3287_v22  ;;  %v3510_v50 = vld [vmem:[#allocation3] sm:$0xff]  ;;  %v4226_v15 = vld [vmem:[%s9293_s7 + $0x60] sm:$0xff] }
 0x3ab   : > { %v3523_v39 = vld [vmem:[#allocation3 + $0x68] sm:$0xff] }
 0x3ac   : > { %3504 = vst.msk [vmem:[#allocation3 + $0x78] sm:$0xff] %vm861_vm0, %v3486_v58  ;;  %v8773_v32 = vadd.f32 %v8568_v49, %v3450_v41  ;;  %6380 = vmatprep.mubr.msk.f32.mxu1 %vm861_vm0, %v3523_v39  ;;  %v5207_v49 = vld [vmem:[%s9407_s5 + $0x50] sm:$0xff]  ;;  %v4241_v41 = vld [vmem:[%s9293_s7 + $0xd8] sm:$0xff] }
 0x3ae   : > { %v3487_v46 = vmax.f32 %v8773_v32, 0.0  ;;  %v4329_v32 = vld [vmem:[%s9295_s9 + $0x28] sm:$0xff] }
 0x3af   : > { %v3524_v25 = vld [vmem:[#allocation3 + $0x70] sm:$0xff] }
 0x3b0   : > { %3505 = vst.msk [vmem:[#allocation3 + $0x80] sm:$0xff] %vm861_vm0, %v3487_v46  ;;  %6458 = vmatmul.mubr.msk.f32.gmra.mxu0 %vm861_vm0, %v3524_v25 }
 0x3b3   : > { %v3525_v61 = vld [vmem:[#allocation3 + $0x78] sm:$0xff] }
 0x3b4   : > { %6381 = vmatmul.mubr.msk.f32.gmra.mxu1 %vm861_vm0, %v3525_v61 }
 0x3b5   : > { %6391 = vmatprep.mubr.msk.f32.mxu1 %vm861_vm0, %v3510_v50 }
 0x3b7   : > { %v3526_v38 = vld [vmem:[#allocation3 + $0x80] sm:$0xff] }
 0x3b8   : > { %6392 = vmatmul.mubr.msk.f32.vlgmr.msra.gmra.mxu1 %vm861_vm0, %v3512_v20  ;;  %6460 = vmatprep.mubr.msk.f32.mxu0 %vm861_vm0, %v3526_v38 }
 0x3b9   : > { %6394 = vmatprep.mubr.msk.f32.mxu1 %vm861_vm0, %v8637_v24  ;;  %6404 = vmatpush3.msra.mxu1 %v8653_v26  ;;  %v5220_v26 = vld [vmem:[%s9407_s5 + $0x78] sm:$0xff] }
 0x3ba   : > { %6405 = vmatprep.subr.mxu1 %v5207_v49  ;;  %6461 = vmatmul.mubr.msk.f32.gmra.mxu0 %vm861_vm0, %v3528_v18 }
 0x3bb   : > { %6406 = vmatpush3.msra.mxu1 %v5207_v49  ;;  %6495 = vmatprep.mubr.msk.f32.mxu0 %vm6607_vm1, %v9421_v37 }
 0x3bc   : > { %6395 = vmatmul.mubr.msk.f32.gmra.mxu1 %vm861_vm0, %v8676_v13  ;;  %6407 = vmatprep.subr.mxu1 %v5206_v0 }
 0x3bd   : > { %6397 = vmatprep.mubr.msk.f32.mxu1 %vm861_vm0, %v8706_v59  ;;  %6408 = vmatpush3.msra.mxu1 %v5206_v0 }
 0x3be   : > { %6409 = vmatprep.subr.mxu1 %v5205_v29 }
 0x3bf   : > { %6410 = vmatpush3.msra.mxu1 %v5205_v29 }
 0x3c0   : > { %6398 = vmatmul.mubr.msk.f32.gmra.mxu1 %vm861_vm0, %v8734_v56  ;;  %6423 = vmatprep.subr.mxu1 %v5220_v26 }
 0x3c1   : > { %6400 = vmatprep.mubr.msk.f32.mxu1 %vm861_vm0, %v3522_v52 }
 0x3c4   : > { %6401 = vmatmul.mubr.msk.f32.gmra.mxu1 %vm861_vm0, %v3524_v25 }
 0x3c5   : > { %6411 = vmatprep.mubr.msk.f32.mxu1 %vm861_vm0, %v3512_v20  ;;  %v4224_v20 = vld [vmem:[%s9293_s7 + $0x50] sm:$0xff] }
 0x3c8   : > { %6412 = vmatmul.mubr.msk.f32.vlgmr.msra.gmra.mxu1 %vm861_vm0, %v8637_v24  ;;  %v3527_v24 = vld [vmem:[#allocation3 + $0x88] sm:$0xff] }
 0x3c9   : > { %6414 = vmatprep.mubr.msk.f32.mxu1 %vm861_vm0, %v8676_v13  ;;  %6424 = vmatpush3.msra.mxu1 %v5220_v26 }
 0x3ca   : > { %6425 = vmatprep.subr.mxu1 %v5219_v28 }
 0x3cb   : > { %6426 = vmatpush3.msra.mxu1 %v5219_v28 }
 0x3cc   : > { %6415 = vmatmul.mubr.msk.f32.gmra.mxu1 %vm861_vm0, %v8706_v59  ;;  %6427 = vmatprep.subr.mxu1 %v5218_v36 }
 0x3cd   : > { %6417 = vmatprep.mubr.msk.f32.mxu1 %vm861_vm0, %v8734_v56  ;;  %6428 = vmatpush3.msra.mxu1 %v5218_v36 }
 0x3ce   : > { %6429 = vmatprep.subr.mxu1 %v5217_v21 }
 0x3cf   : > { %6430 = vmatpush3.msra.mxu1 %v5217_v21 }
 0x3d0   : > { %6418 = vmatmul.mubr.msk.f32.gmra.mxu1 %vm861_vm0, %v3522_v52  ;;  %v4242_v52 = vld [vmem:[%s9293_s7 + $0xe0] sm:$0xff] }
 0x3d1   : > { %6420 = vmatprep.mubr.msk.f32.mxu1 %vm861_vm0, %v3524_v25  ;;  %v4225_v25 = vld [vmem:[%s9293_s7 + $0x58] sm:$0xff] }
 0x3d4   : > { %6421 = vmatmul.mubr.msk.f32.gmra.mxu1 %vm861_vm0, %v3526_v38  ;;  %v4239_v38 = vld [vmem:[%s9293_s7 + $0xc8] sm:$0xff] }
 0x3d5   : > { %6431 = vmatprep.mubr.msk.f32.mxu1 %vm861_vm0, %v8615_v51 }
 0x3d8   : > { %6432 = vmatmul.mubr.msk.f32.vlgmr.msra.gmra.mxu1 %vm861_vm0, %v8660_v10 }
 0x3d9   : > { %6434 = vmatprep.mubr.msk.f32.mxu1 %vm861_vm0, %v8691_v45 }
 0x3dc   : > { %6435 = vmatmul.mubr.msk.f32.gmra.mxu1 %vm861_vm0, %v8721_v34  ;;  %v4245_v34 = vld [vmem:[%s9293_s7 + $0xf8] sm:$0xff] }
 0x3dd   : > { %6437 = vmatprep.mubr.msk.f32.mxu1 %vm861_vm0, %v8746_v23  ;;  %5571 = vmatprep.subr.mxu1 %v4245_v34 }
 0x3de   : > { %5572 = vmatpush3.msra.mxu1 %v4229_v48 }
 0x3df   : > { %5573 = vmatprep.subr.mxu1 %v4244_v62 }
 0x3e0   : > { %6438 = vmatmul.mubr.msk.f32.gmra.mxu1 %vm861_vm0, %v3523_v39 }
 0x3e1   : > { %6440 = vmatprep.mubr.msk.f32.mxu1 %vm861_vm0, %v3525_v61  ;;  %5574 = vmatpush3.msra.mxu1 %v4228_v9  ;;  %v4240_v61 = vld [vmem:[%s9293_s7 + $0xd0] sm:$0xff] }
 0x3e2   : > { %5575 = vmatprep.subr.mxu1 %v4243_v4 }
 0x3e3   : > { %5576 = vmatpush3.msra.mxu1 %v4227_v60 }
 0x3e4   : > { %6441 = vmatmul.mubr.msk.f32.gmra.mxu1 %vm861_vm0, %v3527_v24  ;;  %5577 = vmatprep.subr.mxu1 %v4242_v52 }
 0x3e5   : > { %5578 = vmatpush3.msra.mxu1 %v4226_v15  ;;  %v4238_v15 = vld [vmem:[%s9293_s7 + $0xc0] sm:$0xff] }
 0x3e6   : > { %5579 = vmatprep.subr.mxu1 %v4241_v41  ;;  %v4222_v41 = vld [vmem:[%s9293_s7 + $0x40] sm:$0xff] }
 0x3e7   : > { %5580 = vmatpush3.msra.mxu1 %v4225_v25  ;;  %v4237_v25 = vld [vmem:[%s9293_s7 + $0xb8] sm:$0xff] }
 0x3e8   : > { %5581 = vmatprep.subr.mxu1 %v4240_v61 }
 0x3e9   : > { %5582 = vmatpush3.msra.mxu1 %v4224_v20  ;;  %v4221_v20 = vld [vmem:[%s9293_s7 + $0x38] sm:$0xff] }
 0x3ea   : > { %5583 = vmatprep.subr.mxu1 %v4239_v38 }
 0x444   : > { %v6373_v51 = vpop.f32.mrf.mxu1 }
 0x446   : > { %v3628_v13 = vpop.f32.mrf.mxu1 }
 0x450   : > { %v6453_v9 = vpop.f32.mrf.mxu0 }
 0x454   : > { %v8845_v59 = vpop.f32.mrf.mxu1 }
 0x456   : > { %v8847_v10 = vpop.f32.mrf.mxu1 }
 0x464   : > { %v8849_v45 = vpop.f32.mrf.mxu1 }
 0x466   : > { %v3648_v56 = vpop.f32.mrf.mxu1 }
 0x474   : > { %v8860_v23 = vpop.f32.mrf.mxu1 }
 0x476   : > { %v8868_v30 = vpop.f32.mrf.mxu1 }
 0x478   : > { %v6393_v22 = vpop.f32.mrf.mxu1 }
 0x47a   : > { %v3757_v39 = vpop.f32.mrf.mxu1 }
 0x47b   : > { %v3758_v50 = vadd.f32 %v3757_v39, %v3628_v13  ;;  %v3763_v39 = vadd.f32 %v6393_v22, %v6373_v51 }
 0x47c   : > { %v8888_v49 = vpop.f32.mrf.mxu1 }
 0x47e   : > { %v3767_v18 = vpop.f32.mrf.mxu1 }
 0x480   : > { %v6399_v0 = vpop.f32.mrf.mxu1 }
 0x482   : > { %v3777_v29 = vpop.f32.mrf.mxu1 }
 0x483   : > { %v3778_v26 = vadd.f32 %v3777_v29, %v3648_v56  ;;  %v4223_v56 = vld [vmem:[%s9293_s7 + $0x48] sm:$0xff]  ;;  %v4236_v29 = vld [vmem:[%s9293_s7 + $0xb0] sm:$0xff] }
 0x484   : > { %v8896_v28 = vpop.f32.mrf.mxu1  ;;  %5584 = vmatpush3.msra.mxu1 %v4223_v56  ;;  %v4235_v56 = vld [vmem:[%s9293_s7 + $0xa8] sm:$0xff] }
 0x485   : > { %5585 = vmatprep.subr.mxu1 %v4238_v15  ;;  %v3768_v15 = vadd.f32 %v3767_v18, %v8847_v10  ;;  %v3783_v10 = vadd.f32 %v6399_v0, %v8849_v45  ;;  %v4217_v45 = vld [vmem:[%s9293_s7 + $0x18] sm:$0xff]  ;;  %v4232_v0 = vld [vmem:[%s9293_s7 + $0x90] sm:$0xff] }
 0x486   : > { %v8898_v36 = vpop.f32.mrf.mxu1  ;;  %5586 = vmatpush3.msra.mxu1 %v4222_v41 }
 0x487   : > { %5587 = vmatprep.subr.mxu1 %v4237_v25 }
 0x488   : > { %v6413_v21 = vpop.f32.mrf.mxu1  ;;  %5588 = vmatpush3.msra.mxu1 %v4221_v20 }
 0x489   : > { %v3910_v38 = vadd.f32 %v6413_v21, %v3763_v39  ;;  %5589 = vmatprep.subr.mxu1 %v4236_v29  ;;  %v4220_v21 = vld [vmem:[%s9293_s7 + $0x30] sm:$0xff]  ;;  %v4234_v29 = vld [vmem:[%s9293_s7 + $0xa0] sm:$0xff] }
 0x48a   : > { %v3870_v24 = vpop.f32.mrf.mxu1  ;;  %5590 = vmatpush3.msra.mxu1 %v4220_v21 }
 0x48b   : > { %v3909_v13 = vadd.f32 %v3870_v24, %v3758_v50  ;;  %v4112_v50 = vpop.f32.mrf.mxu0  ;;  %5591 = vmatprep.subr.mxu1 %v4235_v56 }
 0x48c   : > { %v8900_v34 = vpop.f32.mrf.mxu1 }
 0x48d   : > { %v8926_v51 = vpop.f32.mrf.mxu0 }
 0x48e   : > { %v3880_v48 = vpop.f32.mrf.mxu1 }
 0x48f   : > { %v4122_v25 = vpop.f32.mrf.mxu0  ;;  %v3911_v18 = vadd.f32 %v3880_v48, %v3768_v15  ;;  %v3773_v48 = vadd.f32 %v8888_v49, %v8845_v59  ;;  %v4216_v59 = vld [vmem:[%s9293_s7 + $0x10] sm:$0xff] }
 0x490   : > { %v6419_v62 = vpop.f32.mrf.mxu1 }
 0x491   : > { %v3914_v56 = vadd.f32 %v6419_v62, %v3783_v10  ;;  %v3793_v62 = vadd.f32 %v8896_v28, %v8860_v23  ;;  %v4215_v10 = vld [vmem:[%s9293_s7 + $0x8] sm:$0xff] }
 0x492   : > { %v3890_v4 = vpop.f32.mrf.mxu1 }
 0x493   : > { %v8902_v60 = vadd.f32 %v3890_v4, %v3778_v26  ;;  %v8931_v4 = vld [vmem:[%s9292_s6] ss:$0 sm:$0xff] }
 0x494   : > { %v8904_v52 = vpop.f32.mrf.mxu1 }
 0x495   : > { %v3916_v23 = vadd.f32 %v8904_v52, %v3793_v62  ;;  %v4230_v52 = vld [vmem:[%s9293_s7 + $0x80] sm:$0xff] }
 0x496   : > { %v8918_v61 = vpop.f32.mrf.mxu1 }
 0x498   : > { %v6433_v22 = vpop.f32.mrf.mxu1 }
 0x499   : > { %v4031_v26 = vadd.f32 %v6433_v22, %v3910_v38  ;;  %v4219_v38 = vld [vmem:[%s9293_s7 + $0x28] sm:$0xff]  ;;  %v4218_v22 = vld [vmem:[%s9293_s7 + $0x20] sm:$0xff] }
 0x49a   : > { %v3991_v24 = vpop.f32.mrf.mxu1  ;;  %5592 = vmatpush3.msra.mxu1 %v4219_v38  ;;  %v3788_v38 = vadd.f32 %v8898_v36, %v8868_v30 }
 0x49b   : > { %v4152_v41 = vadd.f32 %v6453_v9, %v4031_v26  ;;  %v4030_v39 = vadd.f32 %v3991_v24, %v3909_v13  ;;  %v4233_v26 = vld [vmem:[%s9293_s7 + $0x98] sm:$0xff]  ;;  %v6459_v24 = vpop.f32.mrf.mxu0  ;;  %5593 = vmatprep.subr.mxu1 %v4234_v29  ;;  %v3912_v29 = vadd.f32 %v8900_v34, %v3773_v48 }
 0x49c   : > { %v6436_v20 = vpop.f32.mrf.mxu1  ;;  %5594 = vmatpush3.msra.mxu1 %v4218_v22  ;;  %v3915_v30 = vadd.f32 %v8918_v61, %v3788_v38  ;;  %v9422_v38 = vld [vmem:[#allocation11_spill] sm:$0xff] }
 0x49d   : > { %v4151_v13 = vadd.f32 %v4112_v50, %v4030_v39  ;;  %v4167_v9 = vadd.f32 %v8931_v4, %v4152_v41  ;;  %5595 = vmatprep.subr.mxu1 %v4233_v26  ;;  %v4132_v39 = vpop.f32.mrf.mxu0  ;;  %v4033_v36 = vadd.f32 %v6436_v20, %v3912_v29  ;;  %v9423_v29 = vmax.f32 %v9422_v38, 0.0 }
 0x49e   : > { %v4001_v21 = vpop.f32.mrf.mxu1  ;;  %5596 = vmatpush3.msra.mxu1 %v4217_v45 }
 0x49f   : > { %v8955_v17 = vadd.f32 %v8931_v4, %v4151_v13  ;;  %v4032_v31 = vadd.f32 %v4001_v21, %v3911_v18  ;;  %v4175_v43 = vmax.f32 %v4167_v9, 0.0  ;;  %5597 = vmatprep.subr.mxu1 %v4232_v0  ;;  %v4154_v0 = vadd.f32 %v8926_v51, %v4033_v36 }
 0x4a0   : > { %v6439_v50 = vpop.f32.mrf.mxu1  ;;  %5598 = vmatpush3.msra.mxu1 %v4216_v59 }
 0x4a1   : > { %v4153_v15 = vadd.f32 %v4122_v25, %v4032_v31  ;;  %v4035_v41 = vadd.f32 %v6439_v50, %v3914_v56  ;;  %4183 = vrot.lane.b32.xlu0 %v4175_v43, %s6608_s3  ;;  %v4231_v31 = vld [vmem:[%s9293_s7 + $0x88] sm:$0xff]  ;;  %v6462_v25 = vpop.f32.mrf.mxu0  ;;  %v4214_v56 = vld [vmem:[%s9293_s7] sm:$0xff] }
 0x4a2   : > { %v4011_v22 = vpop.f32.mrf.mxu1  ;;  %5599 = vmatprep.subr.mxu1 %v4231_v31  ;;  %v9426_v31 = vld [vmem:[#allocation12_spill] sm:$0xff] }
 0x4a3   : > { %v4156_v43 = vadd.f32 %v6459_v24, %v4035_v41  ;;  %v4034_v49 = vadd.f32 %v4011_v22, %v8902_v60  ;;  %v4168_v28 = vadd.f32 %v8931_v4, %v4153_v15  ;;  %5600 = vmatpush3.msra.mxu1 %v4215_v10  ;;  %v4142_v45 = vpop.f32.mrf.mxu0  ;;  %v9424_v22 = vld [vmem:[#allocation15_spill] sm:$0xff] }
 0x4a4   : > { %v6442_v34 = vpop.f32.mrf.mxu1  ;;  %5601 = vmatprep.subr.mxu1 %v4230_v52  ;;  %v9425_v59 = vmax.f32 %v9424_v22, 0.0  ;;  %v9436_v10 = vld [vmem:[#allocation35_spill] sm:$0xff] }
 0x4a5   : > { %v4155_v18 = vadd.f32 %v4132_v39, %v4034_v49  ;;  %v4037_v13 = vadd.f32 %v6442_v34, %v3916_v23  ;;  %v4176_v60 = vmax.f32 %v4168_v28, 0.0  ;;  %v4171_v9 = vadd.f32 %v8931_v4, %v4156_v43  ;;  %5602 = vmatpush3.msra.mxu1 %v4214_v56  ;;  %v9428_v43 = vld [vmem:[#allocation23_spill] sm:$0xff]  ;;  %v9452_v56 = vld [vmem:[#allocation13_spill] sm:$0xff] }
 0x4a6   : > { %v4021_v26 = vpop.f32.mrf.mxu1  ;;  %v4169_v39 = vadd.f32 %v8931_v4, %v4154_v0  ;;  %v9427_v23 = vmax.f32 %v9426_v31, 0.0  ;;  %v9430_v49 = vld [vmem:[#allocation19_spill] sm:$0xff]  ;;  %v9437_v52 = vmax.f32 %v9436_v10, 0.0  ;;  %v9453_v35 = vmax.f32 %v9452_v56, 0.0  ;;  %v9464_v56 = vld [vmem:[#allocation14_spill] sm:$0xff] }
 0x4a7   : > { %v8989_v61 = vadd.f32 %v8931_v4, %v4155_v18  ;;  %v4158_v20 = vadd.f32 %v6462_v25, %v4037_v13  ;;  %v4036_v24 = vadd.f32 %v4021_v26, %v3915_v30  ;;  %4187 = vrot.lane.b32.xlu1 %v4176_v60, %s6609_s2  ;;  %v4179_v21 = vmax.f32 %v4171_v9, 0.0  ;;  %v9432_v30 = vld [vmem:[#allocation31_spill] sm:$0xff]  ;;  %v9438_v18 = vld [vmem:[#allocation20_spill] sm:$0xff] }
 0x4a8   : > { %v4177_v51 = vmax.f32 %v4169_v39, 0.0  ;;  %v9431_v28 = vmax.f32 %v9430_v49, 0.0  ;;  %v9433_v36 = vmax.f32 %v9432_v30, 0.0  ;;  %v9434_v34 = vld [vmem:[#allocation27_spill] sm:$0xff]  ;;  %v9439_v13 = vmax.f32 %v9438_v18, 0.0  ;;  %v9440_v60 = vld [vmem:[#allocation16_spill] sm:$0xff] }
 0x4a9   : > { %v4173_v48 = vadd.f32 %v8931_v4, %v4158_v20  ;;  %v4157_v50 = vadd.f32 %v4142_v45, %v4036_v24  ;;  %4195 = vrot.lane.b32.xlu0 %v4179_v21, %s6608_s3  ;;  %v9435_v25 = vmax.f32 %v9434_v34, 0.0  ;;  %v9441_v53 = vmax.f32 %v9440_v60, 0.0  ;;  %v9444_v26 = vld [vmem:[#allocation24_spill] sm:$0xff]  ;;  %v9450_v24 = vld [vmem:[#allocation17_spill] sm:$0xff]  ;;  %v4339_v0 = vld [vmem:[%s9295_s9 + $0x78] sm:$0xff] }
 0x4aa   : > { %v9445_v5 = vmax.f32 %v9444_v26, 0.0  ;;  %v9451_v21 = vmax.f32 %v9450_v24, 0.0  ;;  %6464 = vmatpush3.msra.mxu0 %v4339_v0  ;;  %v4174_v31 = vmax.f32 %v8955_v17, 0.0 }
 0x4ab   : > { %v4181_v62 = vmax.f32 %v4173_v48, 0.0  ;;  %v4172_v15 = vadd.f32 %v8931_v4, %v4157_v50  ;;  %v9429_v4 = vmax.f32 %v9428_v43, 0.0  ;;  %v4338_v48 = vld [vmem:[%s9295_s9 + $0x70] sm:$0xff]  ;;  %6465 = vmatprep.subr.mxu0 %v9421_v37  ;;  %v4337_v50 = vld [vmem:[%s9295_s9 + $0x68] sm:$0xff] }
 0x4ac   : > { %6466 = vmatpush3.msra.mxu0 %v4338_v48  ;;  %v9468_v48 = vld [vmem:[#allocation22_spill] sm:$0xff] }
 0x4ad   : > { %v4180_v41 = vmax.f32 %v4172_v15, 0.0  ;;  %4203 = vrot.lane.b32.xlu0 %v4181_v62, %s6610_s20  ;;  %v9462_v62 = vld [vmem:[#allocation37_spill] sm:$0xff]  ;;  %6467 = vmatprep.subr.mxu0 %v9421_v37 }
 0x4ae   : > { %v9463_v15 = vmax.f32 %v9462_v62, 0.0  ;;  %6468 = vmatpush3.msra.mxu0 %v4337_v50  ;;  %v9469_v50 = vmax.f32 %v9468_v48, 0.0 }
 0x4af   : > { %4199 = vrot.lane.b32.xlu1 %v4180_v41, %s6609_s2  ;;  %v4336_v41 = vld [vmem:[%s9295_s9 + $0x60] sm:$0xff]  ;;  %6469 = vmatprep.subr.mxu0 %v9421_v37 }
 0x4b0   : > { %6470 = vmatpush3.msra.mxu0 %v4336_v41 }
 0x4b1   : > { %4419 = vrot.lane.b32.xlu0 %v9423_v29, %s6608_s3  ;;  %6471 = vmatprep.subr.mxu0 %v9421_v37  ;;  %v4178_v29 = vmax.f32 %v8989_v61, 0.0 }
 0x4b2   : > { %6472 = vmatpush3.msra.mxu0 %v4335_v1 }
 0x4b3   : > { %4191 = vrot.lane.b32.xlu1 %v4177_v51, %s6610_s20  ;;  %6473 = vmatprep.subr.mxu0 %v9421_v37 }
 0x4b5   : > { %4431 = vrot.lane.b32.xlu0 %v9425_v59, %s6608_s3 }
 0x4b7   : > { %4423 = vrot.lane.b32.xlu1 %v9427_v23, %s6609_s2 }
 0x4b9   : > { %4455 = vrot.lane.b32.xlu0 %v9429_v4, %s6608_s3 }
 0x4bb   : > { %4443 = vrot.lane.b32.xlu1 %v9431_v28, %s6608_s3 }
 0x4bd   : > { %4491 = vrot.lane.b32.xlu0 %v9433_v36, %s6608_s3 }
 0x4bf   : > { %4479 = vrot.lane.b32.xlu1 %v9435_v25, %s6608_s3 }
 0x4c1   : > { %4532 = vrot.lane.b32.xlu0 %v3474_v57, %s6608_s3  ;;  %v9442_v57 = vld [vmem:[#allocation28_spill] sm:$0xff] }
 0x4c2   : > { %v9443_v9 = vmax.f32 %v9442_v57, 0.0 }
 0x4c3   : > { %4503 = vrot.lane.b32.xlu1 %v9437_v52, %s6608_s3 }
 0x4c5   : > { %4556 = vrot.lane.b32.xlu0 %v3482_v19, %s6608_s3  ;;  %v9446_v19 = vld [vmem:[#allocation36_spill] sm:$0xff] }
 0x4c6   : > { %v9447_v7 = vmax.f32 %v9446_v19, 0.0 }
 0x4c7   : > { %4544 = vrot.lane.b32.xlu1 %v3478_v54, %s6608_s3  ;;  %v9448_v54 = vld [vmem:[#allocation32_spill] sm:$0xff] }
 0x4c8   : > { %v9449_v20 = vmax.f32 %v9448_v54, 0.0 }
 0x4c9   : > { %4447 = vrot.lane.b32.xlu0 %v9439_v13, %s6609_s2 }
 0x4cb   : > { %4435 = vrot.lane.b32.xlu1 %v9441_v53, %s6609_s2 }
 0x4cd   : > { %4483 = vrot.lane.b32.xlu0 %v9443_v9, %s6609_s2 }
 0x4cf   : > { %4459 = vrot.lane.b32.xlu1 %v9445_v5, %s6609_s2 }
 0x4d1   : > { %4507 = vrot.lane.b32.xlu0 %v9447_v7, %s6609_s2 }
 0x4d3   : > { %4495 = vrot.lane.b32.xlu1 %v9449_v20, %s6609_s2 }
 0x4d5   : > { %4548 = vrot.lane.b32.xlu0 %v3479_v42, %s6609_s2  ;;  %v9454_v42 = vld [vmem:[#allocation25_spill] sm:$0xff] }
 0x4d6   : > { %v9455_v11 = vmax.f32 %v9454_v42, 0.0 }
 0x4d7   : > { %4536 = vrot.lane.b32.xlu1 %v3475_v55, %s6609_s2  ;;  %v9456_v55 = vld [vmem:[#allocation21_spill] sm:$0xff] }
 0x4d8   : > { %v9457_v63 = vmax.f32 %v9456_v55, 0.0 }
 0x4d9   : > { %4568 = vrot.lane.b32.xlu0 %v3486_v58, %s6608_s3  ;;  %v9458_v58 = vld [vmem:[#allocation33_spill] sm:$0xff]  ;;  %s4609_s3 = scalar_lea.sflag [#allocation6], %s6826_s27 }
 0x4da   : > { %v9459_v8 = vmax.f32 %v9458_v58, 0.0 }
 0x4db   : > { %4560 = vrot.lane.b32.xlu1 %v3483_v44, %s6609_s2  ;;  %v9460_v44 = vld [vmem:[#allocation29_spill] sm:$0xff] }
 0x4dc   : > { %v9461_v45 = vmax.f32 %v9460_v44, 0.0 }
 0x4dd   : > { %4439 = vrot.lane.b32.xlu0 %v9451_v21, %s6610_s20 }
 0x4df   : > { %4427 = vrot.lane.b32.xlu1 %v9453_v35, %s6610_s20  ;;  %v9465_v35 = vmax.f32 %v9464_v56, 0.0 }
 0x4e1   : > { %4463 = vrot.lane.b32.xlu0 %v9455_v11, %s6610_s20 }
 0x4e3   : > { %4451 = vrot.lane.b32.xlu1 %v9457_v63, %s6610_s20  ;;  %v9466_v63 = vld [vmem:[#allocation10_spill] sm:$0xff] }
 0x4e4   : > { %v9467_v58 = vmax.f32 %v9466_v63, 0.0 }
 0x4e5   : > { %4499 = vrot.lane.b32.xlu0 %v9459_v8, %s6610_s20 }
 0x4e7   : > { %4487 = vrot.lane.b32.xlu1 %v9461_v45, %s6610_s20 }
 0x4e9   : > { %4540 = vrot.lane.b32.xlu0 %v3476_v6, %s6610_s20  ;;  %v4334_v6 = vld [vmem:[%s9295_s9 + $0x50] sm:$0xff] }
 0x4ea   : > { %6474 = vmatpush3.msra.mxu0 %v4334_v6  ;;  %v9470_v6 = vld [vmem:[#allocation18_spill] sm:$0xff] }
 0x4eb   : > { %4511 = vrot.lane.b32.xlu1 %v9463_v15, %s6610_s20  ;;  %6475 = vmatprep.subr.mxu0 %v9421_v37 }
 0x4ec   : > { %6476 = vmatpush3.msra.mxu0 %v4333_v16  ;;  %v9471_v16 = vmax.f32 %v9470_v6, 0.0 }
 0x4ed   : > { %4564 = vrot.lane.b32.xlu0 %v3484_v3, %s6610_s20  ;;  %6477 = vmatprep.subr.mxu0 %v9421_v37  ;;  %v4330_v3 = vld [vmem:[%s9295_s9 + $0x30] sm:$0xff] }
 0x4ee   : > { %6478 = vmatpush3.msra.mxu0 %v4332_v12 }
 0x4ef   : > { %4552 = vrot.lane.b32.xlu1 %v3480_v33, %s6610_s20  ;;  %v4331_v33 = vld [vmem:[%s9295_s9 + $0x38] sm:$0xff]  ;;  %6479 = vmatprep.subr.mxu0 %v9421_v37 }
 0x4f0   : > { %6480 = vmatpush3.msra.mxu0 %v4331_v33 }
 0x4f1   : > { %6481 = vmatprep.subr.mxu0 %v9421_v37 }
 0x4f2   : > { %6482 = vmatpush3.msra.mxu0 %v4330_v3 }
 0x4f3   : > { %4572 = vrot.lane.b32.xlu1 %v3487_v46, %s6609_s2  ;;  %6483 = vmatprep.subr.mxu0 %v9421_v37  ;;  %s4807_s2 = sshll.u32 %s6826_s27, 3 }
 0x4f4   : > { %6484 = vmatpush3.msra.mxu0 %v4329_v32  ;;  %s677_s25 = scalar_lea.vmem [#allocation5], %s4807_s2 }
 0x4f5   : > { %6485 = vmatprep.subr.mxu0 %v9421_v37  ;;  %s4635_s30 = sshll.u32 %s677_s25, 4  ;;  %s4636_s30 = int_to_ptr.vmem [resolvable:$true] %s4635_s30 }
 0x4f6   : > { %s6544_s0 = scalar_lea.vmem %s4636_s30, 128 }
 0x4f7   : > { %p6545_p0 = scmp.ne.s32.totalorder %s4636_s30, %s6544_s0 }
 0x4f9   : > { %p6546_p1 = pnand %p6545_p0, %p6731_p6 }
 0x4fb   : > { %p6547_p2 = pneg %p6546_p1 }
 0x513   : > { %v4184_v46 = vpop.permute.xlu0 %4183 }
 0x514   : > { %v4206_v49 = vsel %vm861_vm0, %v4174_v31, %v4184_v46  ;;  %v9472_v46 = vld [vmem:[#allocation30_spill] sm:$0xff] }
 0x519   : > { %v4188_v38 = vpop.permute.xlu1 %4187 }
 0x51a   : > { %v4208_v61 = vsel %vm4207_vm3, %v4206_v49, %v4188_v38 }
 0x51b   : > { %v4196_v39 = vpop.permute.xlu0 %4195 }
 0x51c   : > { %v4211_v22 = vsel %vm861_vm0, %v4178_v29, %v4196_v39  ;;  %v9473_v39 = vmax.f32 %v9472_v46, 0.0 }
 0x51f   : > { %v4204_v51 = vpop.permute.xlu0 %4203 }
 0x521   : > { %v4200_v59 = vpop.permute.xlu1 %4199 }
 0x522   : > { %v4212_v23 = vsel %vm4207_vm3, %v4211_v22, %v4200_v59  ;;  %v9474_v59 = vld [vmem:[#allocation26_spill] sm:$0xff] }
 0x523   : > { %v4420_v43 = vpop.permute.xlu0 %4419  ;;  %v4213_v4 = vsel %vm4209_vm2, %v4212_v23, %v4204_v51  ;;  %v9475_v31 = vmax.f32 %v9474_v59, 0.0 }
 0x524   : > { %4317 = vmatprep.mubr.f32.mxu1 %v4213_v4  ;;  %4591 = vst [vmem:[%s698_s4 + $0x8] sm:$0xff] %v4213_v4  ;;  %v4466_v8 = vsel %vm861_vm0, %v9467_v58, %v4420_v43 }
 0x525   : > { %v4192_v28 = vpop.permute.xlu1 %4191 }
 0x526   : > { %v4210_v30 = vsel %vm4209_vm2, %v4208_v61, %v4192_v28 }
 0x527   : > { %4590 = vst [vmem:[%s698_s4] sm:$0xff] %v4210_v30  ;;  %v4432_v36 = vpop.permute.xlu0 %4431  ;;  %4318 = vmatmul.mubr.f32.vlgmr.msra.gmra.mxu1 %v4210_v30  ;;  %s4633_s4 = scalar_lea.hbm %s9300_s14, %s5245_s26 }
 0x528   : > { %v4469_v42 = vsel %vm861_vm0, %v9465_v35, %v4432_v36 }
 0x529   : > { %v4424_v34 = vpop.permute.xlu1 %4423 }
 0x52a   : > { %v4467_v45 = vsel %vm4207_vm3, %v4466_v8, %v4424_v34  ;;  %v9476_v34 = vld [vmem:[#allocation34_spill] sm:$0xff] }
 0x52b   : > { %v4456_v25 = vpop.permute.xlu0 %4455 }
 0x52c   : > { %v4475_v62 = vsel %vm861_vm0, %v9469_v50, %v4456_v25  ;;  %v9477_v25 = vmax.f32 %v9476_v34, 0.0 }
 0x52d   : > { %v4444_v17 = vpop.permute.xlu1 %4443 }
 0x52e   : > { %v4472_v12 = vsel %vm861_vm0, %v9471_v16, %v4444_v17 }
 0x52f   : > { %v4492_v10 = vpop.permute.xlu0 %4491 }
 0x530   : > { %v4517_v38 = vsel %vm861_vm0, %v9473_v39, %v4492_v10 }
 0x531   : > { %v4480_v52 = vpop.permute.xlu1 %4479 }
 0x532   : > { %v4514_v23 = vsel %vm861_vm0, %v9475_v31, %v4480_v52  ;;  %v9478_v52 = vmax.f32 %v8697_v14, 0.0 }
 0x533   : > { %v4533_v18 = vpop.permute.xlu0 %4532 }
 0x534   : > { %v4575_v61 = vsel %vm861_vm0, %v3473_v2, %v4533_v18 }
 0x535   : > { %v4504_v13 = vpop.permute.xlu1 %4503 }
 0x536   : > { %v4520_v17 = vsel %vm861_vm0, %v9477_v25, %v4504_v13 }
 0x537   : > { %v4557_v60 = vpop.permute.xlu0 %4556 }
 0x538   : > { %v4581_v18 = vsel %vm861_vm0, %v9478_v52, %v4557_v60  ;;  %v9480_v60 = vmax.f32 %v8752_v47, 0.0  ;;  %v4326_v47 = vld [vmem:[%s9295_s9 + $0x10] sm:$0xff] }
 0x539   : > { %v4545_v53 = vpop.permute.xlu1 %4544 }
 0x53b   : > { %v4448_v57 = vpop.permute.xlu0 %4447 }
 0x53c   : > { %v4473_v3 = vsel %vm4207_vm3, %v4472_v12, %v4448_v57 }
 0x53d   : > { %v4436_v9 = vpop.permute.xlu1 %4435 }
 0x53e   : > { %v4470_v11 = vsel %vm4207_vm3, %v4469_v42, %v4436_v9 }
 0x53f   : > { %v4484_v26 = vpop.permute.xlu0 %4483 }
 0x540   : > { %v4515_v4 = vsel %vm4207_vm3, %v4514_v23, %v4484_v26 }
 0x541   : > { %v4460_v5 = vpop.permute.xlu1 %4459 }
 0x542   : > { %v4476_v41 = vsel %vm4207_vm3, %v4475_v62, %v4460_v5  ;;  %v9479_v5 = vmax.f32 %v8624_v40, 0.0  ;;  %v4328_v40 = vld [vmem:[%s9295_s9 + $0x20] sm:$0xff] }
 0x543   : > { %v4508_v19 = vpop.permute.xlu0 %4507  ;;  %6486 = vmatpush3.msra.mxu0 %v4328_v40 }
 0x544   : > { %v4521_v27 = vsel %vm4207_vm3, %v4520_v17, %v4508_v19  ;;  %v4578_v13 = vsel %vm861_vm0, %v9479_v5, %v4545_v53  ;;  %6487 = vmatprep.subr.mxu0 %v9421_v37  ;;  %v4327_v53 = vld [vmem:[%s9295_s9 + $0x18] sm:$0xff] }
 0x545   : > { %v4496_v7 = vpop.permute.xlu1 %4495  ;;  %6488 = vmatpush3.msra.mxu0 %v4327_v53 }
 0x546   : > { %v4518_v51 = vsel %vm4207_vm3, %v4517_v38, %v4496_v7  ;;  %6489 = vmatprep.subr.mxu0 %v9421_v37 }
 0x547   : > { %v4549_v54 = vpop.permute.xlu0 %4548  ;;  %6490 = vmatpush3.msra.mxu0 %v4326_v47 }
 0x548   : > { %v4579_v19 = vsel %vm4207_vm3, %v4578_v13, %v4549_v54  ;;  %6491 = vmatprep.subr.mxu0 %v9421_v37  ;;  %v4325_v54 = vld [vmem:[%s9295_s9 + $0x8] sm:$0xff] }
 0x549   : > { %v4537_v20 = vpop.permute.xlu1 %4536  ;;  %6492 = vmatpush3.msra.mxu0 %v4325_v54 }
 0x54a   : > { %v4576_v30 = vsel %vm4207_vm3, %v4575_v61, %v4537_v20  ;;  %6493 = vmatprep.subr.mxu0 %v9421_v37 }
 0x54b   : > { %v4569_v24 = vpop.permute.xlu0 %4568 }
 0x54c   : > { %v4584_v56 = vsel %vm861_vm0, %v9480_v60, %v4569_v24  ;;  %v4324_v24 = vld [vmem:[%s9295_s9] sm:$0xff] }
 0x54d   : > { %v4561_v21 = vpop.permute.xlu1 %4560  ;;  %6494 = vmatpush3.msra.mxu0 %v4324_v24 }
 0x54e   : > { %v4582_v9 = vsel %vm4207_vm3, %v4581_v18, %v4561_v21 }
 0x54f   : > { %v4440_v55 = vpop.permute.xlu0 %4439 }
 0x550   : > { %v4471_v44 = vsel %vm4209_vm2, %v4470_v11, %v4440_v55  ;;  %v5242_v11 = vld [vmem:[%s9294_s8] ss:$0 sm:$0xff] }
 0x551   : > { %4524 = vst [vmem:[%s8202_s23 + $0x8] sm:$0xff] %v4471_v44  ;;  %v4428_v0 = vpop.permute.xlu1 %4427 }
 0x552   : > { %v4468_v15 = vsel %vm4209_vm2, %v4467_v45, %v4428_v0 }
 0x553   : > { %4523 = vst [vmem:[%s8202_s23] sm:$0xff] %v4468_v15  ;;  %v4464_v1 = vpop.permute.xlu0 %4463 }
 0x554   : > { %v4477_v33 = vsel %vm4209_vm2, %v4476_v41, %v4464_v1 }
 0x555   : > { %4526 = vst [vmem:[%s8202_s23 + $0x18] sm:$0xff] %v4477_v33  ;;  %v4452_v32 = vpop.permute.xlu1 %4451 }
 0x556   : > { %v4474_v29 = vsel %vm4209_vm2, %v4473_v3, %v4452_v32 }
 0x557   : > { %4525 = vst [vmem:[%s8202_s23 + $0x10] sm:$0xff] %v4474_v29  ;;  %v4500_v22 = vpop.permute.xlu0 %4499 }
 0x558   : > { %v4519_v43 = vsel %vm4209_vm2, %v4518_v51, %v4500_v22 }
 0x559   : > { %4528 = vst [vmem:[%s8202_s23 + $0x28] sm:$0xff] %v4519_v43  ;;  %v4488_v49 = vpop.permute.xlu1 %4487 }
 0x55a   : > { %v4516_v28 = vsel %vm4209_vm2, %v4515_v4, %v4488_v49 }
 0x55b   : > { %4527 = vst [vmem:[%s8202_s23 + $0x20] sm:$0xff] %v4516_v28  ;;  %v4541_v36 = vpop.permute.xlu0 %4540 }
 0x55c   : > { %v4577_v10 = vsel %vm4209_vm2, %v4576_v30, %v4541_v36 }
 0x55d   : > { %4586 = vst [vmem:[%s693_s16] sm:$0xff] %v4577_v10  ;;  %v4512_v2 = vpop.permute.xlu1 %4511 }
 0x55e   : > { %v4522_v57 = vsel %vm4209_vm2, %v4521_v27, %v4512_v2 }
 0x55f   : > { %4529 = vst [vmem:[%s8202_s23 + $0x30] sm:$0xff] %v4522_v57  ;;  %v4565_v26 = vpop.permute.xlu0 %4564 }
 0x560   : > { %v4583_v7 = vsel %vm4209_vm2, %v4582_v9, %v4565_v26 }
 0x561   : > { %4588 = vst [vmem:[%s693_s16 + $0x10] sm:$0xff] %v4583_v7  ;;  %v4553_v20 = vpop.permute.xlu1 %4552 }
 0x562   : > { %v4580_v14 = vsel %vm4209_vm2, %v4579_v19, %v4553_v20 }
 0x563   : > { %4587 = vst [vmem:[%s693_s16 + $0x8] sm:$0xff] %v4580_v14 }
 0x565   : > { %v4573_v21 = vpop.permute.xlu1 %4572 }
 0x566   : > { %v4585_v35 = vsel %vm4207_vm3, %v4584_v56, %v4573_v21 }
 0x567   : > { %4589 = vst.msk [vmem:[%s693_s16 + $0x18] sm:$0xff] %vm4209_vm2, %v4585_v35  ;;  %s6611_s16 = smov [#allocation5]  }
 0x568   : > { %s6548_s23 = sshll.u32 %s6611_s16, 4  ;;  %s6549_s23 = int_to_ptr.vmem [resolvable:$false] %s6548_s23 }
 0x569   : > { %s6550_s5 = scalar_lea.vmem %s6549_s23, 256  ;;  %p6551_p3 = scmp.lt.s32.totalorder %s4636_s30, %s6549_s23 }
 0x56a   : > { %p6552_p4 = scmp.lt.s32.totalorder %s6550_s5, %s6544_s0 }
 0x56c   : > { %p6553_p5 = por %p6552_p4, %p6551_p3 }
 0x56e   : > { %p6554_p7 = pnand %p6553_p5, %p6547_p2 }
 0x5e7   : > { %v5603_v42 = vpop.f32.mrf.mxu1 }
 0x5e9   : > { %v5604_v55 = vpop.f32.mrf.mxu1 }
 0x5ea   : > { %v5605_v63 = vadd.f32 %v5604_v55, %v5603_v42 }
 0x5ec   : > { %v4320_v58 = vadd.f32 %v5605_v63, %v5242_v11 }
 0x5ee   : > { %v4323_v8 = vmax.f32 %v4320_v58, 0.0 }
 0x5f0   : > { %6496 = vmatmul.mubr.f32.vlgmr.msra.gmra.mxu0 %v4323_v8  ;;  %4592 = vst [vmem:[%s677_s25] sm:$0xff] %v4323_v8 }
 0x5f1   : > { %6557 = shalt.err (!%p6554_p7)
}
 0x5f2   : > { %s6558_s22 = scalar_lea.hbm %s4633_s4, 128  ;;  %s6562_s25 = scalar_lea.hbm %s9300_s14, 256 }
 0x5f3   : > { %p6559_p10 = scmp.ne.s32.totalorder %s4633_s4, %s6558_s22  ;;  %p6563_p13 = scmp.lt.s32.totalorder %s4633_s4, %s9300_s14 }
 0x5f4   : > { %p6564_p0 = scmp.lt.s32.totalorder %s6562_s25, %s6558_s22 }
 0x5f5   : > { %p6560_p11 = pnand %p6559_p10, %p6731_p6 }
 0x5f6   : > { %p6565_p1 = por %p6564_p0, %p6563_p13 }
 0x5f7   : > { %p6561_p12 = pneg %p6560_p11 }
 0x5f9   : > { %p6566_p9 = pnand %p6565_p1, %p6561_p12 }
 0x5fb   : > { %6569 = shalt.err (!%p6566_p9)
}
 0x5fc   : > { %6500 = dma.vmem_to_hbm [thread:$0]  (%p6731_p6), %s4636_s30, 128, %s4633_s4, %s4609_s3   ;;  %v5243_v37 = vld [vmem:[%s9296_s10] ss:$0 sm:$0xff] }
 0x5fd   : > { %s4814_s5 = sshll.u32 %s8174_s17, 3 }
 0x5fe   : > { %s702_s27 = scalar_lea.vmem %s9301_s15, %s4814_s5 }
 0x6b0   : > { %v4413_v44 = vpop.f32.mrf.mxu0 }
 0x6b1   : > { %v4414_v45 = vadd.f32 %v5243_v37, %v4413_v44 }
 0x6b2   : > { %v6497_v0 = vpop.f32.mrf.mxu0 }
 0x6b3   : > { %4417 = vst [vmem:[%s702_s27] sm:$0xff] %v4414_v45 }
 0x6b4 PF: > { %s4674_s28 = sand.u32 1, %s6592_s18   ;;  %p9481_p6 = scmp.ge.s32.totalorder %s6604_s21, 2 }
 0x6b5   : > { %s4675_s17 = scalar_lea.sflag [#allocation6], %s4674_s28 }
 0x6b6   : > { %p6503_p9 = pnand %p9481_p6, %p6735_p8 }
 0x6b8   : > { %p6504_p2 = pneg %p6503_p9 }
 0x6ba   : > { %6587 = dma.done.wait (%p6504_p2), %s4675_s17, 128  }
 0x6bb   : > { %6589 = vsyncadd (%p6504_p2), %s4675_s17, 4294967168  ;;  %s9482_s4 = sld [smem:[#allocation8_spill]]  ;;  %p26_p3 = scmp.ge.s32.totalorder %s6717_s24, 4  }
 0x6bc   : > { %s9483_s20 = sld [smem:[#allocation9_spill]]  ;;  %s9484_s18 = smov %s6596_s19 }
 0x6bd   : > { %s9486_s21 = smov %s6717_s24  ;;  %28 = sbr.rel (!%p26_p3) target bundleno = 10 (0xa), region = 210 }
 0x6c1   : > { %s9485_s19 = smov %s9482_s4 }
 0x6c2   :  { %4687 = vsyncpa [#allocation6], 1 }
 0x6c3   :  { %4689 = vsyncpa [#allocation6 + $0x1], 1 }

</bundles_post_ra>
